<compile_context>
chip_gen: v5e
topology: v5e:2x2
jax: 0.10.0
libtpu: 0.0.40
codegen_flags: <defaults>
</compile_context>

<pallas_src>
import numpy as np
import jax
import jax.numpy as jnp
from jax import lax
from jax.experimental import pallas as pl
from jax.experimental.pallas import tpu as pltpu


# ----------------------------------------------------------------------------
# Linear upsample matrix matching PyTorch trilinear, align_corners=False.
# ----------------------------------------------------------------------------
def linear_upsample_matrix(n_in, n_out):
    scale = n_in / n_out
    M = np.zeros((n_out, n_in), np.float32)
    for i in range(n_out):
        src = scale * (i + 0.5) - 0.5
        src = max(src, 0.0)                      # PyTorch clamps negative source coords
        i0 = min(int(np.floor(src)), n_in - 1)
        i1 = min(i0 + 1, n_in - 1)
        lam = src - i0
        M[i, i0] += 1.0 - lam
        M[i, i1] += lam
    return M


def build_tap_masks(Wd, D, H):
    """0/1 mask per (kd, kh) tap over the flattened (w, d, h) spatial axis (halo handling)."""
    S = Wd * D * H
    s = np.arange(S)
    d = (s // H) % D
    h = s % H
    masks = np.zeros((9, S), np.float32)
    for kd in range(3):
        for kh in range(3):
            dd, dh = kd - 1, kh - 1
            ok = (d + dd >= 0) & (d + dd < D) & (h + dh >= 0) & (h + dh < H)
            masks[kd * 3 + kh] = ok.astype(np.float32)
    return masks


# ----------------------------------------------------------------------------
# Fused per-sample kernel. Everything is channel-major with the flattened
# spatial axis S = Wd*D*H (order w, d, h; h fastest) living in the lane dim.
# ----------------------------------------------------------------------------
def _make_fused_kernel(Wd, D, H, C1, C2, Cmid):
    Cin = C1 + C2
    S = Wd * D * H
    eps = 1e-5

    def conv3x3x1_in_relu(x, w_ref, b_ref, mask_ref):
        # 3x3x1 conv (padding (1,1,0)) as 9 accumulated (Cmid, C) @ (C, S) matmuls.
        # The (kd, kh) spatial shift is a lane roll on the (C, S) layout; positions whose
        # source lies outside the image (the zero-pad halo) are zeroed by the per-tap mask.
        acc = jnp.zeros((Cmid, S), jnp.float32)
        for kd in range(3):
            for kh in range(3):
                t = kd * 3 + kh
                off = (kd - 1) * H + (kh - 1)          # flat-index shift for this tap
                if off == 0:
                    tap = x                             # center tap: no roll, mask is all-ones
                else:
                    tap = pltpu.roll(x, shift=(-off) % S, axis=1) * mask_ref[pl.ds(t, 1), :]
                acc = acc + jnp.dot(w_ref[t], tap, preferred_element_type=jnp.float32)
        acc = acc + b_ref[...]                                        # (Cmid, S) + (Cmid, 1)
        # InstanceNorm3d (per channel over this sample's spatial positions) + ReLU;
        # reductions run along the lane axis.
        mu = jnp.mean(acc, axis=1, keepdims=True)
        var = jnp.mean((acc - mu) ** 2, axis=1, keepdims=True)
        return jnp.maximum((acc - mu) * lax.rsqrt(var + eps), 0.0)

    def kernel(x1_ref, x2_ref, updh_ref, w1_ref, b1_ref, w2_ref, b2_ref, mask_ref,
               y_ref):
        # ---- trilinear upsample of inputs2: Wd per-W-slice matmuls against (Ud ⊗ Uh)^T ----
        updh = updh_ref[...]                                          # (D2*H2, D*H)
        ups = jnp.concatenate(
            [jnp.dot(x2_ref[0, w], updh, preferred_element_type=jnp.float32)   # (C2, D*H)
             for w in range(Wd)],
            axis=1)                                                   # (C2, S); 128-aligned lane concat

        # ---- channel concat [upsampled ; skip]: second piece lands at sublane offset C2 (=8 here,
        #      aligned). Conv1 weights were reordered to this channel order.
        xin = jnp.concatenate([ups, x1_ref[0]], axis=0)               # (Cin, S)

        h1 = conv3x3x1_in_relu(xin, w1_ref, b1_ref, mask_ref)         # (Cmid, S)
        y_ref[0] = conv3x3x1_in_relu(h1, w2_ref, b2_ref, mask_ref)    # lane-dense store

    return kernel


def pallas_unet_up3(x1cs, x2w, updhT, w1taps, b1col, w2taps, b2col, masks,
                    Wd, D, H, Cmid):
    B, C1, S = x1cs.shape
    _, _, C2, DH2 = x2w.shape
    Cin = C1 + C2
    DH = D * H
    kernel = _make_fused_kernel(Wd, D, H, C1, C2, Cmid)
    return pl.pallas_call(
        kernel,
        out_shape=jax.ShapeDtypeStruct((B, Cmid, S), jnp.float32),
        grid=(B,),
        in_specs=[
            pl.BlockSpec((1, C1, S), lambda b: (b, 0, 0)),            # skip feats, channel-major, S in lanes
            pl.BlockSpec((1, Wd, C2, DH2), lambda b: (b, 0, 0, 0)),   # low-res feats as per-W (C2, D2*H2) planes
            pl.BlockSpec((DH2, DH), lambda b: (0, 0)),                # (Ud ⊗ Uh)^T  (no I_W factor)
            pl.BlockSpec((9, Cmid, Cin), lambda b: (0, 0, 0)),        # conv1 taps, [up ; skip] channel order
            pl.BlockSpec((Cmid, 1), lambda b: (0, 0)),
            pl.BlockSpec((9, Cmid, Cmid), lambda b: (0, 0, 0)),       # conv2 taps
            pl.BlockSpec((Cmid, 1), lambda b: (0, 0)),
            pl.BlockSpec((9, S), lambda b: (0, 0)),                   # per-tap halo masks
        ],
        out_specs=pl.BlockSpec((1, Cmid, S), lambda b: (b, 0, 0)),
        compiler_params=pltpu.CompilerParams(dimension_semantics=("parallel",)),
    )(x1cs, x2w, updhT, w1taps, b1col, w2taps, b2col, masks)


# ----------------------------------------------------------------------------
# UnetUp3 forward (inputs / outputs in PyTorch NCDHW layout)
# ----------------------------------------------------------------------------
def unet_up3_forward(inputs1, inputs2, params):
    Ud, Uh = params["Ud"], params["Uh"]
    B, C2, D2, H2, Wd = inputs2.shape
    D, H = Ud.shape[0], Uh.shape[0]
    Cmid = params["w1taps"].shape[1]

    # --- F.pad(inputs1, 2*[offset//2, offset//2, 0]): PyTorch pads from the last dim, i.e.
    #     W: (o2, o2), H: (0, o2), D: (o2, 0).  offset == 0 for standard UNet shapes.
    offset = D - inputs1.shape[2]
    o2 = offset // 2
    x1p = jnp.pad(inputs1, ((0, 0), (0, 0), (o2, 0), (0, o2), (o2, o2)))

    # cheap layout prep (small XLA transposes); all heavy work is inside the fused kernel
    x1cs = jnp.transpose(x1p, (0, 1, 4, 2, 3)).reshape(B, x1p.shape[1], Wd * D * H)
    x1cs = x1cs.astype(jnp.float32)                                   # (B, C1, S), S ordered (w, d, h)
    x2w = jnp.transpose(inputs2, (0, 4, 1, 2, 3)).reshape(B, Wd, C2, D2 * H2)
    x2w = x2w.astype(jnp.float32)                                     # (B, Wd, C2, D2*H2)

    y = pallas_unet_up3(x1cs, x2w, params["updhT"], params["w1taps"], params["b1col"],
                        params["w2taps"], params["b2col"], params["masks"],
                        Wd, D, H, Cmid)                               # (B, Cmid, Wd*D*H)
    y = y.reshape(B, Cmid, Wd, D, H)
    return jnp.transpose(y, (0, 1, 3, 4, 2))                          # back to NCDHW


# ----------------------------------------------------------------------------
# Deterministic parameter construction (kaiming-normal fan_in, like the module)
# ----------------------------------------------------------------------------
def init_params(key, in_size, out_size, D2, H2, Wd):
    Cin = in_size + out_size
    C1, C2 = out_size, in_size            # skip channels, upsampled channels
    k1, k2, k3, k4 = jax.random.split(key, 4)
    fan1 = Cin * 3 * 3 * 1
    fan2 = out_size * 3 * 3 * 1
    w1 = jax.random.normal(k1, (out_size, Cin, 3, 3, 1), jnp.float32) * np.sqrt(2.0 / fan1)
    b1 = jax.random.uniform(k2, (out_size,), jnp.float32,
                            -1.0 / np.sqrt(fan1), 1.0 / np.sqrt(fan1))
    w2 = jax.random.normal(k3, (out_size, out_size, 3, 3, 1), jnp.float32) * np.sqrt(2.0 / fan2)
    b2 = jax.random.uniform(k4, (out_size,), jnp.float32,
                            -1.0 / np.sqrt(fan2), 1.0 / np.sqrt(fan2))

    D, H = 2 * D2, 2 * H2
    Ud = linear_upsample_matrix(D2, D)
    Uh = linear_upsample_matrix(H2, H)
    # Per-W-slice separable upsample operator (Ud ⊗ Uh)^T: (D2*H2, D*H).  No I_W Kronecker factor.
    updhT = np.kron(Ud, Uh).T.astype(np.float32)

    # Kernel channel order is [upsampled(C2) ; skip(C1)] (keeps the in-kernel sublane concat
    # 8-aligned); PyTorch conv1 input order is [skip ; upsampled] -> reorder the input channels.
    w1r = jnp.concatenate([w1[:, C1:], w1[:, :C1]], axis=1)           # (Cmid, Cin, 3, 3, 1)
    w1taps = jnp.transpose(w1r[..., 0], (2, 3, 0, 1)).reshape(9, out_size, Cin)
    w2taps = jnp.transpose(w2[..., 0], (2, 3, 0, 1)).reshape(9, out_size, out_size)

    return dict(
        w1=w1, w2=w2, b1_vec=b1, b2_vec=b2,
        w1taps=w1taps, w2taps=w2taps,
        b1col=b1[:, None], b2col=b2[:, None],
        Ud=jnp.asarray(Ud), Uh=jnp.asarray(Uh),
        updhT=jnp.asarray(updhT),
        masks=jnp.asarray(build_tap_masks(Wd, D, H)),
    )


# ----------------------------------------------------------------------------
# Pure-JAX (XLA) reference for validation
# ----------------------------------------------------------------------------
def reference_forward(inputs1, inputs2, params):
    Ud, Uh = params["Ud"], params["Uh"]
    ups = jnp.einsum("di,bcijw,hj->bcdhw", Ud, inputs2, Uh,
                     precision=lax.Precision.HIGHEST)
    offset = ups.shape[2] - inputs1.shape[2]
    o2 = offset // 2
    x1p = jnp.pad(inputs1, ((0, 0), (0, 0), (o2, 0), (0, o2), (o2, o2)))
    x = jnp.concatenate([x1p, ups], axis=1)

    def block(x, w, b):
        y = lax.conv_general_dilated(
            x, w, (1, 1, 1), ((1, 1), (1, 1), (0, 0)),
            dimension_numbers=("NCDHW", "OIDHW", "NCDHW"),
            precision=lax.Precision.HIGHEST)
        y = y + b[None, :, None, None, None]
        mu = jnp.mean(y, axis=(2, 3, 4), keepdims=True)
        var = jnp.mean((y - mu) ** 2, axis=(2, 3, 4), keepdims=True)
        return jnp.maximum((y - mu) * lax.rsqrt(var + 1e-5), 0.0)

    y = block(x, params["w1"], params["b1_vec"])
    y = block(y, params["w2"], params["b2_vec"])
    return y


if __name__ == "__main__":
    in_size, out_size = 8, 4          # UnetUp3(in_size=8, out_size=4, is_deconv=False)
    B, D2, H2, Wd = 2, 8, 8, 4
    key = jax.random.PRNGKey(0)
    k1, k2, kp = jax.random.split(key, 3)
    inputs2 = jax.random.normal(k1, (B, in_size, D2, H2, Wd), jnp.float32)            # low-res features
    inputs1 = jax.random.normal(k2, (B, out_size, 2 * D2, 2 * H2, Wd), jnp.float32)   # skip features
    params = init_params(kp, in_size, out_size, D2, H2, Wd)

    out = jax.block_until_ready(unet_up3_forward(inputs1, inputs2, params))
    assert out.shape == (B, out_size, 2 * D2, 2 * H2, Wd)

    ref = jax.block_until_ready(reference_forward(inputs1, inputs2, params))
    np.testing.assert_allclose(np.asarray(out), np.asarray(ref), rtol=5e-3, atol=5e-3)
    print("KERNEL_OK")
</pallas_src>

<mosaic_0001>
module attributes {stable_mosaic.version = 11 : i64} {
  func.func @kernel(%arg0: i32, %arg1: memref<1x4x1024xf32, #tpu.memory_space<vmem>>, %arg2: memref<1x4x8x64xf32, #tpu.memory_space<vmem>>, %arg3: memref<64x256xf32, #tpu.memory_space<vmem>>, %arg4: memref<9x4x12xf32, #tpu.memory_space<vmem>>, %arg5: memref<4x1xf32, #tpu.memory_space<vmem>>, %arg6: memref<9x4x4xf32, #tpu.memory_space<vmem>>, %arg7: memref<4x1xf32, #tpu.memory_space<vmem>>, %arg8: memref<9x1024xf32, #tpu.memory_space<vmem>>, %arg9: memref<1x4x1024xf32, #tpu.memory_space<vmem>>) attributes {dimension_semantics = [#tpu.dimension_semantics<parallel>], iteration_bounds = array<i64: 2>, scalar_prefetch = 0 : i64, scratch_operands = 0 : i64, tpu.core_type = #tpu.core_type<tc>, window_params = [{transform_indices = @transform_0, window_bounds = array<i64: 1, 4, 1024>}, {transform_indices = @transform_1, window_bounds = array<i64: 1, 4, 8, 64>}, {pipeline_mode = #tpu.pipeline_mode<synchronous>, transform_indices = @transform_2, window_bounds = array<i64: 64, 256>}, {pipeline_mode = #tpu.pipeline_mode<synchronous>, transform_indices = @transform_3, window_bounds = array<i64: 9, 4, 12>}, {pipeline_mode = #tpu.pipeline_mode<synchronous>, transform_indices = @transform_4, window_bounds = array<i64: 4, 1>}, {pipeline_mode = #tpu.pipeline_mode<synchronous>, transform_indices = @transform_5, window_bounds = array<i64: 9, 4, 4>}, {pipeline_mode = #tpu.pipeline_mode<synchronous>, transform_indices = @transform_6, window_bounds = array<i64: 4, 1>}, {pipeline_mode = #tpu.pipeline_mode<synchronous>, transform_indices = @transform_7, window_bounds = array<i64: 9, 1024>}, {transform_indices = @transform_8, window_bounds = array<i64: 1, 4, 1024>}]} {
    %c0 = arith.constant 0 : index
    %c0_0 = arith.constant 0 : index
    %0 = vector.load %arg3[%c0, %c0_0] : memref<64x256xf32, #tpu.memory_space<vmem>>, vector<64x256xf32>
    %c0_1 = arith.constant 0 : index
    %c0_2 = arith.constant 0 : index
    %c0_3 = arith.constant 0 : index
    %c0_4 = arith.constant 0 : index
    %1 = vector.load %arg2[%c0_1, %c0_2, %c0_3, %c0_4] : memref<1x4x8x64xf32, #tpu.memory_space<vmem>>, vector<1x1x8x64xf32>
    %2 = vector.shape_cast %1 : vector<1x1x8x64xf32> to vector<8x64xf32>
    %cst = arith.constant dense<0.000000e+00> : vector<8x256xf32>
    %3 = tpu.matmul %2, %0, %cst {dimension_numbers = #tpu.dot_dimension_numbers<[1], [0], [0], [1], [0, 0, 1, 1], [], []>} : vector<8x64xf32>, vector<64x256xf32>, vector<8x256xf32> -> vector<8x256xf32>
    %c0_5 = arith.constant 0 : index
    %c1 = arith.constant 1 : index
    %c0_6 = arith.constant 0 : index
    %c0_7 = arith.constant 0 : index
    %4 = vector.load %arg2[%c0_5, %c1, %c0_6, %c0_7] : memref<1x4x8x64xf32, #tpu.memory_space<vmem>>, vector<1x1x8x64xf32>
    %5 = vector.shape_cast %4 : vector<1x1x8x64xf32> to vector<8x64xf32>
    %cst_8 = arith.constant dense<0.000000e+00> : vector<8x256xf32>
    %6 = tpu.matmul %5, %0, %cst_8 {dimension_numbers = #tpu.dot_dimension_numbers<[1], [0], [0], [1], [0, 0, 1, 1], [], []>} : vector<8x64xf32>, vector<64x256xf32>, vector<8x256xf32> -> vector<8x256xf32>
    %c0_9 = arith.constant 0 : index
    %c2 = arith.constant 2 : index
    %c0_10 = arith.constant 0 : index
    %c0_11 = arith.constant 0 : index
    %7 = vector.load %arg2[%c0_9, %c2, %c0_10, %c0_11] : memref<1x4x8x64xf32, #tpu.memory_space<vmem>>, vector<1x1x8x64xf32>
    %8 = vector.shape_cast %7 : vector<1x1x8x64xf32> to vector<8x64xf32>
    %cst_12 = arith.constant dense<0.000000e+00> : vector<8x256xf32>
    %9 = tpu.matmul %8, %0, %cst_12 {dimension_numbers = #tpu.dot_dimension_numbers<[1], [0], [0], [1], [0, 0, 1, 1], [], []>} : vector<8x64xf32>, vector<64x256xf32>, vector<8x256xf32> -> vector<8x256xf32>
    %c0_13 = arith.constant 0 : index
    %c3 = arith.constant 3 : index
    %c0_14 = arith.constant 0 : index
    %c0_15 = arith.constant 0 : index
    %10 = vector.load %arg2[%c0_13, %c3, %c0_14, %c0_15] : memref<1x4x8x64xf32, #tpu.memory_space<vmem>>, vector<1x1x8x64xf32>
    %11 = vector.shape_cast %10 : vector<1x1x8x64xf32> to vector<8x64xf32>
    %cst_16 = arith.constant dense<0.000000e+00> : vector<8x256xf32>
    %12 = tpu.matmul %11, %0, %cst_16 {dimension_numbers = #tpu.dot_dimension_numbers<[1], [0], [0], [1], [0, 0, 1, 1], [], []>} : vector<8x64xf32>, vector<64x256xf32>, vector<8x256xf32> -> vector<8x256xf32>
    %13 = tpu.concatenate %3, %6, %9, %12 in 1 : vector<8x256xf32>, vector<8x256xf32>, vector<8x256xf32>, vector<8x256xf32> -> vector<8x1024xf32>
    %c0_17 = arith.constant 0 : index
    %c0_18 = arith.constant 0 : index
    %c0_19 = arith.constant 0 : index
    %14 = vector.load %arg1[%c0_17, %c0_18, %c0_19] : memref<1x4x1024xf32, #tpu.memory_space<vmem>>, vector<1x4x1024xf32>
    %15 = vector.shape_cast %14 : vector<1x4x1024xf32> to vector<4x1024xf32>
    %16 = tpu.concatenate %13, %15 in 0 : vector<8x1024xf32>, vector<4x1024xf32> -> vector<12x1024xf32>
    %cst_20 = arith.constant 0.000000e+00 : f32
    %17 = vector.broadcast %cst_20 : f32 to vector<4x1024xf32>
    %c17_i32 = arith.constant 17 : i32
    %18 = tpu.dynamic_rotate %16 by %c17_i32 dim 1 : vector<12x1024xf32>, i32 -> vector<12x1024xf32>
    %c0_21 = arith.constant 0 : index
    %c0_22 = arith.constant 0 : index
    %19 = vector.load %arg8[%c0_21, %c0_22] : memref<9x1024xf32, #tpu.memory_space<vmem>>, vector<1x1024xf32>
    %20 = vector.broadcast %19 : vector<1x1024xf32> to vector<12x1024xf32>
    %21 = arith.mulf %18, %20 : vector<12x1024xf32>
    %c0_23 = arith.constant 0 : index
    %c0_24 = arith.constant 0 : index
    %c0_25 = arith.constant 0 : index
    %22 = vector.load %arg4[%c0_23, %c0_24, %c0_25] : memref<9x4x12xf32, #tpu.memory_space<vmem>>, vector<1x4x12xf32>
    %23 = vector.shape_cast %22 : vector<1x4x12xf32> to vector<4x12xf32>
    %cst_26 = arith.constant dense<0.000000e+00> : vector<4x1024xf32>
    %24 = tpu.matmul %23, %21, %cst_26 {dimension_numbers = #tpu.dot_dimension_numbers<[1], [0], [0], [1], [0, 0, 1, 1], [], []>} : vector<4x12xf32>, vector<12x1024xf32>, vector<4x1024xf32> -> vector<4x1024xf32>
    %25 = arith.addf %17, %24 : vector<4x1024xf32>
    %c16_i32 = arith.constant 16 : i32
    %26 = tpu.dynamic_rotate %16 by %c16_i32 dim 1 : vector<12x1024xf32>, i32 -> vector<12x1024xf32>
    %c1_27 = arith.constant 1 : index
    %c0_28 = arith.constant 0 : index
    %27 = vector.load %arg8[%c1_27, %c0_28] : memref<9x1024xf32, #tpu.memory_space<vmem>>, vector<1x1024xf32>
    %28 = vector.broadcast %27 : vector<1x1024xf32> to vector<12x1024xf32>
    %29 = arith.mulf %26, %28 : vector<12x1024xf32>
    %c1_29 = arith.constant 1 : index
    %c0_30 = arith.constant 0 : index
    %c0_31 = arith.constant 0 : index
    %30 = vector.load %arg4[%c1_29, %c0_30, %c0_31] : memref<9x4x12xf32, #tpu.memory_space<vmem>>, vector<1x4x12xf32>
    %31 = vector.shape_cast %30 : vector<1x4x12xf32> to vector<4x12xf32>
    %cst_32 = arith.constant dense<0.000000e+00> : vector<4x1024xf32>
    %32 = tpu.matmul %31, %29, %cst_32 {dimension_numbers = #tpu.dot_dimension_numbers<[1], [0], [0], [1], [0, 0, 1, 1], [], []>} : vector<4x12xf32>, vector<12x1024xf32>, vector<4x1024xf32> -> vector<4x1024xf32>
    %33 = arith.addf %25, %32 : vector<4x1024xf32>
    %c15_i32 = arith.constant 15 : i32
    %34 = tpu.dynamic_rotate %16 by %c15_i32 dim 1 : vector<12x1024xf32>, i32 -> vector<12x1024xf32>
    %c2_33 = arith.constant 2 : index
    %c0_34 = arith.constant 0 : index
    %35 = vector.load %arg8[%c2_33, %c0_34] : memref<9x1024xf32, #tpu.memory_space<vmem>>, vector<1x1024xf32>
    %36 = vector.broadcast %35 : vector<1x1024xf32> to vector<12x1024xf32>
    %37 = arith.mulf %34, %36 : vector<12x1024xf32>
    %c2_35 = arith.constant 2 : index
    %c0_36 = arith.constant 0 : index
    %c0_37 = arith.constant 0 : index
    %38 = vector.load %arg4[%c2_35, %c0_36, %c0_37] : memref<9x4x12xf32, #tpu.memory_space<vmem>>, vector<1x4x12xf32>
    %39 = vector.shape_cast %38 : vector<1x4x12xf32> to vector<4x12xf32>
    %cst_38 = arith.constant dense<0.000000e+00> : vector<4x1024xf32>
    %40 = tpu.matmul %39, %37, %cst_38 {dimension_numbers = #tpu.dot_dimension_numbers<[1], [0], [0], [1], [0, 0, 1, 1], [], []>} : vector<4x12xf32>, vector<12x1024xf32>, vector<4x1024xf32> -> vector<4x1024xf32>
    %41 = arith.addf %33, %40 : vector<4x1024xf32>
    %c1_i32 = arith.constant 1 : i32
    %42 = tpu.dynamic_rotate %16 by %c1_i32 dim 1 : vector<12x1024xf32>, i32 -> vector<12x1024xf32>
    %c3_39 = arith.constant 3 : index
    %c0_40 = arith.constant 0 : index
    %43 = vector.load %arg8[%c3_39, %c0_40] : memref<9x1024xf32, #tpu.memory_space<vmem>>, vector<1x1024xf32>
    %44 = vector.broadcast %43 : vector<1x1024xf32> to vector<12x1024xf32>
    %45 = arith.mulf %42, %44 : vector<12x1024xf32>
    %c3_41 = arith.constant 3 : index
    %c0_42 = arith.constant 0 : index
    %c0_43 = arith.constant 0 : index
    %46 = vector.load %arg4[%c3_41, %c0_42, %c0_43] : memref<9x4x12xf32, #tpu.memory_space<vmem>>, vector<1x4x12xf32>
    %47 = vector.shape_cast %46 : vector<1x4x12xf32> to vector<4x12xf32>
    %cst_44 = arith.constant dense<0.000000e+00> : vector<4x1024xf32>
    %48 = tpu.matmul %47, %45, %cst_44 {dimension_numbers = #tpu.dot_dimension_numbers<[1], [0], [0], [1], [0, 0, 1, 1], [], []>} : vector<4x12xf32>, vector<12x1024xf32>, vector<4x1024xf32> -> vector<4x1024xf32>
    %49 = arith.addf %41, %48 : vector<4x1024xf32>
    %c4 = arith.constant 4 : index
    %c0_45 = arith.constant 0 : index
    %c0_46 = arith.constant 0 : index
    %50 = vector.load %arg4[%c4, %c0_45, %c0_46] : memref<9x4x12xf32, #tpu.memory_space<vmem>>, vector<1x4x12xf32>
    %51 = vector.shape_cast %50 : vector<1x4x12xf32> to vector<4x12xf32>
    %cst_47 = arith.constant dense<0.000000e+00> : vector<4x1024xf32>
    %52 = tpu.matmul %51, %16, %cst_47 {dimension_numbers = #tpu.dot_dimension_numbers<[1], [0], [0], [1], [0, 0, 1, 1], [], []>} : vector<4x12xf32>, vector<12x1024xf32>, vector<4x1024xf32> -> vector<4x1024xf32>
    %53 = arith.addf %49, %52 : vector<4x1024xf32>
    %c1023_i32 = arith.constant 1023 : i32
    %54 = tpu.dynamic_rotate %16 by %c1023_i32 dim 1 : vector<12x1024xf32>, i32 -> vector<12x1024xf32>
    %c5 = arith.constant 5 : index
    %c0_48 = arith.constant 0 : index
    %55 = vector.load %arg8[%c5, %c0_48] : memref<9x1024xf32, #tpu.memory_space<vmem>>, vector<1x1024xf32>
    %56 = vector.broadcast %55 : vector<1x1024xf32> to vector<12x1024xf32>
    %57 = arith.mulf %54, %56 : vector<12x1024xf32>
    %c5_49 = arith.constant 5 : index
    %c0_50 = arith.constant 0 : index
    %c0_51 = arith.constant 0 : index
    %58 = vector.load %arg4[%c5_49, %c0_50, %c0_51] : memref<9x4x12xf32, #tpu.memory_space<vmem>>, vector<1x4x12xf32>
    %59 = vector.shape_cast %58 : vector<1x4x12xf32> to vector<4x12xf32>
    %cst_52 = arith.constant dense<0.000000e+00> : vector<4x1024xf32>
    %60 = tpu.matmul %59, %57, %cst_52 {dimension_numbers = #tpu.dot_dimension_numbers<[1], [0], [0], [1], [0, 0, 1, 1], [], []>} : vector<4x12xf32>, vector<12x1024xf32>, vector<4x1024xf32> -> vector<4x1024xf32>
    %61 = arith.addf %53, %60 : vector<4x1024xf32>
    %c1009_i32 = arith.constant 1009 : i32
    %62 = tpu.dynamic_rotate %16 by %c1009_i32 dim 1 : vector<12x1024xf32>, i32 -> vector<12x1024xf32>
    %c6 = arith.constant 6 : index
    %c0_53 = arith.constant 0 : index
    %63 = vector.load %arg8[%c6, %c0_53] : memref<9x1024xf32, #tpu.memory_space<vmem>>, vector<1x1024xf32>
    %64 = vector.broadcast %63 : vector<1x1024xf32> to vector<12x1024xf32>
    %65 = arith.mulf %62, %64 : vector<12x1024xf32>
    %c6_54 = arith.constant 6 : index
    %c0_55 = arith.constant 0 : index
    %c0_56 = arith.constant 0 : index
    %66 = vector.load %arg4[%c6_54, %c0_55, %c0_56] : memref<9x4x12xf32, #tpu.memory_space<vmem>>, vector<1x4x12xf32>
    %67 = vector.shape_cast %66 : vector<1x4x12xf32> to vector<4x12xf32>
    %cst_57 = arith.constant dense<0.000000e+00> : vector<4x1024xf32>
    %68 = tpu.matmul %67, %65, %cst_57 {dimension_numbers = #tpu.dot_dimension_numbers<[1], [0], [0], [1], [0, 0, 1, 1], [], []>} : vector<4x12xf32>, vector<12x1024xf32>, vector<4x1024xf32> -> vector<4x1024xf32>
    %69 = arith.addf %61, %68 : vector<4x1024xf32>
    %c1008_i32 = arith.constant 1008 : i32
    %70 = tpu.dynamic_rotate %16 by %c1008_i32 dim 1 : vector<12x1024xf32>, i32 -> vector<12x1024xf32>
    %c7 = arith.constant 7 : index
    %c0_58 = arith.constant 0 : index
    %71 = vector.load %arg8[%c7, %c0_58] : memref<9x1024xf32, #tpu.memory_space<vmem>>, vector<1x1024xf32>
    %72 = vector.broadcast %71 : vector<1x1024xf32> to vector<12x1024xf32>
    %73 = arith.mulf %70, %72 : vector<12x1024xf32>
    %c7_59 = arith.constant 7 : index
    %c0_60 = arith.constant 0 : index
    %c0_61 = arith.constant 0 : index
    %74 = vector.load %arg4[%c7_59, %c0_60, %c0_61] : memref<9x4x12xf32, #tpu.memory_space<vmem>>, vector<1x4x12xf32>
    %75 = vector.shape_cast %74 : vector<1x4x12xf32> to vector<4x12xf32>
    %cst_62 = arith.constant dense<0.000000e+00> : vector<4x1024xf32>
    %76 = tpu.matmul %75, %73, %cst_62 {dimension_numbers = #tpu.dot_dimension_numbers<[1], [0], [0], [1], [0, 0, 1, 1], [], []>} : vector<4x12xf32>, vector<12x1024xf32>, vector<4x1024xf32> -> vector<4x1024xf32>
    %77 = arith.addf %69, %76 : vector<4x1024xf32>
    %c1007_i32 = arith.constant 1007 : i32
    %78 = tpu.dynamic_rotate %16 by %c1007_i32 dim 1 : vector<12x1024xf32>, i32 -> vector<12x1024xf32>
    %c8 = arith.constant 8 : index
    %c0_63 = arith.constant 0 : index
    %79 = vector.load %arg8[%c8, %c0_63] : memref<9x1024xf32, #tpu.memory_space<vmem>>, vector<1x1024xf32>
    %80 = vector.broadcast %79 : vector<1x1024xf32> to vector<12x1024xf32>
    %81 = arith.mulf %78, %80 : vector<12x1024xf32>
    %c8_64 = arith.constant 8 : index
    %c0_65 = arith.constant 0 : index
    %c0_66 = arith.constant 0 : index
    %82 = vector.load %arg4[%c8_64, %c0_65, %c0_66] : memref<9x4x12xf32, #tpu.memory_space<vmem>>, vector<1x4x12xf32>
    %83 = vector.shape_cast %82 : vector<1x4x12xf32> to vector<4x12xf32>
    %cst_67 = arith.constant dense<0.000000e+00> : vector<4x1024xf32>
    %84 = tpu.matmul %83, %81, %cst_67 {dimension_numbers = #tpu.dot_dimension_numbers<[1], [0], [0], [1], [0, 0, 1, 1], [], []>} : vector<4x12xf32>, vector<12x1024xf32>, vector<4x1024xf32> -> vector<4x1024xf32>
    %85 = arith.addf %77, %84 : vector<4x1024xf32>
    %c0_68 = arith.constant 0 : index
    %c0_69 = arith.constant 0 : index
    %86 = vector.load %arg5[%c0_68, %c0_69] : memref<4x1xf32, #tpu.memory_space<vmem>>, vector<4x1xf32>
    %87 = vector.broadcast %86 : vector<4x1xf32> to vector<4x1024xf32>
    %88 = arith.addf %85, %87 : vector<4x1024xf32>
    %cst_70 = arith.constant dense<0.000000e+00> : vector<4xf32>
    %89 = vector.multi_reduction <add>, %88, %cst_70 [1] : vector<4x1024xf32> to vector<4xf32>
    %90 = vector.shape_cast %89 : vector<4xf32> to vector<4x1xf32>
    %cst_71 = arith.constant 1.024000e+03 : f32
    %91 = vector.broadcast %cst_71 : f32 to vector<4x1xf32>
    %92 = arith.divf %90, %91 : vector<4x1xf32>
    %93 = vector.broadcast %92 : vector<4x1xf32> to vector<4x1024xf32>
    %94 = arith.subf %88, %93 : vector<4x1024xf32>
    %95 = arith.mulf %94, %94 : vector<4x1024xf32>
    %cst_72 = arith.constant dense<0.000000e+00> : vector<4xf32>
    %96 = vector.multi_reduction <add>, %95, %cst_72 [1] : vector<4x1024xf32> to vector<4xf32>
    %97 = vector.shape_cast %96 : vector<4xf32> to vector<4x1xf32>
    %cst_73 = arith.constant 1.024000e+03 : f32
    %98 = vector.broadcast %cst_73 : f32 to vector<4x1xf32>
    %99 = arith.divf %97, %98 : vector<4x1xf32>
    %100 = vector.broadcast %92 : vector<4x1xf32> to vector<4x1024xf32>
    %101 = arith.subf %88, %100 : vector<4x1024xf32>
    %cst_74 = arith.constant 9.99999974E-6 : f32
    %102 = vector.broadcast %cst_74 : f32 to vector<4x1xf32>
    %103 = arith.addf %99, %102 : vector<4x1xf32>
    %104 = math.rsqrt %103 : vector<4x1xf32>
    %105 = vector.broadcast %104 : vector<4x1xf32> to vector<4x1024xf32>
    %106 = arith.mulf %101, %105 : vector<4x1024xf32>
    %cst_75 = arith.constant 0.000000e+00 : f32
    %107 = vector.broadcast %cst_75 : f32 to vector<4x1024xf32>
    %108 = arith.maximumf %106, %107 : vector<4x1024xf32>
    %cst_76 = arith.constant 0.000000e+00 : f32
    %109 = vector.broadcast %cst_76 : f32 to vector<4x1024xf32>
    %c17_i32_77 = arith.constant 17 : i32
    %110 = tpu.dynamic_rotate %108 by %c17_i32_77 dim 1 : vector<4x1024xf32>, i32 -> vector<4x1024xf32>
    %c0_78 = arith.constant 0 : index
    %c0_79 = arith.constant 0 : index
    %111 = vector.load %arg8[%c0_78, %c0_79] : memref<9x1024xf32, #tpu.memory_space<vmem>>, vector<1x1024xf32>
    %112 = vector.broadcast %111 : vector<1x1024xf32> to vector<4x1024xf32>
    %113 = arith.mulf %110, %112 : vector<4x1024xf32>
    %c0_80 = arith.constant 0 : index
    %c0_81 = arith.constant 0 : index
    %c0_82 = arith.constant 0 : index
    %114 = vector.load %arg6[%c0_80, %c0_81, %c0_82] : memref<9x4x4xf32, #tpu.memory_space<vmem>>, vector<1x4x4xf32>
    %115 = vector.shape_cast %114 : vector<1x4x4xf32> to vector<4x4xf32>
    %cst_83 = arith.constant dense<0.000000e+00> : vector<4x1024xf32>
    %116 = tpu.matmul %115, %113, %cst_83 {dimension_numbers = #tpu.dot_dimension_numbers<[1], [0], [0], [1], [0, 0, 1, 1], [], []>} : vector<4x4xf32>, vector<4x1024xf32>, vector<4x1024xf32> -> vector<4x1024xf32>
    %117 = arith.addf %109, %116 : vector<4x1024xf32>
    %c16_i32_84 = arith.constant 16 : i32
    %118 = tpu.dynamic_rotate %108 by %c16_i32_84 dim 1 : vector<4x1024xf32>, i32 -> vector<4x1024xf32>
    %c1_85 = arith.constant 1 : index
    %c0_86 = arith.constant 0 : index
    %119 = vector.load %arg8[%c1_85, %c0_86] : memref<9x1024xf32, #tpu.memory_space<vmem>>, vector<1x1024xf32>
    %120 = vector.broadcast %119 : vector<1x1024xf32> to vector<4x1024xf32>
    %121 = arith.mulf %118, %120 : vector<4x1024xf32>
    %c1_87 = arith.constant 1 : index
    %c0_88 = arith.constant 0 : index
    %c0_89 = arith.constant 0 : index
    %122 = vector.load %arg6[%c1_87, %c0_88, %c0_89] : memref<9x4x4xf32, #tpu.memory_space<vmem>>, vector<1x4x4xf32>
    %123 = vector.shape_cast %122 : vector<1x4x4xf32> to vector<4x4xf32>
    %cst_90 = arith.constant dense<0.000000e+00> : vector<4x1024xf32>
    %124 = tpu.matmul %123, %121, %cst_90 {dimension_numbers = #tpu.dot_dimension_numbers<[1], [0], [0], [1], [0, 0, 1, 1], [], []>} : vector<4x4xf32>, vector<4x1024xf32>, vector<4x1024xf32> -> vector<4x1024xf32>
    %125 = arith.addf %117, %124 : vector<4x1024xf32>
    %c15_i32_91 = arith.constant 15 : i32
    %126 = tpu.dynamic_rotate %108 by %c15_i32_91 dim 1 : vector<4x1024xf32>, i32 -> vector<4x1024xf32>
    %c2_92 = arith.constant 2 : index
    %c0_93 = arith.constant 0 : index
    %127 = vector.load %arg8[%c2_92, %c0_93] : memref<9x1024xf32, #tpu.memory_space<vmem>>, vector<1x1024xf32>
    %128 = vector.broadcast %127 : vector<1x1024xf32> to vector<4x1024xf32>
    %129 = arith.mulf %126, %128 : vector<4x1024xf32>
    %c2_94 = arith.constant 2 : index
    %c0_95 = arith.constant 0 : index
    %c0_96 = arith.constant 0 : index
    %130 = vector.load %arg6[%c2_94, %c0_95, %c0_96] : memref<9x4x4xf32, #tpu.memory_space<vmem>>, vector<1x4x4xf32>
    %131 = vector.shape_cast %130 : vector<1x4x4xf32> to vector<4x4xf32>
    %cst_97 = arith.constant dense<0.000000e+00> : vector<4x1024xf32>
    %132 = tpu.matmul %131, %129, %cst_97 {dimension_numbers = #tpu.dot_dimension_numbers<[1], [0], [0], [1], [0, 0, 1, 1], [], []>} : vector<4x4xf32>, vector<4x1024xf32>, vector<4x1024xf32> -> vector<4x1024xf32>
    %133 = arith.addf %125, %132 : vector<4x1024xf32>
    %c1_i32_98 = arith.constant 1 : i32
    %134 = tpu.dynamic_rotate %108 by %c1_i32_98 dim 1 : vector<4x1024xf32>, i32 -> vector<4x1024xf32>
    %c3_99 = arith.constant 3 : index
    %c0_100 = arith.constant 0 : index
    %135 = vector.load %arg8[%c3_99, %c0_100] : memref<9x1024xf32, #tpu.memory_space<vmem>>, vector<1x1024xf32>
    %136 = vector.broadcast %135 : vector<1x1024xf32> to vector<4x1024xf32>
    %137 = arith.mulf %134, %136 : vector<4x1024xf32>
    %c3_101 = arith.constant 3 : index
    %c0_102 = arith.constant 0 : index
    %c0_103 = arith.constant 0 : index
    %138 = vector.load %arg6[%c3_101, %c0_102, %c0_103] : memref<9x4x4xf32, #tpu.memory_space<vmem>>, vector<1x4x4xf32>
    %139 = vector.shape_cast %138 : vector<1x4x4xf32> to vector<4x4xf32>
    %cst_104 = arith.constant dense<0.000000e+00> : vector<4x1024xf32>
    %140 = tpu.matmul %139, %137, %cst_104 {dimension_numbers = #tpu.dot_dimension_numbers<[1], [0], [0], [1], [0, 0, 1, 1], [], []>} : vector<4x4xf32>, vector<4x1024xf32>, vector<4x1024xf32> -> vector<4x1024xf32>
    %141 = arith.addf %133, %140 : vector<4x1024xf32>
    %c4_105 = arith.constant 4 : index
    %c0_106 = arith.constant 0 : index
    %c0_107 = arith.constant 0 : index
    %142 = vector.load %arg6[%c4_105, %c0_106, %c0_107] : memref<9x4x4xf32, #tpu.memory_space<vmem>>, vector<1x4x4xf32>
    %143 = vector.shape_cast %142 : vector<1x4x4xf32> to vector<4x4xf32>
    %cst_108 = arith.constant dense<0.000000e+00> : vector<4x1024xf32>
    %144 = tpu.matmul %143, %108, %cst_108 {dimension_numbers = #tpu.dot_dimension_numbers<[1], [0], [0], [1], [0, 0, 1, 1], [], []>} : vector<4x4xf32>, vector<4x1024xf32>, vector<4x1024xf32> -> vector<4x1024xf32>
    %145 = arith.addf %141, %144 : vector<4x1024xf32>
    %c1023_i32_109 = arith.constant 1023 : i32
    %146 = tpu.dynamic_rotate %108 by %c1023_i32_109 dim 1 : vector<4x1024xf32>, i32 -> vector<4x1024xf32>
    %c5_110 = arith.constant 5 : index
    %c0_111 = arith.constant 0 : index
    %147 = vector.load %arg8[%c5_110, %c0_111] : memref<9x1024xf32, #tpu.memory_space<vmem>>, vector<1x1024xf32>
    %148 = vector.broadcast %147 : vector<1x1024xf32> to vector<4x1024xf32>
    %149 = arith.mulf %146, %148 : vector<4x1024xf32>
    %c5_112 = arith.constant 5 : index
    %c0_113 = arith.constant 0 : index
    %c0_114 = arith.constant 0 : index
    %150 = vector.load %arg6[%c5_112, %c0_113, %c0_114] : memref<9x4x4xf32, #tpu.memory_space<vmem>>, vector<1x4x4xf32>
    %151 = vector.shape_cast %150 : vector<1x4x4xf32> to vector<4x4xf32>
    %cst_115 = arith.constant dense<0.000000e+00> : vector<4x1024xf32>
    %152 = tpu.matmul %151, %149, %cst_115 {dimension_numbers = #tpu.dot_dimension_numbers<[1], [0], [0], [1], [0, 0, 1, 1], [], []>} : vector<4x4xf32>, vector<4x1024xf32>, vector<4x1024xf32> -> vector<4x1024xf32>
    %153 = arith.addf %145, %152 : vector<4x1024xf32>
    %c1009_i32_116 = arith.constant 1009 : i32
    %154 = tpu.dynamic_rotate %108 by %c1009_i32_116 dim 1 : vector<4x1024xf32>, i32 -> vector<4x1024xf32>
    %c6_117 = arith.constant 6 : index
    %c0_118 = arith.constant 0 : index
    %155 = vector.load %arg8[%c6_117, %c0_118] : memref<9x1024xf32, #tpu.memory_space<vmem>>, vector<1x1024xf32>
    %156 = vector.broadcast %155 : vector<1x1024xf32> to vector<4x1024xf32>
    %157 = arith.mulf %154, %156 : vector<4x1024xf32>
    %c6_119 = arith.constant 6 : index
    %c0_120 = arith.constant 0 : index
    %c0_121 = arith.constant 0 : index
    %158 = vector.load %arg6[%c6_119, %c0_120, %c0_121] : memref<9x4x4xf32, #tpu.memory_space<vmem>>, vector<1x4x4xf32>
    %159 = vector.shape_cast %158 : vector<1x4x4xf32> to vector<4x4xf32>
    %cst_122 = arith.constant dense<0.000000e+00> : vector<4x1024xf32>
    %160 = tpu.matmul %159, %157, %cst_122 {dimension_numbers = #tpu.dot_dimension_numbers<[1], [0], [0], [1], [0, 0, 1, 1], [], []>} : vector<4x4xf32>, vector<4x1024xf32>, vector<4x1024xf32> -> vector<4x1024xf32>
    %161 = arith.addf %153, %160 : vector<4x1024xf32>
    %c1008_i32_123 = arith.constant 1008 : i32
    %162 = tpu.dynamic_rotate %108 by %c1008_i32_123 dim 1 : vector<4x1024xf32>, i32 -> vector<4x1024xf32>
    %c7_124 = arith.constant 7 : index
    %c0_125 = arith.constant 0 : index
    %163 = vector.load %arg8[%c7_124, %c0_125] : memref<9x1024xf32, #tpu.memory_space<vmem>>, vector<1x1024xf32>
    %164 = vector.broadcast %163 : vector<1x1024xf32> to vector<4x1024xf32>
    %165 = arith.mulf %162, %164 : vector<4x1024xf32>
    %c7_126 = arith.constant 7 : index
    %c0_127 = arith.constant 0 : index
    %c0_128 = arith.constant 0 : index
    %166 = vector.load %arg6[%c7_126, %c0_127, %c0_128] : memref<9x4x4xf32, #tpu.memory_space<vmem>>, vector<1x4x4xf32>
    %167 = vector.shape_cast %166 : vector<1x4x4xf32> to vector<4x4xf32>
    %cst_129 = arith.constant dense<0.000000e+00> : vector<4x1024xf32>
    %168 = tpu.matmul %167, %165, %cst_129 {dimension_numbers = #tpu.dot_dimension_numbers<[1], [0], [0], [1], [0, 0, 1, 1], [], []>} : vector<4x4xf32>, vector<4x1024xf32>, vector<4x1024xf32> -> vector<4x1024xf32>
    %169 = arith.addf %161, %168 : vector<4x1024xf32>
    %c1007_i32_130 = arith.constant 1007 : i32
    %170 = tpu.dynamic_rotate %108 by %c1007_i32_130 dim 1 : vector<4x1024xf32>, i32 -> vector<4x1024xf32>
    %c8_131 = arith.constant 8 : index
    %c0_132 = arith.constant 0 : index
    %171 = vector.load %arg8[%c8_131, %c0_132] : memref<9x1024xf32, #tpu.memory_space<vmem>>, vector<1x1024xf32>
    %172 = vector.broadcast %171 : vector<1x1024xf32> to vector<4x1024xf32>
    %173 = arith.mulf %170, %172 : vector<4x1024xf32>
    %c8_133 = arith.constant 8 : index
    %c0_134 = arith.constant 0 : index
    %c0_135 = arith.constant 0 : index
    %174 = vector.load %arg6[%c8_133, %c0_134, %c0_135] : memref<9x4x4xf32, #tpu.memory_space<vmem>>, vector<1x4x4xf32>
    %175 = vector.shape_cast %174 : vector<1x4x4xf32> to vector<4x4xf32>
    %cst_136 = arith.constant dense<0.000000e+00> : vector<4x1024xf32>
    %176 = tpu.matmul %175, %173, %cst_136 {dimension_numbers = #tpu.dot_dimension_numbers<[1], [0], [0], [1], [0, 0, 1, 1], [], []>} : vector<4x4xf32>, vector<4x1024xf32>, vector<4x1024xf32> -> vector<4x1024xf32>
    %177 = arith.addf %169, %176 : vector<4x1024xf32>
    %c0_137 = arith.constant 0 : index
    %c0_138 = arith.constant 0 : index
    %178 = vector.load %arg7[%c0_137, %c0_138] : memref<4x1xf32, #tpu.memory_space<vmem>>, vector<4x1xf32>
    %179 = vector.broadcast %178 : vector<4x1xf32> to vector<4x1024xf32>
    %180 = arith.addf %177, %179 : vector<4x1024xf32>
    %cst_139 = arith.constant dense<0.000000e+00> : vector<4xf32>
    %181 = vector.multi_reduction <add>, %180, %cst_139 [1] : vector<4x1024xf32> to vector<4xf32>
    %182 = vector.shape_cast %181 : vector<4xf32> to vector<4x1xf32>
    %cst_140 = arith.constant 1.024000e+03 : f32
    %183 = vector.broadcast %cst_140 : f32 to vector<4x1xf32>
    %184 = arith.divf %182, %183 : vector<4x1xf32>
    %185 = vector.broadcast %184 : vector<4x1xf32> to vector<4x1024xf32>
    %186 = arith.subf %180, %185 : vector<4x1024xf32>
    %187 = arith.mulf %186, %186 : vector<4x1024xf32>
    %cst_141 = arith.constant dense<0.000000e+00> : vector<4xf32>
    %188 = vector.multi_reduction <add>, %187, %cst_141 [1] : vector<4x1024xf32> to vector<4xf32>
    %189 = vector.shape_cast %188 : vector<4xf32> to vector<4x1xf32>
    %cst_142 = arith.constant 1.024000e+03 : f32
    %190 = vector.broadcast %cst_142 : f32 to vector<4x1xf32>
    %191 = arith.divf %189, %190 : vector<4x1xf32>
    %192 = vector.broadcast %184 : vector<4x1xf32> to vector<4x1024xf32>
    %193 = arith.subf %180, %192 : vector<4x1024xf32>
    %cst_143 = arith.constant 9.99999974E-6 : f32
    %194 = vector.broadcast %cst_143 : f32 to vector<4x1xf32>
    %195 = arith.addf %191, %194 : vector<4x1xf32>
    %196 = math.rsqrt %195 : vector<4x1xf32>
    %197 = vector.broadcast %196 : vector<4x1xf32> to vector<4x1024xf32>
    %198 = arith.mulf %193, %197 : vector<4x1024xf32>
    %cst_144 = arith.constant 0.000000e+00 : f32
    %199 = vector.broadcast %cst_144 : f32 to vector<4x1024xf32>
    %200 = arith.maximumf %198, %199 : vector<4x1024xf32>
    %c0_145 = arith.constant 0 : index
    %c0_146 = arith.constant 0 : index
    %c0_147 = arith.constant 0 : index
    %201 = vector.load %arg9[%c0_145, %c0_146, %c0_147] : memref<1x4x1024xf32, #tpu.memory_space<vmem>>, vector<1x4x1024xf32>
    %202 = vector.shape_cast %201 : vector<1x4x1024xf32> to vector<4x1024xf32>
    %203 = vector.shape_cast %200 : vector<4x1024xf32> to vector<1x4x1024xf32>
    tpu.vector_store %arg9[%c0_145, %c0_146, %c0_147], %203 {strides = array<i32>} : memref<1x4x1024xf32, #tpu.memory_space<vmem>>, vector<1x4x1024xf32>,
    return
  }
  func.func @transform_0(%arg0: i32) -> (i32, i32, i32) {
    %c0_i32 = arith.constant 0 : i32
    %c0_i32_0 = arith.constant 0 : i32
    %c0_i32_1 = arith.constant 0 : i32
    return %arg0, %c0_i32, %c0_i32_0 : i32, i32, i32
  }
  func.func @transform_1(%arg0: i32) -> (i32, i32, i32, i32) {
    %c0_i32 = arith.constant 0 : i32
    %c0_i32_0 = arith.constant 0 : i32
    %c0_i32_1 = arith.constant 0 : i32
    %c0_i32_2 = arith.constant 0 : i32
    return %arg0, %c0_i32, %c0_i32_0, %c0_i32_1 : i32, i32, i32, i32
  }
  func.func @transform_2(%arg0: i32) -> (i32, i32) {
    %c0_i32 = arith.constant 0 : i32
    %c0_i32_0 = arith.constant 0 : i32
    %c0_i32_1 = arith.constant 0 : i32
    return %c0_i32, %c0_i32_0 : i32, i32
  }
  func.func @transform_3(%arg0: i32) -> (i32, i32, i32) {
    %c0_i32 = arith.constant 0 : i32
    %c0_i32_0 = arith.constant 0 : i32
    %c0_i32_1 = arith.constant 0 : i32
    %c0_i32_2 = arith.constant 0 : i32
    return %c0_i32, %c0_i32_0, %c0_i32_1 : i32, i32, i32
  }
  func.func @transform_4(%arg0: i32) -> (i32, i32) {
    %c0_i32 = arith.constant 0 : i32
    %c0_i32_0 = arith.constant 0 : i32
    %c0_i32_1 = arith.constant 0 : i32
    return %c0_i32, %c0_i32_0 : i32, i32
  }
  func.func @transform_5(%arg0: i32) -> (i32, i32, i32) {
    %c0_i32 = arith.constant 0 : i32
    %c0_i32_0 = arith.constant 0 : i32
    %c0_i32_1 = arith.constant 0 : i32
    %c0_i32_2 = arith.constant 0 : i32
    return %c0_i32, %c0_i32_0, %c0_i32_1 : i32, i32, i32
  }
  func.func @transform_6(%arg0: i32) -> (i32, i32) {
    %c0_i32 = arith.constant 0 : i32
    %c0_i32_0 = arith.constant 0 : i32
    %c0_i32_1 = arith.constant 0 : i32
    return %c0_i32, %c0_i32_0 : i32, i32
  }
  func.func @transform_7(%arg0: i32) -> (i32, i32) {
    %c0_i32 = arith.constant 0 : i32
    %c0_i32_0 = arith.constant 0 : i32
    %c0_i32_1 = arith.constant 0 : i32
    return %c0_i32, %c0_i32_0 : i32, i32
  }
  func.func @transform_8(%arg0: i32) -> (i32, i32, i32) {
    %c0_i32 = arith.constant 0 : i32
    %c0_i32_0 = arith.constant 0 : i32
    %c0_i32_1 = arith.constant 0 : i32
    return %arg0, %c0_i32, %c0_i32_0 : i32, i32, i32
  }
}

</mosaic_0001>

<bundles_post_ra>
// kernel: tpu_custom_call.1
= control target key start
LH: loop header
LB: loop body
LE: loop exit
PB: predicated region body
PF: predicated region fallthrough
CT: control target
= control target key end

     0   :  { %s8624_s0 = inlined_call_operand.hbm [shape: f32[2,4,1024], index: 0, kind: input, shape index: {}]   ;;  %s8625_s1 = inlined_call_operand.hbm [shape: f32[2,4,8,64], index: 1, kind: input, shape index: {}]   ;;  %s8626_s2 = inlined_call_operand.hbm [shape: f32[64,256], index: 2, kind: input, shape index: {}]   ;;  %s8627_s3 = inlined_call_operand.vmem [shape: f32[9,4,12], index: 3, kind: input, shape index: {}]   ;;  %s8628_s4 = inlined_call_operand.vmem [shape: f32[4,1], index: 4, kind: input, shape index: {}]   ;;  %s8629_s5 = inlined_call_operand.vmem [shape: f32[9,4,4], index: 5, kind: input, shape index: {}]   ;;  %s8630_s6 = inlined_call_operand.vmem [shape: f32[4,1], index: 6, kind: input, shape index: {}]   ;;  %s8631_s7 = inlined_call_operand.hbm [shape: f32[9,1024], index: 7, kind: input, shape index: {}]   ;;  %s8632_s8 = inlined_call_operand.hbm [shape: f32[2,4,1024], index: 8, kind: output, shape index: {}]  }
   0x1   :  { %8729 = sst [smem:[#allocation91_spill]] %s8626_s2 }
   0x2   :  { %8730 = sst [smem:[#allocation92_spill]] %s8631_s7 }
   0x3   :  { %13 = vsyncpa [#allocation3], 0 }
   0x4   :  { %15 = vsyncpa [#allocation3 + $0x1], 0 }
   0x5   :  { %16 = vsyncpa [#allocation6], 0 }
   0x6   :  { %18 = vsyncpa [#allocation6 + $0x1], 0 }
   0x7   :  { %19 = vsyncpa [#allocation9], 0 }
   0x8   :  { %20 = vsyncpa [#allocation4], 0 }
   0x9   :  { %22 = vsyncpa [#allocation4 + $0x1], 0  ;;  %s6130_s27 = smov 0   ;;  %s6132_s28 = smov 0  }
   0xa   :  { %s6134_s29 = smov 0   ;;  %s6136_s30 = smov 0  }
   0xb LB: > { %8731 = sst [smem:[#allocation16_spill]] %s6061_s29  ;;  %s6154_s12 = sadd.s32 4294967295, %s6065_s30   ;;  %s6065_s30 = sphi %s6136_s30, %s8929_s30   ;;  %s6061_s29 = sphi %s6134_s29, %s8931_s29   ;;  %s6057_s28 = sphi %s6132_s28, %s8933_s28   ;;  %s6053_s27 = sphi %s6130_s27, %s8932_s27  }
   0xc   : > { %s8732_s2 = sld [smem:[#allocation91_spill]]  ;;  %p5425_p0 = scmp.ge.s32.totalorder %s6065_s30, 1 }
   0xd   : > { %p49_p1 = scmp.eq.s32.totalorder %s6154_s12, 0  ;;  %p237_p2 = scmp.lt.s32.totalorder %s6065_s30, 3 }
   0xe   : > { %s6067_s14 = smov [#allocation7]   ;;  %s8734_s7 = sld [smem:[#allocation92_spill]] }
   0xf   : > { %p6159_p3 = pnand %p5425_p0, %p237_p2  ;;  %s250_s15 = sshll.u32 %s6067_s14, 4  ;;  %s251_s15 = int_to_ptr.vmem [resolvable:$true] %s250_s15 }
  0x10   : > { %s6068_s19 = smov [#allocation8]   ;;  %s6069_s21 = smov 256  }
  0x11   : > { %p5778_p4 = pneg %p6159_p3  ;;  %s276_s20 = sshll.u32 %s6068_s19, 4  ;;  %s277_s20 = int_to_ptr.vmem [resolvable:$true] %s276_s20 }
  0x12   : > { %s248_s11 = sshll.u32 %s8732_s2, 4  ;;  %s6070_s22 = smov 16   ;;  %s249_s11 = int_to_ptr.hbm [resolvable:$true] %s248_s11 }
  0x13   : > { %p5779_p6 = pnand %p5778_p4, %p49_p1  ;;  %s6071_s23 = smov 1024  }
  0x14   : > { %s274_s18 = sshll.u32 %s8734_s7, 4  ;;  %s6072_s24 = smov 64   ;;  %s275_s18 = int_to_ptr.hbm [resolvable:$true] %s274_s18 }
  0x15   : > { %5781 = dma.hbm_to_vmem [thread:$0]  (!%p5779_p6), %s249_s11, 2048, %s251_s15, [#allocation6], %s6069_s21, %s6069_s21, %s6070_s22  }
  0x16   : > { %5784 = dma.hbm_to_vmem [thread:$0]  (!%p5779_p6), %s275_s18, 2048, %s277_s20, [#allocation9], %s6071_s23, %s6071_s23, %s6072_s24  }
  0x17   : > { %s5424_s25 = sadd.s32 4294967294, %s6065_s30   ;;  %s6173_s26 = sadd.s32 1, %s6065_s30  }
  0x18   : > { %8735 = sst [smem:[#allocation17_spill]] %s6173_s26  ;;  %s32_s9 = ssub.s32 %s6065_s30, %s6173_s26 }
  0x19   : > { %s35_s10 = sadd.s32 1, %s6061_s29  ;;  %p33_p7 = scmp.eq.s32.totalorder %s32_s9, 0 }
  0x1a   : > { %p42_p8 = scmp.ne.s32.totalorder %s6061_s29, %s6057_s28  ;;  %p43_p9 = scmp.eq.s32.totalorder %s6065_s30, 0 }
  0x1b   : > { %p48_p10 = scmp.ne.s32.totalorder %s6057_s28, %s6053_s27  ;;  %p224_p13 = scmp.eq.s32.totalorder %s6154_s12, 1 }
  0x1c   : > { %s6184_s14 = scalar_select %p33_p7, %s6061_s29, %s35_s10  }
  0x1d   : > { %p6186_p11 = por %p43_p9, %p42_p8  ;;  %p6192_p12 = por %p49_p1, %p48_p10 }
  0x1e   : > { %8736 = sst [smem:[#allocation18_spill]] %s6184_s14  ;;  %p230_p0 = scmp.eq.s32.totalorder %s5424_s25, 1 }
  0x1f   : > { %p5798_p2 = scmp.lt.s32.totalorder %s6065_s30, 2  ;;  %s290_s16 = sand.u32 1, %s6061_s29  }
  0x20   : > { %p6199_p4 = por %p224_p13, %p42_p8  ;;  %p6203_p6 = por %p230_p0, %p48_p10 }
  0x21   : > { %s5429_s19 = sshll.u32 %s290_s16, 5  ;;  %s5761_s20 = sshll.u32 %s6065_s30, 5 }
  0x22   : > { %s8740_s18 = scalar_select %p6203_p6, 1, 0 }
  0x23   : > { %s299_s23 = scalar_lea.hbm %s8624_s0, %s5761_s20  ;;  %s294_s24 = scalar_lea.vmem [#allocation2], %s5429_s19 }
  0x24   : > { %8741 = sst [smem:[#allocation19_spill]] %s8740_s18  ;;  %s303_s9 = sshll.u32 %s294_s24, 4  ;;  %s304_s9 = int_to_ptr.vmem [resolvable:$true] %s303_s9 }
  0x25   : > { %s301_s10 = sshll.u32 %s299_s23, 4  ;;  %p6213_p7 = pnand %p5798_p2, %p6186_p11  ;;  %s302_s10 = int_to_ptr.hbm [resolvable:$true] %s301_s10 }
  0x26   : > { %s319_s14 = scalar_lea.hbm %s8625_s1, %s5761_s20  ;;  %s291_s26 = scalar_lea.sflag [#allocation3], %s290_s16 }
  0x27   : > { %s320_s29 = sshll.u32 %s319_s14, 4  ;;  %s5927_s21 = sshra.s32 %s302_s10, 4  ;;  %s5928_s21 = int_to_ptr.hbm [resolvable:$true] %s5927_s21  ;;  %s321_s29 = int_to_ptr.hbm [resolvable:$true] %s320_s29 }
  0x28   : > { %s5929_s22 = scalar_lea.hbm %s5928_s21, 32  ;;  %p5931_p9 = pneg %p6213_p7 }
  0x29   : > { %p5930_p8 = scmp.ne.s32.totalorder %s5928_s21, %s5929_s22  ;;  %s5934_s24 = scalar_lea.hbm %s8624_s0, 64 }
  0x2a   : > { %p5935_p13 = scmp.lt.s32.totalorder %s5928_s21, %s8624_s0  ;;  %p5936_p0 = scmp.lt.s32.totalorder %s5934_s24, %s5929_s22 }
  0x2b   : > { %p5932_p10 = pnand %p5931_p9, %p5930_p8 }
  0x2c   : > { %p5937_p2 = por %p5936_p0, %p5935_p13 }
  0x2d   : > { %p5933_p11 = pneg %p5932_p10 }
  0x2f   : > { %p5938_p5 = pnand %p5937_p2, %p5933_p11 }
  0x31   : > { %5941 = shalt.err (!%p5938_p5)
}
  0x32   : > { %5788 = dma.hbm_to_vmem [thread:$0]  (!%p6213_p7), %s302_s10, 512, %s304_s9, %s291_s26  }
  0x33   : > { %s314_s14 = scalar_lea.vmem [#allocation5], %s5429_s19  ;;  %s310_s20 = sand.u32 1, %s6065_s30  }
  0x34   : > { %s322_s16 = sshll.u32 %s314_s14, 4  ;;  %s311_s11 = scalar_lea.sflag [#allocation6], %s310_s20  ;;  %s323_s16 = int_to_ptr.vmem [resolvable:$true] %s322_s16 }
  0x35   : > { %s5957_s23 = sshra.s32 %s321_s29, 4  ;;  %s5964_s24 = scalar_lea.hbm %s8625_s1, 64  ;;  %s5958_s23 = int_to_ptr.hbm [resolvable:$true] %s5957_s23 }
  0x36   : > { %s5959_s18 = scalar_lea.hbm %s5958_s23, 32  ;;  %p5965_p5 = scmp.lt.s32.totalorder %s5958_s23, %s8625_s1 }
  0x37   : > { %p5960_p8 = scmp.ne.s32.totalorder %s5958_s23, %s5959_s18  ;;  %p5966_p13 = scmp.lt.s32.totalorder %s5964_s24, %s5959_s18 }
  0x39   : > { %p5962_p10 = pnand %p5960_p8, %p5931_p9  ;;  %p5967_p0 = por %p5966_p13, %p5965_p5 }
  0x3b   : > { %p5963_p11 = pneg %p5962_p10 }
  0x3d   : > { %p5968_p2 = pnand %p5967_p0, %p5963_p11 }
  0x3f   : > { %5971 = shalt.err (!%p5968_p2)
}
  0x40   : > { %s6073_s19 = smov 128   ;;  %s6074_s9 = smov 8  }
  0x41   : > { %5791 = dma.hbm_to_vmem [thread:$0]  (!%p6213_p7), %s321_s29, 512, %s323_s16, %s311_s11, %s6073_s19, %s6073_s19, %s6074_s9  }
  0x42   : > { %334 = sbr.rel (%p6159_p3) target bundleno = 1749 (0x6d5), region = 52 }
  0x47   : > { %s6248_s10 = sand.u32 1, %s6057_s28  }
  0x48   : > { %s6251_s7 = sshll.u32 %s6248_s10, 5  ;;  %s337_s18 = scalar_lea.sflag [#allocation3], %s6248_s10 }
  0x49   : > { %s6255_s14 = scalar_lea.vmem [#allocation2], %s6251_s7 }
  0x4a   : > { %6032 = dma.done.wait (%p6192_p12), %s337_s18, 512  }
  0x4b   : > { %6034 = vsyncadd (%p6192_p12), %s337_s18, 4294966784  ;;  %s346_s29 = sand.u32 1, %s6154_s12   ;;  %s6263_s25 = scalar_lea.vmem [#allocation5], %s6251_s7 }
  0x4c   : > { %s347_s13 = scalar_lea.sflag [#allocation6], %s346_s29 }
  0x4d   : > { %6036 = dma.done.wait (%p6192_p12), %s347_s13, 512  }
  0x4e   : > { %6038 = vsyncadd (%p6192_p12), %s347_s13, 4294966784 }
  0x4f   : > { %6040 = dma.done.wait (%p49_p1), [#allocation6], 2048  }
  0x50   : > { %6042 = vsyncadd (%p49_p1), [#allocation6], 4294965248 }
  0x51   : > { %6044 = dma.done.wait (%p49_p1), [#allocation9], 2048  }
  0x52   : > { %6046 = vsyncadd (%p49_p1), [#allocation9], 4294965248  ;;  %v6277_v0 = vld [vmem:[#allocation7 + $0x70] sm:$0xff]  ;;  %v6279_v1 = vld [vmem:[#allocation7 + $0x78] sm:$0xff]  ;;  %vm416_vm0 = vcmask 523264   ;;  %s6075_s15 = smov 16   ;;  %v658_v32 = vlaneseq }
  0x53   : > { %v6281_v2 = vld [vmem:[#allocation7 + $0x60] sm:$0xff]  ;;  %428 = vmatpush.msra.mxu0 %v6277_v0  ;;  %448 = vmatpush.msra.mxu1 %v6279_v1  ;;  %v6285_v3 = vld [vmem:[#allocation7 + $0x68] sm:$0xff]  ;;  %v6287_v4 = vld [vmem:[#allocation7 + $0x50] sm:$0xff]  ;;  %s6076_s16 = smov 17   ;;  %s6077_s20 = smov 15   ;;  %vm806_vm2 = vcmask 1043456  }
  0x54   : > { %v6289_v5 = vld [vmem:[#allocation7 + $0x58] sm:$0xff]  ;;  %473 = vmatpush.msra.mxu2 %v6277_v0  ;;  %493 = vmatpush.msra.mxu3 %v6279_v1  ;;  %v6295_v6 = vld [vmem:[#allocation7 + $0x40] sm:$0xff]  ;;  %v6297_v7 = vld [vmem:[#allocation7 + $0x48] sm:$0xff]  ;;  %s6078_s11 = smov 1   ;;  %v6451_v35 = vand.u32 127, %v658_v32  ;;  %s6079_s23 = smov 127  }
  0x55   : > { %429 = vmatpush.msra.mxu0 %v6281_v2  ;;  %449 = vmatpush.msra.mxu1 %v6285_v3  ;;  %v6303_v8 = vld [vmem:[#allocation7 + $0x30] sm:$0xff]  ;;  %v6305_v9 = vld [vmem:[#allocation7 + $0x38] sm:$0xff]  ;;  %v595_v10 = vld [vmem:[%s6255_s14] sm:$0xff]  ;;  %s6080_s21 = smov 113   ;;  %vm802_vm3 = vcmask 97280   ;;  %s6081_s2 = smov 112  }
  0x56   : > { %474 = vmatpush.msra.mxu2 %v6281_v2  ;;  %494 = vmatpush.msra.mxu3 %v6285_v3  ;;  %v596_v11 = vld [vmem:[%s6255_s14 + $0x8] sm:$0xff]  ;;  %603 = vst [vmem:[#allocation1] ss:$2 sm:$0xff] %v595_v10  ;;  %v598_v12 = vld [vmem:[%s6255_s14 + $0x18] sm:$0xff]  ;;  %v597_v13 = vld [vmem:[%s6255_s14 + $0x10] sm:$0xff]  ;;  %vm746_vm1 = vcmp.lt.s32.totalorder %v6451_v35, 16 }
  0x57   : > { %430 = vmatpush.msra.mxu0 %v6287_v4  ;;  %450 = vmatpush.msra.mxu1 %v6289_v5  ;;  %v6315_v14 = vld [vmem:[#allocation7 + $0x20] sm:$0xff]  ;;  %v404_v15 = vld [vmem:[#allocation7 + $0x28] sm:$0xff]  ;;  %605 = vst [vmem:[#allocation1 + $0x10] ss:$2 sm:$0xff] %v596_v11  ;;  %v6321_v16 = vld [vmem:[#allocation7 + $0x10] sm:$0xff]  ;;  %vm660_vm4 = vcmp.lt.s32.totalorder %v6451_v35, 17 }
  0x58   : > { %475 = vmatpush.msra.mxu2 %v6287_v4  ;;  %495 = vmatpush.msra.mxu3 %v6289_v5  ;;  %609 = vst [vmem:[#allocation1 + $0x30] ss:$2 sm:$0xff] %v598_v12  ;;  %v402_v17 = vld [vmem:[#allocation7 + $0x18] sm:$0xff]  ;;  %v6326_v18 = vld [vmem:[#allocation7] sm:$0xff]  ;;  %v400_v19 = vld [vmem:[#allocation7 + $0x8] sm:$0xff]  ;;  %vm1210_vm5 = vcmp.lt.s32.totalorder %v6451_v35, 15 }
  0x59   : > { %431 = vmatpush.msra.mxu0 %v6295_v6  ;;  %451 = vmatpush.msra.mxu1 %v6297_v7  ;;  %607 = vst [vmem:[#allocation1 + $0x20] ss:$2 sm:$0xff] %v597_v13  ;;  %v415_v20 = vld [vmem:[%s6263_s25] sm:$0xff]  ;;  %v5443_v21 = vld [vmem:[%s6263_s25 + $0x8] sm:$0xff]  ;;  %v5446_v25 = vld [vmem:[%s6263_s25 + $0x10] sm:$0xff]  ;;  %vm1493_vm6 = vcmp.lt.s32.totalorder %v6451_v35, 1 }
  0x5a   : > { %476 = vmatpush.msra.mxu2 %v6295_v6  ;;  %496 = vmatpush.msra.mxu3 %v6297_v7  ;;  %v5449_v28 = vld [vmem:[%s6263_s25 + $0x18] sm:$0xff]  ;;  %8747 = vst [vmem:[#allocation24_spill] sm:$0xff] %v6451_v35  ;;  %s6082_s13 = smov 111   ;;  %vm1965_vm7 = vcmp.lt.s32.totalorder %v6451_v35, 127  ;;  %vm2248_vm8 = vcmp.lt.s32.totalorder %v6451_v35, 113  ;;  %vm2531_vm9 = vcmp.lt.s32.totalorder %v6451_v35, 112 }
  0x5b   : > { %432 = vmatpush.msra.mxu0 %v6303_v8  ;;  %452 = vmatpush.msra.mxu1 %v6305_v9  ;;  %v764_v33 = vld [vmem:[#allocation8 + $0x1] ss:$8 sm:$0xf]  ;;  %vm2814_vm10 = vcmp.lt.s32.totalorder %v6451_v35, 111  ;;  %vm3232_vm15 = vcmask 31744   ;;  %s5296_s19 = scalar_lea.sflag [#allocation4], %s6248_s10 }
  0x5c   : > { %477 = vmatpush.msra.mxu2 %v6303_v8  ;;  %497 = vmatpush.msra.mxu3 %v6305_v9  ;;  %v765_v34 = vld [vmem:[#allocation8 + $0x1] ss:$8 sm:$0xf0]  ;;  %s6007_s29 = scalar_lea.hbm %s8632_s8, 64 }
  0x5d   : > { %433 = vmatpush.msra.mxu0 %v6315_v14  ;;  %453 = vmatpush.msra.mxu1 %v404_v15  ;;  %v6336_v22 = vld.sshfl [vmem:[#allocation1 + $0x8] sm:$0xff pattern:$0x75316420]  ;;  %v6346_v23 = vld.sshfl [vmem:[#allocation1] sm:$0xff pattern:$0x75316420]  ;;  %v6455_v38 = vor.u32 %v765_v34, %v764_v33 }
  0x5e   : > { %478 = vmatpush.msra.mxu2 %v6315_v14  ;;  %498 = vmatpush.msra.mxu3 %v404_v15  ;;  %v6356_v24 = vld.sshfl [vmem:[#allocation1 + $0x10] sm:$0xff pattern:$0x75316420]  ;;  %v6384_v29 = vld.sshfl [vmem:[#allocation1 + $0x18] sm:$0xff pattern:$0x75316420] }
  0x5f   : > { %434 = vmatpush.msra.mxu0 %v6321_v16  ;;  %454 = vmatpush.msra.mxu1 %v402_v17  ;;  %8743 = vst [vmem:[#allocation20_spill] sm:$0xff] %v6356_v24  ;;  %v6373_v26 = vld.sshfl [vmem:[#allocation1 + $0x38] sm:$0xff pattern:$0x75316420]  ;;  %v6459_v39 = vperm.slane %v6455_v38, 1  ;;  %v6464_v42 = vperm.slane %v6455_v38, 2 }
  0x60   : > { %479 = vmatpush.msra.mxu2 %v6321_v16  ;;  %499 = vmatpush.msra.mxu3 %v402_v17  ;;  %8744 = vst [vmem:[#allocation21_spill] sm:$0xff] %v6373_v26  ;;  %v6377_v27 = vld.sshfl [vmem:[#allocation1 + $0x28] sm:$0xff pattern:$0x75316420]  ;;  %v6467_v43 = vperm.slane %v6455_v38, 3  ;;  %v6493_v53 = vperm.slane %v6455_v38, 0 }
  0x61   : > { %435 = vmatpush.msra.mxu0 %v6326_v18  ;;  %455 = vmatpush.msra.mxu1 %v400_v19  ;;  %8745 = vst [vmem:[#allocation22_spill] sm:$0xff] %v6377_v27  ;;  %v6393_v30 = vld.sshfl [vmem:[#allocation1 + $0x20] sm:$0xff pattern:$0x75316420] }
  0x62   : > { %5441 = vmatmul.msk.f32.vlgmr.msra.gmra.mxu0 %vm416_vm0, %v415_v20  ;;  %5442 = vmatmul.msk.f32.vlgmr.msra.gmra.mxu1 %vm416_vm0, %v415_v20  ;;  %v6399_v31 = vld.sshfl [vmem:[#allocation1 + $0x30] sm:$0xff pattern:$0x75316420]  ;;  %8748 = vst [vmem:[#allocation25_spill] sm:$0xff] %v6459_v39 }
  0x63   : > { %480 = vmatpush.msra.mxu2 %v6326_v18  ;;  %500 = vmatpush.msra.mxu3 %v400_v19  ;;  %8746 = vst [vmem:[#allocation23_spill] sm:$0xff] %v6399_v31 }
  0x64   : > { %5444 = vmatmul.msk.f32.vlgmr.msra.gmra.mxu2 %vm416_vm0, %v5443_v21  ;;  %5445 = vmatmul.msk.f32.vlgmr.msra.gmra.mxu3 %vm416_vm0, %v5443_v21  ;;  %8749 = vst [vmem:[#allocation26_spill] sm:$0xff] %v6464_v42 }
  0x65   : > { %518 = vmatpush.msrb.mxu0 %v6277_v0  ;;  %720 = vrot.lane.b32.xlu0 %v6336_v22, %s6075_s15  ;;  %8750 = vst [vmem:[#allocation27_spill] sm:$0xff] %v6467_v43 }
  0x66   : > { %538 = vmatpush.msrb.mxu1 %v6279_v1  ;;  %583 = vmatpush.msrb.mxu3 %v6279_v1  ;;  %8753 = vst [vmem:[#allocation30_spill] sm:$0xff] %v6493_v53 }
  0x67   : > { %519 = vmatpush.msrb.mxu0 %v6281_v2  ;;  %563 = vmatpush.msrb.mxu2 %v6277_v0 }
  0x68   : > { %539 = vmatpush.msrb.mxu1 %v6285_v3  ;;  %584 = vmatpush.msrb.mxu3 %v6285_v3 }
  0x69   : > { %520 = vmatpush.msrb.mxu0 %v6287_v4  ;;  %716 = vrot.lane.b32.xlu1 %v6346_v23, %s6075_s15 }
  0x6a   : > { %540 = vmatpush.msrb.mxu1 %v6289_v5  ;;  %585 = vmatpush.msrb.mxu3 %v6289_v5 }
  0x6b   : > { %521 = vmatpush.msrb.mxu0 %v6295_v6  ;;  %564 = vmatpush.msrb.mxu2 %v6281_v2 }
  0x6c   : > { %541 = vmatpush.msrb.mxu1 %v6297_v7  ;;  %586 = vmatpush.msrb.mxu3 %v6297_v7 }
  0x6d   : > { %522 = vmatpush.msrb.mxu0 %v6303_v8  ;;  %724 = vrot.lane.b32.xlu0 %v6356_v24, %s6075_s15 }
  0x6e   : > { %542 = vmatpush.msrb.mxu1 %v6305_v9  ;;  %587 = vmatpush.msrb.mxu3 %v6305_v9 }
  0x6f   : > { %523 = vmatpush.msrb.mxu0 %v6315_v14  ;;  %565 = vmatpush.msrb.mxu2 %v6287_v4 }
  0x70   : > { %543 = vmatpush.msrb.mxu1 %v404_v15  ;;  %588 = vmatpush.msrb.mxu3 %v404_v15 }
  0x71   : > { %524 = vmatpush.msrb.mxu0 %v6321_v16  ;;  %566 = vmatpush.msrb.mxu2 %v6295_v6 }
  0x72   : > { %544 = vmatpush.msrb.mxu1 %v402_v17  ;;  %589 = vmatpush.msrb.mxu3 %v402_v17 }
  0x73   : > { %525 = vmatpush.msrb.mxu0 %v6326_v18  ;;  %567 = vmatpush.msrb.mxu2 %v6303_v8 }
  0x74   : > { %5447 = vmatmul.msk.f32.vlgmr.msrb.gmra.mxu0 %vm416_vm0, %v5446_v25  ;;  %545 = vmatpush.msrb.mxu1 %v400_v19 }
  0x75   : > { %744 = vrot.lane.b32.xlu0 %v6373_v26, %s6075_s15  ;;  %5448 = vmatmul.msk.f32.vlgmr.msrb.gmra.mxu1 %vm416_vm0, %v5446_v25 }
  0x76   : > { %590 = vmatpush.msrb.mxu3 %v400_v19  ;;  %736 = vrot.lane.b32.xlu1 %v6377_v27, %s6075_s15 }
  0x77   : > { %5451 = vmatmul.msk.f32.vlgmr.msrb.gmra.mxu3 %vm416_vm0, %v5449_v28  ;;  %568 = vmatpush.msrb.mxu2 %v6315_v14 }
  0x78   : > { %728 = vrot.lane.b32.xlu2 %v6384_v29, %s6075_s15 }
  0x79   : > { %569 = vmatpush.msrb.mxu2 %v6321_v16 }
  0x7b   : > { %570 = vmatpush.msrb.mxu2 %v6326_v18 }
  0x7c   : > { %5450 = vmatmul.msk.f32.vlgmr.msrb.gmra.mxu2 %vm416_vm0, %v5449_v28 }
  0x7d   : > { %732 = vrot.lane.b32.xlu0 %v6393_v30, %s6075_s15 }
  0x7e   : > { %632 = vrot.lane.b32.xlu1 %v6336_v22, %s6076_s16 }
  0x80   : > { %740 = vrot.lane.b32.xlu2 %v6399_v31, %s6075_s15 }
  0x85   : > { %628 = vrot.lane.b32.xlu0 %v6346_v23, %s6076_s16 }
  0x86   : > { %656 = vrot.lane.b32.xlu1 %v6373_v26, %s6076_s16 }
  0x88   : > { %636 = vrot.lane.b32.xlu2 %v6356_v24, %s6076_s16 }
  0x8d   : > { %640 = vrot.lane.b32.xlu0 %v6384_v29, %s6076_s16 }
  0x8e   : > { %644 = vrot.lane.b32.xlu1 %v6393_v30, %s6076_s16 }
  0x90   : > { %648 = vrot.lane.b32.xlu2 %v6377_v27, %s6076_s16 }
  0x95   : > { %652 = vrot.lane.b32.xlu0 %v6399_v31, %s6076_s16 }
  0x96   : > { %1180 = vrot.lane.b32.xlu1 %v6346_v23, %s6077_s20 }
  0x98   : > { %1184 = vrot.lane.b32.xlu2 %v6336_v22, %s6077_s20 }
  0x9d   : > { %1188 = vrot.lane.b32.xlu0 %v6356_v24, %s6077_s20 }
  0x9e   : > { %1192 = vrot.lane.b32.xlu1 %v6384_v29, %s6077_s20 }
  0xa0   : > { %1208 = vrot.lane.b32.xlu2 %v6373_v26, %s6077_s20 }
  0xa5   : > { %1200 = vrot.lane.b32.xlu0 %v6377_v27, %s6077_s20 }
  0xa6   : > { %1204 = vrot.lane.b32.xlu1 %v6399_v31, %s6077_s20 }
  0xa8   : > { %1196 = vrot.lane.b32.xlu2 %v6393_v30, %s6077_s20 }
  0xad   : > { %1467 = vrot.lane.b32.xlu0 %v6336_v22, %s6078_s11 }
  0xae   : > { %1471 = vrot.lane.b32.xlu1 %v6356_v24, %s6078_s11 }
  0xb0   : > { %1463 = vrot.lane.b32.xlu2 %v6346_v23, %s6078_s11 }
  0xb5   : > { %1491 = vrot.lane.b32.xlu0 %v6373_v26, %s6078_s11 }
  0xb6   : > { %1483 = vrot.lane.b32.xlu1 %v6377_v27, %s6078_s11 }
  0xb8   : > { %1475 = vrot.lane.b32.xlu2 %v6384_v29, %s6078_s11 }
  0xbd   : > { %1479 = vrot.lane.b32.xlu0 %v6393_v30, %s6078_s11 }
  0xc0   : > { %1487 = vrot.lane.b32.xlu2 %v6399_v31, %s6078_s11 }
  0xd2   : > { %v6453_v36 = vpop.permute.xlu2 %728 }
  0xd7   : > { %v721_v37 = vpop.permute.xlu0 %720 }
  0xda   : > { %v6480_v48 = vpop.permute.xlu2 %740 }
  0xdb   : > { %v717_v40 = vpop.permute.xlu1 %716 }
  0xdc   : > { %v760_v41 = vsel %vm746_vm1, %v717_v40, %v721_v37 }
  0xdd   : > { %v793_v46 = vmul.f32 %v6459_v39, %v760_v41  ;;  %v6658_v41 = vperm.slane %v6455_v38, 7 }
  0xdf   : > { %v6469_v44 = vpop.f32.mrf.mxu0  ;;  %v6471_v45 = vpop.f32.mrf.mxu1  ;;  %5455 = vmatpush.msk.msra.mxu1 %vm806_vm2, %v793_v46  ;;  %8765 = vst [vmem:[#allocation42_spill] sm:$0xff] %v6658_v41 }
  0xe0   : > { %8751 = vst [vmem:[#allocation28_spill] sm:$0xff] %v6469_v44  ;;  %718 = vrot.lane.b32.xlu1 %v6471_v45, %s6075_s15  ;;  %1178 = vrot.lane.b32.xlu0 %v6469_v44, %s6077_s20  ;;  %v725_v47 = vpop.permute.xlu0 %724 }
  0xe1   : > { %8752 = vst [vmem:[#allocation29_spill] sm:$0xff] %v6471_v45  ;;  %626 = vrot.lane.b32.xlu2 %v6469_v44, %s6076_s16  ;;  %v756_v49 = vsel %vm746_vm1, %v725_v47, %v6453_v36  ;;  %v758_v50 = vsel %vm746_vm1, %v721_v37, %v725_v47 }
  0xe2   : > { %v794_v51 = vmul.f32 %v6464_v42, %v758_v50  ;;  %v795_v52 = vmul.f32 %v6467_v43, %v756_v49  ;;  %v6507_v57 = vpop.permute.xlu2 %636 }
  0xe4   : > { %5457 = vmatpush.msk.msra.mxu2 %vm806_vm2, %v794_v51  ;;  %5459 = vmatpush.msk.msra.mxu3 %vm806_vm2, %v795_v52 }
  0xe7   : > { %v6510_v58 = vpop.f32.mrf.mxu3  ;;  %v6512_v59 = vpop.f32.mrf.mxu2 }
  0xe8   : > { %1465 = vrot.lane.b32.xlu0 %v6471_v45, %s6078_s11  ;;  %714 = vrot.lane.b32.xlu1 %v6469_v44, %s6075_s15  ;;  %v6499_v54 = vpop.permute.xlu0 %744  ;;  %v6528_v61 = vpop.permute.xlu1 %736 }
  0xe9   : > { %1182 = vrot.lane.b32.xlu2 %v6471_v45, %s6077_s20  ;;  %v762_v55 = vsel %vm746_vm1, %v6499_v54, %v717_v40  ;;  %v6653_v40 = vperm.slane %v6455_v38, 6  ;;  %v750_v46 = vsel %vm746_vm1, %v6528_v61, %v6480_v48  ;;  %v748_v50 = vsel %vm746_vm1, %v6480_v48, %v6499_v54 }
  0xea   : > { %v792_v56 = vmul.f32 %v6493_v53, %v762_v55  ;;  %v6520_v60 = vpop.permute.xlu2 %648  ;;  %v6686_v48 = vperm.slane %v6455_v38, 5 }
  0xeb   : > { %8764 = vst [vmem:[#allocation41_spill] sm:$0xff] %v6653_v40 }
  0xec   : > { %5453 = vmatpush.msk.msra.mxu0 %vm806_vm2, %v792_v56  ;;  %8766 = vst [vmem:[#allocation43_spill] sm:$0xff] %v6686_v48 }
  0xf0   : > { %638 = vrot.lane.b32.xlu0 %v6510_v58, %s6076_s16  ;;  %630 = vrot.lane.b32.xlu1 %v6471_v45, %s6076_s16  ;;  %v6530_v62 = vpop.permute.xlu0 %732  ;;  %v6542_v1 = vpop.permute.xlu1 %632 }
  0xf1   : > { %722 = vrot.lane.b32.xlu2 %v6512_v59, %s6075_s15  ;;  %v6532_v63 = vpop.f32.mrf.mxu0  ;;  %v752_v54 = vsel %vm746_vm1, %v6530_v62, %v6528_v61 }
  0xf2   : > { %v6534_v0 = vpop.permute.xlu2 %1184  ;;  %v6544_v2 = vpop.f32.mrf.mxu1 }
  0xf8   : > { %1186 = vrot.lane.b32.xlu0 %v6512_v59, %s6077_s20  ;;  %1461 = vrot.lane.b32.xlu1 %v6469_v44, %s6078_s11  ;;  %v6546_v3 = vpop.permute.xlu0 %628  ;;  %v6558_v6 = vpop.permute.xlu1 %656 }
  0xf9   : > { %726 = vrot.lane.b32.xlu2 %v6510_v58, %s6075_s15 }
  0xfa   : > { %v6554_v4 = vpop.permute.xlu2 %1208  ;;  %v6556_v5 = vpop.f32.mrf.mxu3 }
  0xfb   : > { %8754 = vst [vmem:[#allocation31_spill] sm:$0xff] %v6554_v4  ;;  %v1229_v4 = vld [vmem:[#allocation8 + $0x2] ss:$8 sm:$0xf0] }
  0xff   : > { %v6570_v9 = vpop.f32.mrf.mxu2 }
 0x100   : > { %1190 = vrot.lane.b32.xlu1 %v6510_v58, %s6077_s20  ;;  %730 = vrot.lane.b32.xlu0 %v6532_v63, %s6075_s15  ;;  %v6564_v7 = vpop.permute.xlu0 %640  ;;  %8755 = vst [vmem:[#allocation32_spill] sm:$0xff] %v6570_v9  ;;  %v6572_v10 = vpop.permute.xlu1 %644 }
 0x101   : > { %634 = vrot.lane.b32.xlu2 %v6512_v59, %s6076_s16 }
 0x102   : > { %v6568_v8 = vpop.permute.xlu2 %1196 }
 0x108   : > { %1469 = vrot.lane.b32.xlu1 %v6512_v59, %s6078_s11  ;;  %1198 = vrot.lane.b32.xlu0 %v6544_v2, %s6077_s20  ;;  %v6580_v11 = vpop.permute.xlu0 %652  ;;  %v6590_v13 = vpop.permute.xlu1 %1180 }
 0x109   : > { %1473 = vrot.lane.b32.xlu2 %v6510_v58, %s6078_s11 }
 0x10a   : > { %v6582_v12 = vpop.permute.xlu2 %1463 }
 0x10b   : > { %8756 = vst [vmem:[#allocation33_spill] sm:$0xff] %v6582_v12 }
 0x110   : > { %734 = vrot.lane.b32.xlu1 %v6544_v2, %s6075_s15  ;;  %742 = vrot.lane.b32.xlu0 %v6556_v5, %s6075_s15  ;;  %v6592_v14 = vpop.permute.xlu0 %1188  ;;  %v6602_v16 = vpop.permute.xlu1 %1192 }
 0x111   : > { %646 = vrot.lane.b32.xlu2 %v6544_v2, %s6076_s16 }
 0x112   : > { %v6594_v15 = vpop.permute.xlu2 %1475 }
 0x113   : > { %8757 = vst [vmem:[#allocation34_spill] sm:$0xff] %v6594_v15  ;;  %v6766_v15 = vperm.slane %v6455_v38, 4  ;;  %v672_v38 = vsel %vm660_vm4, %v6542_v1, %v6507_v57 }
 0x115   : > { %8771 = vst [vmem:[#allocation48_spill] sm:$0xff] %v6766_v15 }
 0x118   : > { %642 = vrot.lane.b32.xlu1 %v6532_v63, %s6076_s16  ;;  %650 = vrot.lane.b32.xlu0 %v6570_v9, %s6076_s16  ;;  %v6604_v17 = vpop.permute.xlu0 %1200  ;;  %v6614_v19 = vpop.permute.xlu1 %1204 }
 0x119   : > { %1194 = vrot.lane.b32.xlu2 %v6532_v63, %s6077_s20 }
 0x11a   : > { %v6612_v18 = vpop.permute.xlu2 %1487 }
 0x11b   : > { %8758 = vst [vmem:[#allocation35_spill] sm:$0xff] %v6612_v18 }
 0x120   : > { %1481 = vrot.lane.b32.xlu1 %v6544_v2, %s6078_s11  ;;  %1489 = vrot.lane.b32.xlu0 %v6556_v5, %s6078_s11  ;;  %v6616_v20 = vpop.permute.xlu0 %1467  ;;  %v6626_v25 = vpop.permute.xlu1 %1471 }
 0x121   : > { %738 = vrot.lane.b32.xlu2 %v6570_v9, %s6075_s15  ;;  %8759 = vst [vmem:[#allocation36_spill] sm:$0xff] %v6616_v20 }
 0x122   : > { %8760 = vst [vmem:[#allocation37_spill] sm:$0xff] %v6626_v25 }
 0x128   : > { %654 = vrot.lane.b32.xlu1 %v6556_v5, %s6076_s16  ;;  %1477 = vrot.lane.b32.xlu0 %v6532_v63, %s6078_s11  ;;  %v6628_v28 = vpop.permute.xlu0 %1491  ;;  %v6642_v33 = vpop.permute.xlu1 %1483 }
 0x129   : > { %1206 = vrot.lane.b32.xlu2 %v6556_v5, %s6077_s20  ;;  %8761 = vst [vmem:[#allocation38_spill] sm:$0xff] %v6628_v28  ;;  %v798_v28 = vmul.f32 %v6653_v40, %v750_v46 }
 0x12a   : > { %8762 = vst [vmem:[#allocation39_spill] sm:$0xff] %v6642_v33 }
 0x130   : > { %1202 = vrot.lane.b32.xlu1 %v6570_v9, %s6077_s20  ;;  %1935 = vrot.lane.b32.xlu0 %v6346_v23, %s6079_s23  ;;  %v6646_v34 = vpop.permute.xlu0 %1479 }
 0x131   : > { %1485 = vrot.lane.b32.xlu2 %v6570_v9, %s6078_s11  ;;  %8763 = vst [vmem:[#allocation40_spill] sm:$0xff] %v6646_v34  ;;  %v799_v34 = vmul.f32 %v6658_v41, %v748_v50  ;;  %v6706_v50 = vld [vmem:[%s8627_s3 + $0x4] sm:$0xf] }
 0x138   : > { %1943 = vrot.lane.b32.xlu1 %v6356_v24, %s6079_s23  ;;  %1945 = vrot.lane.b32.xlu0 %v6510_v58, %s6079_s23 }
 0x139   : > { %1947 = vrot.lane.b32.xlu2 %v6384_v29, %s6079_s23 }
 0x13b   : > { %v6624_v21 = vpop.permute.xlu2 %626 }
 0x140   : > { %1939 = vrot.lane.b32.xlu1 %v6336_v22, %s6079_s23  ;;  %1937 = vrot.lane.b32.xlu0 %v6471_v45, %s6079_s23 }
 0x141   : > { %1941 = vrot.lane.b32.xlu2 %v6512_v59, %s6079_s23 }
 0x143   : > { %v6636_v32 = vpop.permute.xlu2 %1182 }
 0x148   : > { %1951 = vrot.lane.b32.xlu1 %v6393_v30, %s6079_s23  ;;  %1963 = vrot.lane.b32.xlu0 %v6373_v26, %s6079_s23 }
 0x149   : > { %1933 = vrot.lane.b32.xlu2 %v6469_v44, %s6079_s23 }
 0x14b   : > { %v723_v37 = vpop.permute.xlu2 %722 }
 0x150   : > { %1949 = vrot.lane.b32.xlu1 %v6532_v63, %s6079_s23  ;;  %1961 = vrot.lane.b32.xlu0 %v6556_v5, %s6079_s23 }
 0x151   : > { %1959 = vrot.lane.b32.xlu2 %v6399_v31, %s6079_s23 }
 0x152   : > { %v719_v47 = vpop.permute.xlu1 %718  ;;  %v6664_v49 = vpop.permute.xlu0 %1178 }
 0x153   : > { %v757_v51 = vsel %vm746_vm1, %v719_v47, %v723_v37  ;;  %v6672_v52 = vpop.permute.xlu2 %726 }
 0x154   : > { %v755_v55 = vsel %vm746_vm1, %v723_v37, %v6672_v52  ;;  %v786_v56 = vmul.f32 %v6464_v42, %v757_v51  ;;  %v797_v51 = vmul.f32 %v6686_v48, %v752_v54  ;;  %v678_v42 = vld [vmem:[#allocation8] ss:$8 sm:$0xf0] }
 0x155   : > { %v787_v18 = vmul.f32 %v6467_v43, %v755_v55 }
 0x156   : > { %886 = vmatpush.msra.mxu2 %v786_v56 }
 0x157   : > { %906 = vmatpush.msra.mxu3 %v787_v18  ;;  %5458 = vmatmul.msk.f32.vlgmr.msra.gmra.mxu2 %vm802_vm3, %v6706_v50 }
 0x158   : > { %5465 = vmatpush.msk.msrb.mxu2 %vm806_vm2, %v798_v28  ;;  %1955 = vrot.lane.b32.xlu1 %v6377_v27, %s6079_s23 }
 0x159   : > { %5467 = vmatpush.msk.msrb.mxu3 %vm806_vm2, %v799_v34  ;;  %1957 = vrot.lane.b32.xlu2 %v6570_v9, %s6079_s23 }
 0x15a   : > { %2230 = vrot.lane.b32.xlu0 %v6384_v29, %s6080_s21  ;;  %v6696_v18 = vpop.permute.xlu0 %1465  ;;  %v715_v28 = vpop.permute.xlu1 %714  ;;  %5460 = vmatmul.msk.f32.vlgmr.msra.gmra.mxu3 %vm802_vm3, %v6706_v50 }
 0x15b   : > { %8767 = vst [vmem:[#allocation44_spill] sm:$0xff] %v6696_v18  ;;  %v6698_v34 = vpop.permute.xlu2 %634  ;;  %v759_v37 = vsel %vm746_vm1, %v715_v28, %v719_v47 }
 0x15c   : > { %v785_v46 = vmul.f32 %v6459_v39, %v759_v37  ;;  %v677_v39 = vld [vmem:[#allocation8] ss:$8 sm:$0xf] }
 0x15d   : > { %v6760_v25 = vor.u32 %v678_v42, %v677_v39  ;;  %v754_v39 = vsel %vm746_vm1, %v6453_v36, %v6530_v62 }
 0x15e   : > { %866 = vmatpush.msra.mxu1 %v785_v46 }
 0x15f   : > { %5456 = vmatmul.msk.f32.vlgmr.msra.gmra.mxu1 %vm802_vm3, %v6706_v50  ;;  %v6784_v42 = vperm.slane %v6760_v25, 1 }
 0x160   : > { %5463 = vmatpush.msk.msrb.mxu1 %vm806_vm2, %v797_v51  ;;  %1953 = vrot.lane.b32.xlu1 %v6544_v2, %s6079_s23 }
 0x161   : > { %2226 = vrot.lane.b32.xlu2 %v6356_v24, %s6080_s21  ;;  %8773 = vst [vmem:[#allocation50_spill] sm:$0xff] %v6784_v42 }
 0x162   : > { %2224 = vrot.lane.b32.xlu0 %v6512_v59, %s6080_s21  ;;  %v6722_v61 = vpop.permute.xlu0 %638  ;;  %v6724_v47 = vpop.permute.xlu1 %630 }
 0x163   : > { %v6726_v55 = vpop.permute.xlu2 %1473 }
 0x164   : > { %8768 = vst [vmem:[#allocation45_spill] sm:$0xff] %v6726_v55 }
 0x168   : > { %2218 = vrot.lane.b32.xlu1 %v6346_v23, %s6080_s21 }
 0x169   : > { %2222 = vrot.lane.b32.xlu2 %v6336_v22, %s6080_s21 }
 0x16a   : > { %2216 = vrot.lane.b32.xlu0 %v6469_v44, %s6080_s21  ;;  %v6734_v56 = vpop.permute.xlu0 %1186  ;;  %v6736_v54 = vpop.permute.xlu1 %1461  ;;  %v6769_v44 = vperm.slane %v6760_v25, 2 }
 0x16b   : > { %8769 = vst [vmem:[#allocation46_spill] sm:$0xff] %v6736_v54  ;;  %v6738_v37 = vpop.permute.xlu2 %646  ;;  %v674_v54 = vsel %vm660_vm4, %v6546_v3, %v6542_v1  ;;  %v676_v1 = vsel %vm660_vm4, %v6558_v6, %v6546_v3  ;;  %v664_v3 = vsel %vm660_vm4, %v6520_v60, %v6580_v11 }
 0x16c   : > { %8772 = vst [vmem:[#allocation49_spill] sm:$0xff] %v6769_v44 }
 0x170   : > { %2228 = vrot.lane.b32.xlu1 %v6510_v58, %s6080_s21 }
 0x171   : > { %2234 = vrot.lane.b32.xlu2 %v6393_v30, %s6080_s21 }
 0x172   : > { %2242 = vrot.lane.b32.xlu0 %v6399_v31, %s6080_s21  ;;  %v6746_v46 = vpop.permute.xlu1 %1190  ;;  %v731_v51 = vpop.permute.xlu0 %730 }
 0x173   : > { %v6748_v43 = vpop.permute.xlu2 %1194 }
 0x178   : > { %2220 = vrot.lane.b32.xlu1 %v6471_v45, %s6080_s21 }
 0x179   : > { %2232 = vrot.lane.b32.xlu2 %v6532_v63, %s6080_s21 }
 0x17a   : > { %2240 = vrot.lane.b32.xlu0 %v6570_v9, %s6080_s21  ;;  %v6756_v55 = vpop.permute.xlu1 %1469  ;;  %v6758_v33 = vpop.permute.xlu0 %1198  ;;  %v6787_v9 = vperm.slane %v6760_v25, 3 }
 0x17b   : > { %8770 = vst [vmem:[#allocation47_spill] sm:$0xff] %v6756_v55  ;;  %v739_v31 = vpop.permute.xlu2 %738 }
 0x17c   : > { %8774 = vst [vmem:[#allocation51_spill] sm:$0xff] %v6787_v9 }
 0x180   : > { %2246 = vrot.lane.b32.xlu1 %v6373_v26, %s6080_s21 }
 0x181   : > { %2238 = vrot.lane.b32.xlu2 %v6377_v27, %s6080_s21 }
 0x182   : > { %2509 = vrot.lane.b32.xlu0 %v6356_v24, %s6081_s2  ;;  %v735_v26 = vpop.permute.xlu1 %734  ;;  %v743_v55 = vpop.permute.xlu0 %742 }
 0x183   : > { %v749_v24 = vsel %vm746_vm1, %v735_v26, %v739_v31  ;;  %v751_v27 = vsel %vm746_vm1, %v731_v51, %v735_v26  ;;  %v6793_v36 = vpop.permute.xlu2 %1206  ;;  %v747_v62 = vsel %vm746_vm1, %v739_v31, %v743_v55  ;;  %v761_v45 = vsel %vm746_vm1, %v743_v55, %v715_v28 }
 0x184   : > { %8775 = vst [vmem:[#allocation52_spill] sm:$0xff] %v6793_v36  ;;  %v789_v18 = vmul.f32 %v6686_v48, %v751_v27  ;;  %v790_v12 = vmul.f32 %v6653_v40, %v749_v24  ;;  %v784_v20 = vmul.f32 %v6493_v53, %v761_v45  ;;  %v670_v26 = vsel %vm660_vm4, %v6507_v57, %v6564_v7  ;;  %v1228_v36 = vld [vmem:[#allocation8 + $0x2] ss:$8 sm:$0xf] }
 0x185   : > { %v791_v31 = vmul.f32 %v6658_v41, %v747_v62  ;;  %v796_v28 = vmul.f32 %v6766_v15, %v754_v39  ;;  %v707_v55 = vmul.f32 %v6769_v44, %v672_v38  ;;  %v706_v27 = vmul.f32 %v6784_v42, %v674_v54 }
 0x186   : > { %846 = vmatpush.msra.mxu0 %v784_v20  ;;  %946 = vmatpush.msrb.mxu1 %v789_v18  ;;  %v6815_v24 = vperm.slane %v6760_v25, 0  ;;  %v673_v45 = vsel %vm660_vm4, %v6624_v21, %v6724_v47  ;;  %v753_v57 = vsel %vm746_vm1, %v6672_v52, %v731_v51  ;;  %v708_v20 = vmul.f32 %v6787_v9, %v670_v26 }
 0x187   : > { %966 = vmatpush.msrb.mxu2 %v790_v12  ;;  %986 = vmatpush.msrb.mxu3 %v791_v31  ;;  %v6830_v18 = vperm.slane %v6760_v25, 6  ;;  %v671_v54 = vsel %vm660_vm4, %v6724_v47, %v6698_v34  ;;  %v6840_v12 = vperm.slane %v6760_v25, 5  ;;  %v6846_v52 = vor.u32 %v1229_v4, %v1228_v36 }
 0x188   : > { %8776 = vst [vmem:[#allocation53_spill] sm:$0xff] %v6815_v24  ;;  %5461 = vmatpush.msk.msrb.mxu0 %vm806_vm2, %v796_v28  ;;  %5464 = vmatmul.msk.f32.vlgmr.msrb.gmra.mxu1 %vm802_vm3, %v6706_v50  ;;  %v669_v47 = vsel %vm660_vm4, %v6698_v34, %v6722_v61  ;;  %v666_v51 = vsel %vm660_vm4, %v6572_v10, %v6520_v60  ;;  %v6860_v39 = vperm.slane %v6760_v25, 7 }
 0x189   : > { %8777 = vst [vmem:[#allocation54_spill] sm:$0xff] %v6830_v18  ;;  %5466 = vmatmul.msk.f32.vlgmr.msrb.gmra.mxu2 %vm802_vm3, %v6706_v50  ;;  %5471 = vmatpush.msk.msra.mxu1 %vm806_vm2, %v706_v27  ;;  %v788_v4 = vmul.f32 %v6766_v15, %v753_v57  ;;  %v698_v34 = vmul.f32 %v6784_v42, %v673_v45  ;;  %v6896_v57 = vperm.slane %v6846_v52, 2 }
 0x18a   : > { %8778 = vst [vmem:[#allocation55_spill] sm:$0xff] %v6840_v12  ;;  %5473 = vmatpush.msk.msra.mxu2 %vm806_vm2, %v707_v55  ;;  %5475 = vmatpush.msk.msra.mxu3 %vm806_vm2, %v708_v20  ;;  %v6866_v38 = vpop.permute.xlu1 %642  ;;  %v6868_v36 = vpop.permute.xlu0 %650  ;;  %v699_v60 = vmul.f32 %v6769_v44, %v671_v54  ;;  %v662_v28 = vsel %vm660_vm4, %v6580_v11, %v6558_v6  ;;  %v6901_v6 = vperm.slane %v6846_v52, 1 }
 0x18b   : > { %8779 = vst [vmem:[#allocation56_spill] sm:$0xff] %v6860_v39  ;;  %2236 = vrot.lane.b32.xlu2 %v6544_v2, %s6080_s21  ;;  %2244 = vrot.lane.b32.xlu1 %v6556_v5, %s6080_s21  ;;  %v6876_v62 = vpop.permute.xlu2 %1485  ;;  %v665_v26 = vsel %vm660_vm4, %v6866_v38, %v6738_v37  ;;  %v663_v31 = vsel %vm660_vm4, %v6738_v37, %v6868_v36 }
 0x18c   : > { %v711_v55 = vmul.f32 %v6830_v18, %v664_v3  ;;  %2505 = vrot.lane.b32.xlu0 %v6336_v22, %s6081_s2  ;;  %926 = vmatpush.msrb.mxu0 %v788_v4  ;;  %v700_v27 = vmul.f32 %v6787_v9, %v669_v47  ;;  %v705_v45 = vmul.f32 %v6815_v24, %v676_v1  ;;  %v6921_v3 = vld [vmem:[%s8627_s3] sm:$0xf] }
 0x18d   : > { %8780 = vst [vmem:[#allocation57_spill] sm:$0xff] %v6896_v57  ;;  %1053 = vmatpush.msra.mxu1 %v698_v34  ;;  %1073 = vmatpush.msra.mxu2 %v699_v60  ;;  %v703_v37 = vmul.f32 %v6830_v18, %v663_v31  ;;  %v710_v20 = vmul.f32 %v6840_v12, %v666_v51 }
 0x18e   : > { %8781 = vst [vmem:[#allocation58_spill] sm:$0xff] %v6901_v6  ;;  %v1222_v22 = vsel %vm1210_vm5, %v6534_v0, %v6592_v14  ;;  %1093 = vmatpush.msra.mxu3 %v700_v27  ;;  %v702_v11 = vmul.f32 %v6840_v12, %v665_v26  ;;  %v712_v1 = vmul.f32 %v6860_v39, %v662_v28  ;;  %v6953_v28 = vperm.slane %v6846_v52, 6 }
 0x18f   : > { %5481 = vmatpush.msk.msrb.mxu2 %vm806_vm2, %v711_v55  ;;  %v1224_v54 = vsel %vm1210_vm5, %v6590_v13, %v6534_v0  ;;  %5454 = vmatmul.msk.f32.vlgmr.msra.gmra.mxu0 %vm802_vm3, %v6706_v50  ;;  %v1258_v47 = vmul.f32 %v6896_v57, %v1222_v22  ;;  %v1223_v0 = vsel %vm1210_vm5, %v6664_v49, %v6636_v32  ;;  %v6960_v55 = vperm.slane %v6846_v52, 5 }
 0x190   : > { %5468 = vmatmul.msk.f32.vlgmr.msrb.gmra.mxu3 %vm802_vm3, %v6706_v50  ;;  %5469 = vmatpush.msk.msra.mxu0 %vm806_vm2, %v705_v45  ;;  %v1221_v51 = vsel %vm1210_vm5, %v6636_v32, %v6734_v56  ;;  %v1257_v4 = vmul.f32 %v6901_v6, %v1224_v54  ;;  %v1249_v31 = vmul.f32 %v6901_v6, %v1223_v0  ;;  %v6994_v0 = vperm.slane %v6846_v52, 3 }
 0x191   : > { %5479 = vmatpush.msk.msrb.mxu1 %vm806_vm2, %v710_v20  ;;  %5483 = vmatpush.msk.msrb.mxu3 %vm806_vm2, %v712_v1  ;;  %v1250_v32 = vmul.f32 %v6896_v57, %v1221_v51  ;;  %8782 = vst [vmem:[#allocation59_spill] sm:$0xff] %v6953_v28  ;;  %v1214_v27 = vsel %vm1210_vm5, %v6604_v17, %v6614_v19  ;;  %v1512_v20 = vld [vmem:[#allocation8 + $0x3] ss:$8 sm:$0xf0] }
 0x192   : > { %1153 = vmatpush.msrb.mxu2 %v703_v37  ;;  %v6938_v34 = vpop.permute.xlu1 %1481  ;;  %v6940_v60 = vpop.permute.xlu0 %1489  ;;  %5472 = vmatmul.msk.f32.vlgmr.msra.gmra.mxu1 %vm802_vm3, %v6921_v3  ;;  %8783 = vst [vmem:[#allocation60_spill] sm:$0xff] %v6960_v55  ;;  %v1216_v45 = vsel %vm1210_vm5, %v6568_v8, %v6604_v17  ;;  %v1511_v37 = vld [vmem:[#allocation8 + $0x3] ss:$8 sm:$0xf]  ;;  %v1215_v22 = vsel %vm1210_vm5, %v6748_v43, %v6758_v33 }
 0x193   : > { %1133 = vmatpush.msrb.mxu1 %v702_v11  ;;  %5474 = vmatmul.msk.f32.vlgmr.msra.gmra.mxu2 %vm802_vm3, %v6921_v3  ;;  %v6945_v26 = vpop.permute.xlu2 %1947  ;;  %v6980_v11 = vperm.slane %v6760_v25, 4  ;;  %v668_v17 = vsel %vm660_vm4, %v6564_v7, %v6572_v10  ;;  %v6987_v1 = vor.u32 %v1512_v20, %v1511_v37  ;;  %8785 = vst [vmem:[#allocation62_spill] sm:$0xff] %v6994_v0  ;;  %v8789_v20 = vld [vmem:[#allocation36_spill] sm:$0xff]  ;;  %v8812_v57 = vld [vmem:[#allocation21_spill] sm:$0xff] }
 0x194   : > { %5490 = vmatpush.msk.msra.mxu2 %vm806_vm2, %v1258_v47  ;;  %2501 = vrot.lane.b32.xlu2 %v6346_v23, %s6081_s2  ;;  %v1220_v25 = vsel %vm1210_vm5, %v6592_v14, %v6602_v16 }
 0x195   : > { %5488 = vmatpush.msk.msra.mxu1 %vm806_vm2, %v1257_v4  ;;  %2513 = vrot.lane.b32.xlu1 %v6384_v29, %s6081_s2  ;;  %8784 = vst [vmem:[#allocation61_spill] sm:$0xff] %v6980_v11  ;;  %v1253_v4 = vmul.f32 %v6960_v55, %v1215_v22  ;;  %v1259_v37 = vmul.f32 %v6994_v0, %v1220_v25 }
 0x196   : > { %2517 = vrot.lane.b32.xlu0 %v6393_v30, %s6081_s2  ;;  %1348 = vmatpush.msra.mxu2 %v1250_v32  ;;  %v1262_v30 = vmul.f32 %v6953_v28, %v1214_v27  ;;  %v7031_v27 = vperm.slane %v6987_v1, 1 }
 0x197   : > { %1328 = vmatpush.msra.mxu1 %v1249_v31  ;;  %5462 = vmatmul.msk.f32.vlgmr.msrb.gmra.mxu0 %vm802_vm3, %v6706_v50  ;;  %v1261_v50 = vmul.f32 %v6960_v55, %v1216_v45  ;;  %v7028_v31 = vperm.slane %v6846_v52, 0  ;;  %v1219_v45 = vsel %vm1210_vm5, %v6734_v56, %v6746_v46  ;;  %v7051_v56 = vld [vmem:[%s8627_s3 + $0x8] sm:$0xf] }
 0x198   : > { %5476 = vmatmul.msk.f32.vlgmr.msra.gmra.mxu3 %vm802_vm3, %v6921_v3  ;;  %8787 = vst [vmem:[#allocation64_spill] sm:$0xff] %v7031_v27 }
 0x199   : > { %8786 = vst [vmem:[#allocation63_spill] sm:$0xff] %v7028_v31 }
 0x19a   : > { %v655_v54 = vpop.permute.xlu1 %654  ;;  %v6991_v47 = vpop.permute.xlu0 %1477  ;;  %5480 = vmatmul.msk.f32.vlgmr.msrb.gmra.mxu1 %vm802_vm3, %v6921_v3 }
 0x19b   : > { %5482 = vmatmul.msk.f32.vlgmr.msrb.gmra.mxu2 %vm802_vm3, %v6921_v3  ;;  %v7003_v7 = vpop.permute.xlu2 %1941  ;;  %v661_v10 = vsel %vm660_vm4, %v6868_v36, %v655_v54  ;;  %v675_v51 = vsel %vm660_vm4, %v655_v54, %v6624_v21  ;;  %5496 = vmatpush.msk.msrb.mxu1 %vm806_vm2, %v1261_v50  ;;  %v667_v36 = vsel %vm660_vm4, %v6722_v61, %v6866_v38  ;;  %v8788_v61 = vld [vmem:[#allocation31_spill] sm:$0xff]  ;;  %v8792_v50 = vld [vmem:[#allocation44_spill] sm:$0xff]  ;;  %v8793_v54 = vld [vmem:[#allocation46_spill] sm:$0xff] }
 0x19c   : > { %5498 = vmatpush.msk.msrb.mxu2 %vm806_vm2, %v1262_v30  ;;  %2511 = vrot.lane.b32.xlu2 %v6510_v58, %s6081_s2  ;;  %v697_v14 = vmul.f32 %v6815_v24, %v675_v51  ;;  %v704_v32 = vmul.f32 %v6860_v39, %v661_v10  ;;  %v709_v21 = vmul.f32 %v6980_v11, %v668_v17  ;;  %v8790_v30 = vld [vmem:[#allocation33_spill] sm:$0xff] }
 0x19d   : > { %2507 = vrot.lane.b32.xlu1 %v6512_v59, %s6081_s2  ;;  %1408 = vmatpush.msrb.mxu1 %v1253_v4  ;;  %v1226_v38 = vsel %vm1210_vm5, %v8788_v61, %v6590_v13  ;;  %v1507_v22 = vsel %vm1493_vm6, %v8790_v30, %v8789_v20  ;;  %v701_v17 = vmul.f32 %v6980_v11, %v667_v36  ;;  %v7058_v13 = vperm.slane %v6846_v52, 7 }
 0x19e   : > { %2515 = vrot.lane.b32.xlu0 %v6532_v63, %s6081_s2  ;;  %1033 = vmatpush.msra.mxu0 %v697_v14  ;;  %v1506_v25 = vsel %vm1493_vm6, %v8793_v54, %v8792_v50  ;;  %v1251_v10 = vmul.f32 %v6994_v0, %v1219_v45  ;;  %v1256_v51 = vmul.f32 %v7028_v31, %v1226_v38 }
 0x19f   : > { %1173 = vmatpush.msrb.mxu3 %v704_v32  ;;  %5470 = vmatmul.msk.f32.vlgmr.msra.gmra.mxu0 %vm802_vm3, %v6921_v3  ;;  %8791 = vst [vmem:[#allocation31_spill] sm:$0xff] %v7058_v13  ;;  %v1212_v4 = vsel %vm1210_vm5, %v6614_v19, %v8788_v61  ;;  %v1540_v14 = vmul.f32 %v7031_v27, %v1507_v22  ;;  %v8796_v22 = vld [vmem:[#allocation29_spill] sm:$0xff] }
 0x1a0   : > { %5477 = vmatpush.msk.msrb.mxu0 %vm806_vm2, %v709_v21  ;;  %5484 = vmatmul.msk.f32.vlgmr.msrb.gmra.mxu3 %vm802_vm3, %v6921_v3  ;;  %v8794_v21 = vld [vmem:[#allocation52_spill] sm:$0xff] }
 0x1a1   : > { %5492 = vmatpush.msk.msra.mxu3 %vm806_vm2, %v1259_v37  ;;  %v1225_v45 = vsel %vm1210_vm5, %v8794_v21, %v6664_v49  ;;  %v7091_v37 = vperm.slane %v6846_v52, 4  ;;  %v1218_v49 = vsel %vm1210_vm5, %v6602_v16, %v6568_v8  ;;  %v7107_v52 = vperm.slane %v6987_v1, 3  ;;  %v8800_v8 = vld [vmem:[#allocation22_spill] sm:$0xff] }
 0x1a2   : > { %1113 = vmatpush.msrb.mxu0 %v701_v17  ;;  %v1203_v32 = vpop.permute.xlu1 %1202  ;;  %v7074_v36 = vpop.permute.xlu0 %1935  ;;  %5489 = vmatmul.msk.f32.vlgmr.msra.gmra.mxu1 %vm802_vm3, %v7051_v56  ;;  %v1532_v17 = vmul.f32 %v7031_v27, %v1506_v25  ;;  %v8802_v25 = vld [vmem:[#allocation37_spill] sm:$0xff]  ;;  %v7123_v27 = vperm.slane %v6987_v1, 5  ;;  %v1248_v55 = vmul.f32 %v7028_v31, %v1225_v45  ;;  %v1217_v45 = vsel %vm1210_vm5, %v6746_v46, %v6748_v43 }
 0x1a3   : > { %5491 = vmatmul.msk.f32.vlgmr.msra.gmra.mxu2 %vm802_vm3, %v7051_v56  ;;  %1368 = vmatpush.msra.mxu3 %v1251_v10  ;;  %v7082_v38 = vpop.permute.xlu2 %1933  ;;  %v1211_v19 = vsel %vm1210_vm5, %v1203_v32, %v8794_v21  ;;  %v1213_v61 = vsel %vm1210_vm5, %v6758_v33, %v1203_v32  ;;  %8795 = vst [vmem:[#allocation36_spill] sm:$0xff] %v7091_v37  ;;  %v7104_v33 = vperm.slane %v6987_v1, 2  ;;  %v8799_v32 = vld [vmem:[#allocation28_spill] sm:$0xff] }
 0x1a4   : > { %5505 = vmatpush.msk.msra.mxu1 %vm806_vm2, %v1540_v14  ;;  %2503 = vrot.lane.b32.xlu2 %v8796_v22, %s6081_s2  ;;  %v1254_v10 = vmul.f32 %v6953_v28, %v1213_v61  ;;  %v1263_v21 = vmul.f32 %v7058_v13, %v1212_v4  ;;  %8798 = vst [vmem:[#allocation44_spill] sm:$0xff] %v7107_v52  ;;  %v8801_v14 = vld [vmem:[#allocation34_spill] sm:$0xff]  ;;  %v8804_v28 = vld [vmem:[#allocation39_spill] sm:$0xff] }
 0x1a5   : > { %8797 = vst [vmem:[#allocation33_spill] sm:$0xff] %v7104_v33  ;;  %2499 = vrot.lane.b32.xlu1 %v8799_v32, %s6081_s2  ;;  %v1255_v16 = vmul.f32 %v7058_v13, %v1211_v19  ;;  %v1503_v61 = vsel %vm1493_vm6, %v8802_v25, %v8801_v14  ;;  %v1505_v4 = vsel %vm1493_vm6, %v8789_v20, %v8802_v25  ;;  %v8805_v19 = vld [vmem:[#allocation40_spill] sm:$0xff] }
 0x1a6   : > { %2521 = vrot.lane.b32.xlu0 %v8800_v8, %s6081_s2  ;;  %8803 = vst [vmem:[#allocation46_spill] sm:$0xff] %v7123_v27  ;;  %1611 = vmatpush.msra.mxu1 %v1532_v17  ;;  %v1499_v13 = vsel %vm1493_vm6, %v8805_v19, %v8804_v28  ;;  %v1260_v0 = vmul.f32 %v7091_v37, %v1218_v49  ;;  %v7144_v17 = vperm.slane %v6987_v1, 6  ;;  %v8807_v49 = vld [vmem:[#allocation45_spill] sm:$0xff] }
 0x1a7   : > { %5486 = vmatpush.msk.msra.mxu0 %vm806_vm2, %v1256_v51  ;;  %5500 = vmatpush.msk.msrb.mxu3 %vm806_vm2, %v1263_v21  ;;  %v1541_v20 = vmul.f32 %v7104_v33, %v1505_v4  ;;  %v1542_v51 = vmul.f32 %v7107_v52, %v1503_v61  ;;  %v8811_v61 = vld [vmem:[#allocation38_spill] sm:$0xff]  ;;  %v1252_v4 = vmul.f32 %v7091_v37, %v1217_v45 }
 0x1a8   : > { %1428 = vmatpush.msrb.mxu2 %v1254_v10  ;;  %5493 = vmatmul.msk.f32.vlgmr.msra.gmra.mxu3 %vm802_vm3, %v7051_v56  ;;  %8806 = vst [vmem:[#allocation52_spill] sm:$0xff] %v7144_v17  ;;  %v8808_v10 = vld [vmem:[#allocation47_spill] sm:$0xff]  ;;  %v1496_v31 = vsel %vm1493_vm6, %v6938_v34, %v6876_v62 }
 0x1a9   : > { %1308 = vmatpush.msra.mxu0 %v1248_v55  ;;  %1448 = vmatpush.msrb.mxu3 %v1255_v16  ;;  %v1544_v55 = vmul.f32 %v7123_v27, %v1499_v13  ;;  %v1502_v21 = vsel %vm1493_vm6, %v8808_v10, %v8807_v49  ;;  %v1504_v25 = vsel %vm1493_vm6, %v8792_v50, %v8808_v10  ;;  %v7176_v50 = vperm.slane %v6987_v1, 0 }
 0x1aa   : > { %5478 = vmatmul.msk.f32.vlgmr.msrb.gmra.mxu0 %vm802_vm3, %v6921_v3  ;;  %v7158_v43 = vpop.permute.xlu1 %1943  ;;  %v7160_v46 = vpop.permute.xlu0 %1945  ;;  %v8809_v3 = vld [vmem:[#allocation35_spill] sm:$0xff]  ;;  %v1498_v16 = vsel %vm1493_vm6, %v6991_v47, %v6938_v34  ;;  %5497 = vmatmul.msk.f32.vlgmr.msrb.gmra.mxu1 %vm802_vm3, %v7051_v56  ;;  %v1533_v10 = vmul.f32 %v7104_v33, %v1504_v25  ;;  %v7212_v25 = vld [vmem:[%s8627_s3 + $0xc] sm:$0xf] }
 0x1ab   : > { %5494 = vmatpush.msk.msrb.mxu0 %vm806_vm2, %v1260_v0  ;;  %5499 = vmatmul.msk.f32.vlgmr.msrb.gmra.mxu2 %vm802_vm3, %v7051_v56  ;;  %v1497_v13 = vsel %vm1493_vm6, %v8804_v28, %v8809_v3  ;;  %v7173_v0 = vpop.permute.xlu2 %1959  ;;  %8810 = vst [vmem:[#allocation29_spill] sm:$0xff] %v7176_v50  ;;  %v1509_v28 = vsel %vm1493_vm6, %v8811_v61, %v8790_v30  ;;  %v8813_v30 = vld [vmem:[#allocation23_spill] sm:$0xff] }
 0x1ac   : > { %5507 = vmatpush.msk.msra.mxu2 %vm806_vm2, %v1541_v20  ;;  %5509 = vmatpush.msk.msra.mxu3 %vm806_vm2, %v1542_v51  ;;  %v1534_v20 = vmul.f32 %v7107_v52, %v1502_v21  ;;  %v7196_v51 = vperm.slane %v6987_v1, 7  ;;  %v1545_v45 = vmul.f32 %v7144_v17, %v1497_v13  ;;  %v1495_v34 = vsel %vm1493_vm6, %v8809_v3, %v8811_v61 }
 0x1ad   : > { %5513 = vmatpush.msk.msrb.mxu1 %vm806_vm2, %v1544_v55  ;;  %2529 = vrot.lane.b32.xlu2 %v8812_v57, %s6081_s2  ;;  %v1536_v55 = vmul.f32 %v7123_v27, %v1498_v16  ;;  %v1539_v57 = vmul.f32 %v7176_v50, %v1509_v28  ;;  %v1537_v21 = vmul.f32 %v7144_v17, %v1496_v31 }
 0x1ae   : > { %2525 = vrot.lane.b32.xlu1 %v8813_v30, %s6081_s2  ;;  %8814 = vst [vmem:[#allocation28_spill] sm:$0xff] %v7196_v51  ;;  %2519 = vrot.lane.b32.xlu0 %v6544_v2, %s6081_s2  ;;  %v1546_v3 = vmul.f32 %v7196_v51, %v1495_v34  ;;  %v1494_v31 = vsel %vm1493_vm6, %v6876_v62, %v6940_v60  ;;  %v7239_v62 = vperm.slane %v6987_v1, 4  ;;  %v8817_v1 = vld [vmem:[#allocation32_spill] sm:$0xff] }
 0x1af   : > { %1388 = vmatpush.msrb.mxu0 %v1252_v4  ;;  %1631 = vmatpush.msra.mxu2 %v1533_v10  ;;  %v1508_v13 = vsel %vm1493_vm6, %v6940_v60, %v8793_v54  ;;  %v7242_v60 = vld.sshfl [vmem:[#allocation1 + $0x8] sm:$0xff pattern:$0x75316420]  ;;  %v1501_v54 = vsel %vm1493_vm6, %v8801_v14, %v8805_v19  ;;  %v1538_v10 = vmul.f32 %v7196_v51, %v1494_v31 }
 0x1b0   : > { %1651 = vmatpush.msra.mxu3 %v1534_v20  ;;  %1691 = vmatpush.msrb.mxu1 %v1536_v55  ;;  %8815 = vst [vmem:[#allocation22_spill] sm:$0xff] %v7239_v62  ;;  %v1531_v4 = vmul.f32 %v7176_v50, %v1508_v13  ;;  %v8816_v20 = vld [vmem:[#allocation20_spill] sm:$0xff]  ;;  %v1543_v14 = vmul.f32 %v7239_v62, %v1501_v54  ;;  %v5862_v13 = vld.sshfl [vmem:[#allocation1] sm:$0xff pattern:$0x75316420] }
 0x1b1   : > { %5515 = vmatpush.msk.msrb.mxu2 %vm806_vm2, %v1545_v45  ;;  %5501 = vmatmul.msk.f32.vlgmr.msrb.gmra.mxu3 %vm802_vm3, %v7051_v56  ;;  %v1983_v45 = vld [vmem:[#allocation8 + $0x5] ss:$8 sm:$0xf]  ;;  %v1500_v19 = vsel %vm1493_vm6, %v8807_v49, %v6991_v47 }
 0x1b2   : > { %5487 = vmatmul.msk.f32.vlgmr.msra.gmra.mxu0 %vm802_vm3, %v7051_v56  ;;  %v7228_v16 = vpop.permute.xlu1 %1939  ;;  %v7230_v61 = vpop.permute.xlu0 %1937  ;;  %5506 = vmatmul.msk.f32.vlgmr.msra.gmra.mxu1 %vm802_vm3, %v7212_v25  ;;  %v1984_v55 = vld [vmem:[#allocation8 + $0x5] ss:$8 sm:$0xf0]  ;;  %v1535_v49 = vmul.f32 %v7239_v62, %v1500_v19 }
 0x1b3   : > { %1711 = vmatpush.msrb.mxu2 %v1537_v21  ;;  %5503 = vmatpush.msk.msra.mxu0 %vm806_vm2, %v1539_v57  ;;  %v7236_v28 = vpop.permute.xlu2 %1957  ;;  %v5863_v54 = vld.sshfl [vmem:[#allocation1 + $0x38] sm:$0xff pattern:$0x75316420] }
 0x1b4   : > { %5508 = vmatmul.msk.f32.vlgmr.msra.gmra.mxu2 %vm802_vm3, %v7212_v25  ;;  %5517 = vmatpush.msk.msrb.mxu3 %vm806_vm2, %v1546_v3  ;;  %v5861_v3 = vld.sshfl [vmem:[#allocation1 + $0x10] sm:$0xff pattern:$0x75316420] }
 0x1b5   : > { %5522 = vmatpush.msk.msra.mxu1 %vm806_vm2, %v7242_v60  ;;  %5524 = vmatpush.msk.msra.mxu2 %vm806_vm2, %v8816_v20  ;;  %v1974_v20 = vsel %vm1965_vm7, %v7003_v7, %v7160_v46 }
 0x1b6   : > { %2527 = vrot.lane.b32.xlu2 %v6556_v5, %s6081_s2  ;;  %2523 = vrot.lane.b32.xlu1 %v8817_v1, %s6081_s2 }
 0x1b7   : > { %2784 = vrot.lane.b32.xlu0 %v6346_v23, %s6082_s13  ;;  %1591 = vmatpush.msra.mxu0 %v1531_v4  ;;  %v7271_v23 = vor.u32 %v1984_v55, %v1983_v45 }
 0x1b8   : > { %1731 = vmatpush.msrb.mxu3 %v1538_v10  ;;  %1800 = vmatpush.msra.mxu1 %v8796_v22 }
 0x1b9   : > { %1820 = vmatpush.msra.mxu2 %v6512_v59  ;;  %5510 = vmatmul.msk.f32.vlgmr.msra.gmra.mxu3 %vm802_vm3, %v7212_v25  ;;  %v7295_v57 = vperm.slane %v7271_v23, 2  ;;  %v7298_v21 = vperm.slane %v7271_v23, 1  ;;  %v7344_v55 = vperm.slane %v7271_v23, 3 }
 0x1ba   : > { %5495 = vmatmul.msk.f32.vlgmr.msrb.gmra.mxu0 %vm802_vm3, %v7051_v56  ;;  %5526 = vmatpush.msk.msra.mxu3 %vm806_vm2, %v6384_v29  ;;  %v7276_v34 = vpop.permute.xlu1 %1951  ;;  %v7278_v47 = vpop.permute.xlu0 %1963 }
 0x1bb   : > { %5511 = vmatpush.msk.msrb.mxu0 %vm806_vm2, %v1543_v14  ;;  %5514 = vmatmul.msk.f32.vlgmr.msrb.gmra.mxu1 %vm802_vm3, %v7212_v25  ;;  %v7285_v56 = vpop.permute.xlu2 %2226  ;;  %8818 = vst [vmem:[#allocation34_spill] sm:$0xff] %v7295_v57  ;;  %v7347_v14 = vperm.slane %v7271_v23, 6  ;;  %v1973_v19 = vsel %vm1965_vm7, %v6945_v26, %v7276_v34 }
 0x1bc   : > { %5516 = vmatmul.msk.f32.vlgmr.msrb.gmra.mxu2 %vm802_vm3, %v7212_v25  ;;  %5530 = vmatpush.msk.msrb.mxu1 %vm806_vm2, %v8800_v8  ;;  %8819 = vst [vmem:[#allocation37_spill] sm:$0xff] %v7298_v21  ;;  %v1975_v8 = vsel %vm1965_vm7, %v7158_v43, %v6945_v26  ;;  %v2267_v26 = vld [vmem:[#allocation8 + $0x6] ss:$8 sm:$0xf0] }
 0x1bd   : > { %5532 = vmatpush.msk.msrb.mxu2 %vm806_vm2, %v8813_v30  ;;  %1671 = vmatpush.msrb.mxu0 %v1535_v49  ;;  %v7317_v30 = vld [vmem:[%s8627_s3 + $0x10] sm:$0xf]  ;;  %v2013_v31 = vmul.f32 %v7295_v57, %v1975_v8  ;;  %8820 = vst [vmem:[#allocation39_spill] sm:$0xff] %v7344_v55  ;;  %v1967_v49 = vsel %vm1965_vm7, %v7173_v0, %v7278_v47  ;;  %v2266_v8 = vld [vmem:[#allocation8 + $0x6] ss:$8 sm:$0xf] }
 0x1be   : > { %2796 = vrot.lane.b32.xlu2 %v6384_v29, %s6082_s13  ;;  %2792 = vrot.lane.b32.xlu1 %v5861_v3, %s6082_s13  ;;  %v1977_v29 = vsel %vm1965_vm7, %v7228_v16, %v7158_v43  ;;  %8821 = vst [vmem:[#allocation40_spill] sm:$0xff] %v7347_v14  ;;  %v2005_v3 = vmul.f32 %v7295_v57, %v1974_v20 }
 0x1bf   : > { %2794 = vrot.lane.b32.xlu0 %v6510_v58, %s6082_s13  ;;  %1840 = vmatpush.msra.mxu3 %v6510_v58  ;;  %v2012_v43 = vmul.f32 %v7298_v21, %v1977_v29  ;;  %v1976_v58 = vsel %vm1965_vm7, %v7230_v61, %v7003_v7  ;;  %v2014_v29 = vmul.f32 %v7344_v55, %v1973_v19  ;;  %v7401_v19 = vperm.slane %v7271_v23, 0 }
 0x1c0   : > { %1880 = vmatpush.msrb.mxu1 %v6544_v2  ;;  %1900 = vmatpush.msrb.mxu2 %v8817_v1  ;;  %v2004_v7 = vmul.f32 %v7298_v21, %v1976_v58  ;;  %v5864_v58 = vld.sshfl [vmem:[#allocation1 + $0x20] sm:$0xff pattern:$0x75316420] }
 0x1c1   : > { %5518 = vmatmul.msk.f32.vlgmr.msrb.gmra.mxu3 %vm802_vm3, %v7212_v25  ;;  %8823 = vst [vmem:[#allocation47_spill] sm:$0xff] %v7401_v19 }
 0x1c2   : > { %5504 = vmatmul.msk.f32.vlgmr.msra.gmra.mxu0 %vm802_vm3, %v7212_v25  ;;  %5534 = vmatpush.msk.msrb.mxu3 %vm806_vm2, %v5863_v54  ;;  %v7331_v4 = vpop.permute.xlu1 %1949  ;;  %v1962_v10 = vpop.permute.xlu0 %1961 }
 0x1c3   : > { %5520 = vmatpush.msk.msra.mxu0 %vm806_vm2, %v5862_v13  ;;  %5523 = vmatmul.msk.f32.vlgmr.msra.gmra.mxu1 %vm802_vm3, %v7317_v30  ;;  %v7341_v45 = vpop.permute.xlu2 %2222 }
 0x1c4   : > { %5525 = vmatmul.msk.f32.vlgmr.msra.gmra.mxu2 %vm802_vm3, %v7317_v30  ;;  %5539 = vmatpush.msk.msra.mxu1 %vm806_vm2, %v2012_v43  ;;  %v7378_v43 = vor.u32 %v2267_v26, %v2266_v8  ;;  %v1981_v8 = vsel %vm1965_vm7, %v7278_v47, %v7074_v36 }
 0x1c5   : > { %5541 = vmatpush.msk.msra.mxu2 %vm806_vm2, %v2013_v31  ;;  %1780 = vmatpush.msra.mxu0 %v8799_v32  ;;  %v2017_v31 = vmul.f32 %v7347_v14, %v1967_v49  ;;  %v7404_v49 = vperm.slane %v7271_v23, 7 }
 0x1c6   : > { %2790 = vrot.lane.b32.xlu2 %v6512_v59, %s6082_s13  ;;  %2788 = vrot.lane.b32.xlu1 %v7242_v60, %s6082_s13  ;;  %v1972_v59 = vsel %vm1965_vm7, %v7160_v46, %v7331_v4  ;;  %v7376_v60 = vperm.slane %v7271_v23, 5 }
 0x1c7   : > { %2786 = vrot.lane.b32.xlu0 %v8796_v22, %s6082_s13  ;;  %1920 = vmatpush.msrb.mxu3 %v6556_v5  ;;  %v1966_v22 = vsel %vm1965_vm7, %v7236_v28, %v1962_v10  ;;  %v2006_v13 = vmul.f32 %v7344_v55, %v1972_v59  ;;  %8824 = vst [vmem:[#allocation35_spill] sm:$0xff] %v7404_v49  ;;  %v7444_v59 = vld [vmem:[%s8627_s3 + $0x14] sm:$0xf] }
 0x1c8   : > { %2083 = vmatpush.msra.mxu1 %v2004_v7  ;;  %2103 = vmatpush.msra.mxu2 %v2005_v3  ;;  %8822 = vst [vmem:[#allocation45_spill] sm:$0xff] %v7376_v60  ;;  %v2009_v26 = vmul.f32 %v7347_v14, %v1966_v22 }
 0x1c9   : > { %5527 = vmatmul.msk.f32.vlgmr.msra.gmra.mxu3 %vm802_vm3, %v7317_v30 }
 0x1ca   : > { %5512 = vmatmul.msk.f32.vlgmr.msrb.gmra.mxu0 %vm802_vm3, %v7212_v25  ;;  %5543 = vmatpush.msk.msra.mxu3 %vm806_vm2, %v2014_v29  ;;  %v1956_v46 = vpop.permute.xlu1 %1955  ;;  %v7421_v29 = vperm.slane %v7378_v43, 2 }
 0x1cb   : > { %5528 = vmatpush.msk.msrb.mxu0 %vm806_vm2, %v5864_v58  ;;  %v7393_v25 = vpop.permute.xlu2 %2234  ;;  %v1969_v20 = vsel %vm1965_vm7, %v1956_v46, %v7173_v0  ;;  %5531 = vmatmul.msk.f32.vlgmr.msrb.gmra.mxu1 %vm802_vm3, %v7317_v30  ;;  %v1979_v0 = vsel %vm1965_vm7, %v7074_v36, %v7228_v16  ;;  %v1978_v36 = vsel %vm1965_vm7, %v7082_v38, %v7230_v61 }
 0x1cc   : > { %5533 = vmatmul.msk.f32.vlgmr.msrb.gmra.mxu2 %vm802_vm3, %v7317_v30  ;;  %v2231_v7 = vpop.permute.xlu0 %2230  ;;  %v2016_v3 = vmul.f32 %v7376_v60, %v1969_v20  ;;  %2123 = vmatpush.msra.mxu3 %v2006_v13  ;;  %8825 = vst [vmem:[#allocation38_spill] sm:$0xff] %v7421_v29  ;;  %v2011_v47 = vmul.f32 %v7401_v19, %v1979_v0 }
 0x1cd   : > { %5549 = vmatpush.msk.msrb.mxu2 %vm806_vm2, %v2017_v31  ;;  %1860 = vmatpush.msrb.mxu0 %v6532_v63  ;;  %v2258_v16 = vsel %vm2248_vm8, %v7285_v56, %v2231_v7  ;;  %v7439_v31 = vperm.slane %v7378_v43, 1  ;;  %v2256_v13 = vsel %vm2248_vm8, %v2231_v7, %v7393_v25 }
 0x1ce   : > { %2782 = vrot.lane.b32.xlu2 %v8799_v32, %s6082_s13  ;;  %2800 = vrot.lane.b32.xlu1 %v5864_v58, %s6082_s13  ;;  %v1980_v32 = vsel %vm1965_vm7, %v1962_v10, %v7082_v38  ;;  %v2260_v38 = vsel %vm2248_vm8, %v7341_v45, %v7285_v56  ;;  %v2296_v61 = vmul.f32 %v7421_v29, %v2258_v16  ;;  %v7458_v58 = vperm.slane %v7378_v43, 3  ;;  %v5865_v16 = vld.sshfl [vmem:[#allocation1 + $0x30] sm:$0xff pattern:$0x75316420] }
 0x1cf   : > { %2812 = vrot.lane.b32.xlu0 %v5863_v54, %s6082_s13  ;;  %2183 = vmatpush.msrb.mxu2 %v2009_v26  ;;  %v2018_v54 = vmul.f32 %v7404_v49, %v1981_v8  ;;  %8826 = vst [vmem:[#allocation21_spill] sm:$0xff] %v7439_v31  ;;  %v2003_v10 = vmul.f32 %v7401_v19, %v1978_v36  ;;  %v7476_v26 = vperm.slane %v7271_v23, 4 }
 0x1d0   : > { %5547 = vmatpush.msk.msrb.mxu1 %vm806_vm2, %v2016_v3  ;;  %v2010_v22 = vmul.f32 %v7404_v49, %v1980_v32  ;;  %8827 = vst [vmem:[#allocation23_spill] sm:$0xff] %v7458_v58  ;;  %v2295_v8 = vmul.f32 %v7439_v31, %v2260_v38  ;;  %v2297_v36 = vmul.f32 %v7458_v58, %v2256_v13 }
 0x1d1   : > { %5535 = vmatmul.msk.f32.vlgmr.msrb.gmra.mxu3 %vm802_vm3, %v7317_v30  ;;  %8828 = vst [vmem:[#allocation20_spill] sm:$0xff] %v7476_v26 }
 0x1d2   : > { %5521 = vmatmul.msk.f32.vlgmr.msra.gmra.mxu0 %vm802_vm3, %v7317_v30  ;;  %5551 = vmatpush.msk.msrb.mxu3 %vm806_vm2, %v2018_v54  ;;  %v1954_v56 = vpop.permute.xlu1 %1953 }
 0x1d3   : > { %5537 = vmatpush.msk.msra.mxu0 %vm806_vm2, %v2011_v47  ;;  %v7465_v20 = vpop.permute.xlu2 %2232  ;;  %v1968_v3 = vsel %vm1965_vm7, %v1954_v56, %v7236_v28  ;;  %5540 = vmatmul.msk.f32.vlgmr.msra.gmra.mxu1 %vm802_vm3, %v7444_v59  ;;  %v1971_v28 = vsel %vm1965_vm7, %v7276_v34, %v1956_v46  ;;  %v1970_v23 = vsel %vm1965_vm7, %v7331_v4, %v1954_v56  ;;  %v7532_v56 = vld [vmem:[%s8627_s3 + $0x18] sm:$0xf] }
 0x1d4   : > { %v2225_v0 = vpop.permute.xlu0 %2224  ;;  %5542 = vmatmul.msk.f32.vlgmr.msra.gmra.mxu2 %vm802_vm3, %v7444_v59  ;;  %2203 = vmatpush.msrb.mxu3 %v2010_v22  ;;  %v2008_v7 = vmul.f32 %v7376_v60, %v1968_v3  ;;  %v2015_v34 = vmul.f32 %v7476_v26, %v1971_v28  ;;  %v7539_v3 = vperm.slane %v7378_v43, 5  ;;  %v7551_v28 = vperm.slane %v7378_v43, 4 }
 0x1d5   : > { %2063 = vmatpush.msra.mxu0 %v2003_v10  ;;  %5558 = vmatpush.msk.msra.mxu2 %vm806_vm2, %v2296_v61 }
 0x1d6   : > { %2808 = vrot.lane.b32.xlu2 %v5865_v16, %s6082_s13  ;;  %2798 = vrot.lane.b32.xlu1 %v6532_v63, %s6082_s13  ;;  %v2007_v63 = vmul.f32 %v7476_v26, %v1970_v23  ;;  %8830 = vst [vmem:[#allocation65_spill] sm:$0xff] %v7539_v3 }
 0x1d7   : > { %2810 = vrot.lane.b32.xlu0 %v6556_v5, %s6082_s13  ;;  %2163 = vmatpush.msrb.mxu1 %v2008_v7  ;;  %v7501_v5 = vperm.slane %v7378_v43, 0  ;;  %8831 = vst [vmem:[#allocation66_spill] sm:$0xff] %v7551_v28 }
 0x1d9   : > { %5556 = vmatpush.msk.msra.mxu1 %vm806_vm2, %v2295_v8  ;;  %5544 = vmatmul.msk.f32.vlgmr.msra.gmra.mxu3 %vm802_vm3, %v7444_v59  ;;  %8829 = vst [vmem:[#allocation32_spill] sm:$0xff] %v7501_v5 }
 0x1da   : > { %5529 = vmatmul.msk.f32.vlgmr.msrb.gmra.mxu0 %vm802_vm3, %v7317_v30  ;;  %v2219_v46 = vpop.permute.xlu1 %2218  ;;  %5560 = vmatpush.msk.msra.mxu3 %vm806_vm2, %v2297_v36  ;;  %v5866_v30 = vld.sshfl [vmem:[#allocation1 + $0x28] sm:$0xff pattern:$0x75316420] }
 0x1db   : > { %5545 = vmatpush.msk.msrb.mxu0 %vm806_vm2, %v2015_v34  ;;  %v2239_v4 = vpop.permute.xlu2 %2238  ;;  %v2262_v32 = vsel %vm2248_vm8, %v2219_v46, %v7341_v45  ;;  %5548 = vmatmul.msk.f32.vlgmr.msrb.gmra.mxu1 %vm802_vm3, %v7444_v59 }
 0x1dc   : > { %v7507_v47 = vpop.permute.xlu0 %2216  ;;  %5550 = vmatmul.msk.f32.vlgmr.msrb.gmra.mxu2 %vm802_vm3, %v7444_v59  ;;  %v2294_v54 = vmul.f32 %v7501_v5, %v2262_v32 }
 0x1dd   : > { %2143 = vmatpush.msrb.mxu0 %v2007_v63 }
 0x1de   : > { %2806 = vrot.lane.b32.xlu2 %v8817_v1, %s6082_s13  ;;  %2804 = vrot.lane.b32.xlu1 %v5866_v30, %s6082_s13 }
 0x1e1   : > { %5552 = vmatmul.msk.f32.vlgmr.msrb.gmra.mxu3 %vm802_vm3, %v7444_v59 }
 0x1e2   : > { %5538 = vmatmul.msk.f32.vlgmr.msra.gmra.mxu0 %vm802_vm3, %v7444_v59  ;;  %v2229_v45 = vpop.permute.xlu1 %2228 }
 0x1e3   : > { %5554 = vmatpush.msk.msra.mxu0 %vm806_vm2, %v2294_v54  ;;  %v2255_v38 = vsel %vm2248_vm8, %v2229_v45, %v7465_v20  ;;  %v2257_v1 = vsel %vm2248_vm8, %v2225_v0, %v2229_v45  ;;  %v7579_v45 = vperm.slane %v7378_v43, 7 }
 0x1e4   : > { %v2243_v61 = vpop.permute.xlu0 %2242  ;;  %v2288_v10 = vmul.f32 %v7421_v29, %v2257_v1  ;;  %v2289_v22 = vmul.f32 %v7458_v58, %v2255_v38 }
 0x1e5   : > { %v2237_v13 = vpop.permute.xlu2 %2236  ;;  %v2252_v8 = vsel %vm2248_vm8, %v2239_v4, %v2243_v61  ;;  %8833 = vst [vmem:[#allocation68_spill] sm:$0xff] %v7579_v45 }
 0x1e6   : > { %2802 = vrot.lane.b32.xlu1 %v6544_v2, %s6082_s13  ;;  %2386 = vmatpush.msra.mxu2 %v2288_v10  ;;  %v2254_v2 = vsel %vm2248_vm8, %v7393_v25, %v2239_v4  ;;  %v2253_v4 = vsel %vm2248_vm8, %v7465_v20, %v2237_v13  ;;  %v7576_v20 = vperm.slane %v7378_v43, 6  ;;  %v2550_v43 = vld [vmem:[#allocation8 + $0x7] ss:$8 sm:$0xf0] }
 0x1e7   : > { %2406 = vmatpush.msra.mxu3 %v2289_v22  ;;  %5559 = vmatmul.msk.f32.vlgmr.msra.gmra.mxu2 %vm802_vm3, %v7532_v56  ;;  %v2298_v25 = vmul.f32 %v7551_v28, %v2254_v2  ;;  %v2290_v30 = vmul.f32 %v7551_v28, %v2253_v4  ;;  %v2549_v2 = vld [vmem:[#allocation8 + $0x7] ss:$8 sm:$0xf] }
 0x1e8   : > { %8832 = vst [vmem:[#allocation67_spill] sm:$0xff] %v7576_v20 }
 0x1e9   : > { %5561 = vmatmul.msk.f32.vlgmr.msra.gmra.mxu3 %vm802_vm3, %v7532_v56 }
 0x1ea   : > { %5546 = vmatmul.msk.f32.vlgmr.msrb.gmra.mxu0 %vm802_vm3, %v7444_v59  ;;  %v2221_v7 = vpop.permute.xlu1 %2220  ;;  %v2299_v59 = vmul.f32 %v7539_v3, %v2252_v8 }
 0x1eb   : > { %v2259_v16 = vsel %vm2248_vm8, %v2221_v7, %v2225_v0  ;;  %v2261_v36 = vsel %vm2248_vm8, %v7507_v47, %v2221_v7 }
 0x1ec   : > { %v2241_v23 = vpop.permute.xlu0 %2240  ;;  %v2286_v34 = vmul.f32 %v7501_v5, %v2261_v36  ;;  %v2287_v63 = vmul.f32 %v7439_v31, %v2259_v16  ;;  %v7593_v16 = vor.u32 %v2550_v43, %v2549_v2 }
 0x1ed   : > { %v2251_v0 = vsel %vm2248_vm8, %v2237_v13, %v2241_v23 }
 0x1ee   : > { %v7567_v32 = vpop.permute.xlu2 %2501  ;;  %2346 = vmatpush.msra.mxu0 %v2286_v34  ;;  %2366 = vmatpush.msra.mxu1 %v2287_v63  ;;  %v2291_v54 = vmul.f32 %v7539_v3, %v2251_v0 }
 0x1ef   : > { %5557 = vmatmul.msk.f32.vlgmr.msra.gmra.mxu1 %vm802_vm3, %v7532_v56 }
 0x1f0   : > { %5562 = vmatpush.msk.msrb.mxu0 %vm806_vm2, %v2298_v25  ;;  %5564 = vmatpush.msk.msrb.mxu1 %vm806_vm2, %v2299_v59 }
 0x1f2   : > { %5555 = vmatmul.msk.f32.vlgmr.msra.gmra.mxu0 %vm802_vm3, %v7532_v56  ;;  %2446 = vmatpush.msrb.mxu1 %v2291_v54  ;;  %v2247_v38 = vpop.permute.xlu1 %2246 }
 0x1f3   : > { %2426 = vmatpush.msrb.mxu0 %v2290_v30  ;;  %v2250_v1 = vsel %vm2248_vm8, %v2243_v61, %v2247_v38  ;;  %v2264_v10 = vsel %vm2248_vm8, %v2247_v38, %v2219_v46  ;;  %v7599_v46 = vperm.slane %v7593_v16, 0  ;;  %v7602_v61 = vperm.slane %v7593_v16, 1 }
 0x1f4   : > { %v2300_v22 = vmul.f32 %v7576_v20, %v2250_v1  ;;  %v2301_v13 = vmul.f32 %v7579_v45, %v2264_v10  ;;  %v2510_v8 = vpop.permute.xlu0 %2509  ;;  %v7628_v1 = vperm.slane %v7593_v16, 3 }
 0x1f5   : > { %8834 = vst [vmem:[#allocation69_spill] sm:$0xff] %v7599_v46 }
 0x1f6   : > { %5566 = vmatpush.msk.msrb.mxu2 %vm806_vm2, %v2300_v22  ;;  %5568 = vmatpush.msk.msrb.mxu3 %vm806_vm2, %v2301_v13  ;;  %v2512_v7 = vpop.permute.xlu2 %2511  ;;  %8835 = vst [vmem:[#allocation70_spill] sm:$0xff] %v7602_v61 }
 0x1f7   : > { %5565 = vmatmul.msk.f32.vlgmr.msrb.gmra.mxu1 %vm802_vm3, %v7532_v56  ;;  %8837 = vst [vmem:[#allocation72_spill] sm:$0xff] %v7628_v1 }
 0x1fa   : > { %5563 = vmatmul.msk.f32.vlgmr.msrb.gmra.mxu0 %vm802_vm3, %v7532_v56 }
 0x1fd   : > { %v2245_v36 = vpop.permute.xlu1 %2244 }
 0x1fe   : > { %v2249_v59 = vsel %vm2248_vm8, %v2241_v23, %v2245_v36  ;;  %v2263_v34 = vsel %vm2248_vm8, %v2245_v36, %v7507_v47  ;;  %v2506_v63 = vpop.permute.xlu0 %2505  ;;  %v2504_v38 = vpop.permute.xlu2 %2503  ;;  %v7625_v47 = vperm.slane %v7593_v16, 2 }
 0x1ff   : > { %v2292_v25 = vmul.f32 %v7576_v20, %v2249_v59  ;;  %v2293_v4 = vmul.f32 %v7579_v45, %v2263_v34  ;;  %v2543_v0 = vsel %vm2531_vm9, %v2506_v63, %v2510_v8  ;;  %v2545_v30 = vsel %vm2531_vm9, %v7567_v32, %v2506_v63 }
 0x200   : > { %v2577_v54 = vmul.f32 %v7599_v46, %v2545_v30  ;;  %v2578_v23 = vmul.f32 %v7602_v61, %v2543_v0  ;;  %8836 = vst [vmem:[#allocation71_spill] sm:$0xff] %v7625_v47  ;;  %v7639_v34 = vperm.slane %v7593_v16, 7 }
 0x201   : > { %2466 = vmatpush.msrb.mxu2 %v2292_v25  ;;  %2486 = vmatpush.msrb.mxu3 %v2293_v4 }
 0x202   : > { %5567 = vmatmul.msk.f32.vlgmr.msrb.gmra.mxu2 %vm802_vm3, %v7532_v56  ;;  %5569 = vmatmul.msk.f32.vlgmr.msrb.gmra.mxu3 %vm802_vm3, %v7532_v56  ;;  %8838 = vst [vmem:[#allocation73_spill] sm:$0xff] %v7639_v34 }
 0x203   : > { %5573 = vmatpush.msk.msra.mxu1 %vm806_vm2, %v2578_v23  ;;  %5571 = vmatpush.msk.msra.mxu0 %vm806_vm2, %v2577_v54  ;;  %v5570_v23 = vld [vmem:[%s8627_s3 + $0x1c] sm:$0xf] }
 0x207   : > { %v2514_v10 = vpop.permute.xlu1 %2513  ;;  %v2530_v36 = vpop.permute.xlu2 %2529 }
 0x208   : > { %v2541_v22 = vsel %vm2531_vm9, %v2510_v8, %v2514_v10  ;;  %v2518_v13 = vpop.permute.xlu0 %2517  ;;  %v2547_v4 = vsel %vm2531_vm9, %v2530_v36, %v7567_v32 }
 0x209   : > { %v2579_v2 = vmul.f32 %v7625_v47, %v2541_v22  ;;  %v2539_v56 = vsel %vm2531_vm9, %v2514_v10, %v2518_v13  ;;  %v2584_v22 = vmul.f32 %v7639_v34, %v2547_v4 }
 0x20a   : > { %v2580_v43 = vmul.f32 %v7628_v1, %v2539_v56 }
 0x20b   : > { %5575 = vmatpush.msk.msra.mxu2 %vm806_vm2, %v2579_v2 }
 0x20c   : > { %5577 = vmatpush.msk.msra.mxu3 %vm806_vm2, %v2580_v43 }
 0x20f   : > { %v2508_v59 = vpop.permute.xlu1 %2507 }
 0x210   : > { %v2540_v8 = vsel %vm2531_vm9, %v2508_v59, %v2512_v7  ;;  %v2542_v63 = vsel %vm2531_vm9, %v2504_v38, %v2508_v59  ;;  %v2516_v25 = vpop.permute.xlu0 %2515  ;;  %v2528_v32 = vpop.permute.xlu2 %2527 }
 0x211   : > { %v2570_v0 = vmul.f32 %v7602_v61, %v2542_v63  ;;  %v2571_v30 = vmul.f32 %v7625_v47, %v2540_v8  ;;  %v2538_v54 = vsel %vm2531_vm9, %v2512_v7, %v2516_v25  ;;  %v7662_v7 = vperm.slane %v7593_v16, 4 }
 0x212   : > { %v2572_v10 = vmul.f32 %v7628_v1, %v2538_v54 }
 0x213   : > { %2649 = vmatpush.msra.mxu1 %v2570_v0  ;;  %2669 = vmatpush.msra.mxu2 %v2571_v30  ;;  %8839 = vst [vmem:[#allocation74_spill] sm:$0xff] %v7662_v7  ;;  %v7680_v30 = vperm.slane %v7593_v16, 6 }
 0x214   : > { %2689 = vmatpush.msra.mxu3 %v2572_v10  ;;  %5574 = vmatmul.msk.f32.vlgmr.msra.gmra.mxu1 %vm802_vm3, %v5570_v23 }
 0x215   : > { %5576 = vmatmul.msk.f32.vlgmr.msra.gmra.mxu2 %vm802_vm3, %v5570_v23  ;;  %5578 = vmatmul.msk.f32.vlgmr.msra.gmra.mxu3 %vm802_vm3, %v5570_v23  ;;  %8841 = vst [vmem:[#allocation76_spill] sm:$0xff] %v7680_v30 }
 0x216   : > { %5585 = vmatpush.msk.msrb.mxu3 %vm806_vm2, %v2584_v22 }
 0x217   : > { %v2500_v2 = vpop.permute.xlu1 %2499 }
 0x218   : > { %v2544_v56 = vsel %vm2531_vm9, %v2500_v2, %v2504_v38  ;;  %v2546_v43 = vsel %vm2531_vm9, %v2528_v32, %v2500_v2  ;;  %v2522_v59 = vpop.permute.xlu0 %2521  ;;  %v7677_v38 = vperm.slane %v7593_v16, 5  ;;  %v7682_v54 = vpop.permute.xlu2 %2796 }
 0x219   : > { %v2569_v8 = vmul.f32 %v7599_v46, %v2544_v56  ;;  %v2576_v63 = vmul.f32 %v7639_v34, %v2546_v43  ;;  %v2537_v4 = vsel %vm2531_vm9, %v2518_v13, %v2522_v59 }
 0x21a   : > { %v2581_v0 = vmul.f32 %v7662_v7, %v2537_v4  ;;  %8840 = vst [vmem:[#allocation75_spill] sm:$0xff] %v7677_v38 }
 0x21b   : > { %2629 = vmatpush.msra.mxu0 %v2569_v8  ;;  %2769 = vmatpush.msrb.mxu3 %v2576_v63  ;;  %v2833_v63 = vld [vmem:[#allocation8 + $0x40] ss:$8 sm:$0xf0] }
 0x21c   : > { %5572 = vmatmul.msk.f32.vlgmr.msra.gmra.mxu0 %vm802_vm3, %v5570_v23 }
 0x21d   : > { %5579 = vmatpush.msk.msrb.mxu0 %vm806_vm2, %v2581_v0  ;;  %5586 = vmatmul.msk.f32.vlgmr.msrb.gmra.mxu3 %vm802_vm3, %v5570_v23 }
 0x220   : > { %v2526_v10 = vpop.permute.xlu1 %2525  ;;  %v2520_v2 = vpop.permute.xlu0 %2519 }
 0x221   : > { %v2533_v13 = vsel %vm2531_vm9, %v2526_v10, %v2530_v36  ;;  %v2535_v22 = vsel %vm2531_vm9, %v2522_v59, %v2526_v10  ;;  %v2536_v8 = vsel %vm2531_vm9, %v2516_v25, %v2520_v2  ;;  %v2832_v36 = vld [vmem:[#allocation8 + $0x40] ss:$8 sm:$0xf]  ;;  %v2791_v0 = vpop.permute.xlu2 %2790 }
 0x222   : > { %v2582_v56 = vmul.f32 %v7677_v38, %v2535_v22  ;;  %v2583_v43 = vmul.f32 %v7680_v30, %v2533_v13  ;;  %v2573_v16 = vmul.f32 %v7662_v7, %v2536_v8 }
 0x224   : > { %5581 = vmatpush.msk.msrb.mxu1 %vm806_vm2, %v2582_v56  ;;  %5583 = vmatpush.msk.msrb.mxu2 %vm806_vm2, %v2583_v43  ;;  %v7704_v56 = vor.u32 %v2833_v63, %v2832_v36  ;;  %v7706_v43 = vpop.f32.mrf.mxu0  ;;  %v7719_v63 = vpop.f32.mrf.mxu1 }
 0x225   : > { %2709 = vmatpush.msrb.mxu0 %v2573_v16 }
 0x226   : > { %5580 = vmatmul.msk.f32.vlgmr.msrb.gmra.mxu0 %vm802_vm3, %v5570_v23 }
 0x228   : > { %v2524_v59 = vpop.permute.xlu1 %2523 }
 0x229   : > { %v7696_v4 = vpop.permute.xlu0 %2784  ;;  %v2532_v10 = vsel %vm2531_vm9, %v2524_v59, %v2528_v32  ;;  %v2534_v25 = vsel %vm2531_vm9, %v2520_v2, %v2524_v59  ;;  %v7712_v32 = vperm.slane %v7704_v56, 2 }
 0x22a   : > { %v2574_v13 = vmul.f32 %v7677_v38, %v2534_v25  ;;  %v2575_v22 = vmul.f32 %v7680_v30, %v2532_v10  ;;  %v2783_v10 = vpop.permute.xlu2 %2782  ;;  %v7727_v25 = vld [vmem:[%s8627_s3 + $0x20] sm:$0xf]  ;;  %v7735_v30 = vperm.slane %v7704_v56, 1 }
 0x22b   : > { %8842 = vst [vmem:[#allocation77_spill] sm:$0xff] %v7712_v32 }
 0x22c   : > { %2729 = vmatpush.msrb.mxu1 %v2574_v13  ;;  %2749 = vmatpush.msrb.mxu2 %v2575_v22  ;;  %v7729_v13 = vpop.f32.mrf.mxu3  ;;  %v7732_v22 = vperm.slane %v7704_v56, 0  ;;  %8844 = vst [vmem:[#allocation79_spill] sm:$0xff] %v7735_v30  ;;  %v7754_v3 = vpop.f32.mrf.mxu1 }
 0x22d   : > { %5582 = vmatmul.msk.f32.vlgmr.msrb.gmra.mxu1 %vm802_vm3, %v5570_v23  ;;  %5584 = vmatmul.msk.f32.vlgmr.msrb.gmra.mxu2 %vm802_vm3, %v5570_v23 }
 0x22e   : > { %8843 = vst [vmem:[#allocation78_spill] sm:$0xff] %v7732_v22 }
 0x230   : > { %v2793_v2 = vpop.permute.xlu1 %2792 }
 0x231   : > { %v2795_v8 = vpop.permute.xlu0 %2794  ;;  %v2824_v16 = vsel %vm2814_vm10, %v2793_v2, %v7682_v54 }
 0x232   : > { %v2823_v36 = vsel %vm2814_vm10, %v2791_v0, %v2795_v8  ;;  %v2862_v59 = vmul.f32 %v7712_v32, %v2824_v16  ;;  %v7737_v16 = vpop.f32.mrf.mxu0 }
 0x233   : > { %v2854_v23 = vmul.f32 %v7712_v32, %v2823_v36  ;;  %v7741_v32 = vpop.f32.mrf.mxu2 }
 0x234   : > { %5592 = vmatpush.msk.msra.mxu2 %vm806_vm2, %v2862_v59 }
 0x236   : > { %2952 = vmatpush.msra.mxu2 %v2854_v23 }
 0x237   : > { %5593 = vmatmul.msk.f32.vlgmr.msra.gmra.mxu2 %vm802_vm3, %v7727_v25 }
 0x238   : > { %v2789_v36 = vpop.permute.xlu1 %2788 }
 0x239   : > { %v2787_v59 = vpop.permute.xlu0 %2786  ;;  %v2826_v38 = vsel %vm2814_vm10, %v2789_v36, %v2793_v2  ;;  %v2828_v23 = vsel %vm2814_vm10, %v7696_v4, %v2789_v36  ;;  %v2809_v36 = vpop.permute.xlu2 %2808 }
 0x23a   : > { %v2825_v7 = vsel %vm2814_vm10, %v2787_v59, %v2791_v0  ;;  %v2827_v34 = vsel %vm2814_vm10, %v2783_v10, %v2787_v59  ;;  %v2860_v46 = vmul.f32 %v7732_v22, %v2828_v23  ;;  %v2861_v61 = vmul.f32 %v7735_v30, %v2826_v38  ;;  %v3065_v38 = vld [vmem:[%s8628_s4] sm:$0xf] }
 0x23b   : > { %v2852_v28 = vmul.f32 %v7732_v22, %v2827_v34  ;;  %v2853_v2 = vmul.f32 %v7735_v30, %v2825_v7  ;;  %v7761_v0 = vperm.slane %v7704_v56, 3  ;;  %v7764_v59 = vperm.slane %v7704_v56, 6  ;;  %v7769_v34 = vpop.f32.mrf.mxu3  ;;  %v7784_v1 = vpop.f32.mrf.mxu2 }
 0x23c   : > { %5588 = vmatpush.msk.msra.mxu0 %vm806_vm2, %v2860_v46  ;;  %5590 = vmatpush.msk.msra.mxu1 %vm806_vm2, %v2861_v61  ;;  %v6083_v61 = vmov 0  }
 0x23d   : > { %8845 = vst [vmem:[#allocation80_spill] sm:$0xff] %v7761_v0  ;;  %5852 = vset.pattern.permute.xlu2 %v6083_v61  ;;  %5853 = vset.pattern.permute.xlu0 %v6083_v61  ;;  %v7788_v61 = vpop.f32.mrf.mxu1 }
 0x23e   : > { %2912 = vmatpush.msra.mxu0 %v2852_v28  ;;  %2932 = vmatpush.msra.mxu1 %v2853_v2  ;;  %8846 = vst [vmem:[#allocation81_spill] sm:$0xff] %v7764_v59  ;;  %v7780_v2 = vpop.f32.mrf.mxu0  ;;  %v1056_v12 = vadd.f32 %v7788_v61, %v7719_v63 }
 0x23f   : > { %5589 = vmatmul.msk.f32.vlgmr.msra.gmra.mxu0 %vm802_vm3, %v7727_v25  ;;  %5591 = vmatmul.msk.f32.vlgmr.msra.gmra.mxu1 %vm802_vm3, %v7727_v25  ;;  %v1036_v48 = vadd.f32 %v7780_v2, %v7706_v43 }
 0x240   : > { %v2801_v28 = vpop.permute.xlu1 %2800  ;;  %3068 = vperm.xlu2 %5852, %v3065_v38  }
 0x241   : > { %v2813_v46 = vpop.permute.xlu0 %2812  ;;  %v2822_v7 = vsel %vm2814_vm10, %v7682_v54, %v2801_v28  ;;  %v2807_v47 = vpop.permute.xlu2 %2806  ;;  %v7791_v54 = vperm.slane %v7704_v56, 7 }
 0x242   : > { %v2816_v23 = vsel %vm2814_vm10, %v2809_v36, %v2813_v46  ;;  %v2863_v30 = vmul.f32 %v7761_v0, %v2822_v7  ;;  %v2830_v7 = vsel %vm2814_vm10, %v2813_v46, %v7696_v4  ;;  %v7821_v46 = vperm.slane %v7704_v56, 5 }
 0x243   : > { %v2866_v22 = vmul.f32 %v7764_v59, %v2816_v23  ;;  %8847 = vst [vmem:[#allocation82_spill] sm:$0xff] %v7791_v54  ;;  %v7800_v58 = vpop.f32.mrf.mxu3  ;;  %v2867_v5 = vmul.f32 %v7791_v54, %v2830_v7  ;;  %v7809_v4 = vpop.f32.mrf.mxu2 }
 0x244   : > { %5594 = vmatpush.msk.msra.mxu3 %vm806_vm2, %v2863_v30  ;;  %8849 = vst [vmem:[#allocation84_spill] sm:$0xff] %v7821_v46  ;;  %v1076_v41 = vadd.f32 %v7809_v4, %v7741_v32  ;;  %v1096_v53 = vadd.f32 %v7800_v58, %v7729_v13 }
 0x245   : > { %5600 = vmatpush.msk.msrb.mxu2 %vm806_vm2, %v2866_v22 }
 0x246   : > { %v7806_v31 = vpop.f32.mrf.mxu0 }
 0x248   : > { %v2799_v45 = vpop.permute.xlu1 %2798 }
 0x249   : > { %v2811_v38 = vpop.permute.xlu0 %2810  ;;  %v2821_v23 = vsel %vm2814_vm10, %v2795_v8, %v2799_v45 }
 0x24a   : > { %v2815_v30 = vsel %vm2814_vm10, %v2807_v47, %v2811_v38  ;;  %v2855_v22 = vmul.f32 %v7761_v0, %v2821_v23  ;;  %v2829_v29 = vsel %vm2814_vm10, %v2811_v38, %v2783_v10  ;;  %v7818_v10 = vperm.slane %v7704_v56, 4  ;;  %v7823_v38 = vpop.f32.mrf.mxu1 }
 0x24b   : > { %v2858_v20 = vmul.f32 %v7764_v59, %v2815_v30  ;;  %v2859_v8 = vmul.f32 %v7791_v54, %v2829_v29  ;;  %v7831_v30 = vpop.f32.mrf.mxu3 }
 0x24c   : > { %2972 = vmatpush.msra.mxu3 %v2855_v22  ;;  %8848 = vst [vmem:[#allocation83_spill] sm:$0xff] %v7818_v10  ;;  %v7837_v22 = vpop.f32.mrf.mxu2 }
 0x24d   : > { %3032 = vmatpush.msrb.mxu2 %v2858_v20  ;;  %5595 = vmatmul.msk.f32.vlgmr.msra.gmra.mxu3 %vm802_vm3, %v7727_v25  ;;  %v1156_v32 = vadd.f32 %v7837_v22, %v7784_v1 }
 0x24e   : > { %5601 = vmatmul.msk.f32.vlgmr.msrb.gmra.mxu2 %vm802_vm3, %v7727_v25  ;;  %5602 = vmatpush.msk.msrb.mxu3 %vm806_vm2, %v2867_v5  ;;  %v1310_v56 = vpop.f32.mrf.mxu0 }
 0x24f   : > { %v1453_v35 = vadd.f32 %v1310_v56, %v1036_v48 }
 0x250   : > { %3052 = vmatpush.msrb.mxu3 %v2859_v8  ;;  %v2805_v20 = vpop.permute.xlu1 %2804 }
 0x251   : > { %v2818_v7 = vsel %vm2814_vm10, %v2805_v20, %v2809_v36  ;;  %v2820_v23 = vsel %vm2814_vm10, %v2801_v28, %v2805_v20 }
 0x252   : > { %v2864_v29 = vmul.f32 %v7818_v10, %v2820_v23  ;;  %v2865_v5 = vmul.f32 %v7821_v46, %v2818_v7  ;;  %v1330_v20 = vpop.f32.mrf.mxu1 }
 0x253   : > { %v1454_v15 = vadd.f32 %v1330_v20, %v1056_v12  ;;  %v1136_v12 = vadd.f32 %v7823_v38, %v7754_v3 }
 0x254   : > { %5596 = vmatpush.msk.msrb.mxu0 %vm806_vm2, %v2864_v29  ;;  %5598 = vmatpush.msk.msrb.mxu1 %vm806_vm2, %v2865_v5  ;;  %v1370_v29 = vpop.f32.mrf.mxu3 }
 0x255   : > { %5603 = vmatmul.msk.f32.vlgmr.msrb.gmra.mxu3 %vm802_vm3, %v7727_v25  ;;  %v1456_v63 = vadd.f32 %v1370_v29, %v1096_v53 }
 0x256   : > { %v7849_v5 = vpop.f32.mrf.mxu0 }
 0x258   : > { %v2803_v36 = vpop.permute.xlu1 %2802 }
 0x259   : > { %v2817_v28 = vsel %vm2814_vm10, %v2803_v36, %v2807_v47  ;;  %v2819_v8 = vsel %vm2814_vm10, %v2799_v45, %v2803_v36  ;;  %v1350_v47 = vpop.f32.mrf.mxu2 }
 0x25a   : > { %v2856_v7 = vmul.f32 %v7818_v10, %v2819_v8  ;;  %v2857_v23 = vmul.f32 %v7821_v46, %v2817_v28  ;;  %v1410_v54 = vpop.f32.mrf.mxu1 }
 0x25b   : > { %v1458_v4 = vadd.f32 %v1410_v54, %v1136_v12 }
 0x25c   : > { %2992 = vmatpush.msrb.mxu0 %v2856_v7  ;;  %3012 = vmatpush.msrb.mxu1 %v2857_v23  ;;  %v7851_v59 = vpop.f32.mrf.mxu3 }
 0x25d   : > { %5597 = vmatmul.msk.f32.vlgmr.msrb.gmra.mxu0 %vm802_vm3, %v7727_v25  ;;  %5599 = vmatmul.msk.f32.vlgmr.msrb.gmra.mxu1 %vm802_vm3, %v7727_v25 }
 0x25e   : > { %v1593_v45 = vpop.f32.mrf.mxu0 }
 0x25f   : > { %v1736_v61 = vadd.f32 %v1593_v45, %v1453_v35  ;;  %v1116_v35 = vadd.f32 %v7806_v31, %v7737_v16 }
 0x261   : > { %v1430_v36 = vpop.f32.mrf.mxu2  ;;  %v1457_v22 = vadd.f32 %v7849_v5, %v1116_v35 }
 0x262   : > { %v1613_v8 = vpop.f32.mrf.mxu1  ;;  %v1459_v56 = vadd.f32 %v1430_v36, %v1156_v32 }
 0x264   : > { %v1653_v10 = vpop.f32.mrf.mxu3 }
 0x265   : > { %v1739_v58 = vadd.f32 %v1653_v10, %v1456_v63 }
 0x266   : > { %v7853_v28 = vpop.f32.mrf.mxu0 }
 0x269   : > { %v1633_v7 = vpop.f32.mrf.mxu2 }
 0x26a   : > { %v7855_v23 = vpop.f32.mrf.mxu1 }
 0x26b   : > { %v1741_v31 = vadd.f32 %v7855_v23, %v1458_v4 }
 0x26c   : > { %v7857_v46 = vpop.f32.mrf.mxu3 }
 0x26e   : > { %v1782_v0 = vpop.f32.mrf.mxu0 }
 0x26f   : > { %v1925_v48 = vadd.f32 %v1782_v0, %v1736_v61 }
 0x271   : > { %v7859_v25 = vpop.f32.mrf.mxu2 }
 0x272   : > { %v1802_v49 = vpop.f32.mrf.mxu1 }
 0x274   : > { %v1842_v14 = vpop.f32.mrf.mxu3 }
 0x275   : > { %v1928_v3 = vadd.f32 %v1842_v14, %v1739_v58 }
 0x276   : > { %v7861_v60 = vpop.f32.mrf.mxu0 }
 0x279   : > { %v1822_v26 = vpop.f32.mrf.mxu2 }
 0x27a   : > { %v7863_v21 = vpop.f32.mrf.mxu1 }
 0x27b   : > { %v1930_v29 = vadd.f32 %v7863_v21, %v1741_v31 }
 0x27c   : > { %v7865_v19 = vpop.f32.mrf.mxu3 }
 0x27e   : > { %v2065_v57 = vpop.f32.mrf.mxu0 }
 0x281   : > { %v7867_v55 = vpop.f32.mrf.mxu2 }
 0x282   : > { %v2085_v17 = vpop.f32.mrf.mxu1 }
 0x284   : > { %v2125_v27 = vpop.f32.mrf.mxu3 }
 0x285   : > { %v2211_v16 = vadd.f32 %v2125_v27, %v1928_v3 }
 0x286   : > { %v7869_v62 = vpop.f32.mrf.mxu0 }
 0x287   : > { %8850 = vst [vmem:[#allocation85_spill] sm:$0xff] %v7869_v62 }
 0x289   : > { %v2105_v50 = vpop.f32.mrf.mxu2 }
 0x28a   : > { %v7871_v37 = vpop.f32.mrf.mxu1 }
 0x28c   : > { %v7873_v51 = vpop.f32.mrf.mxu3 }
 0x28d   : > { %8851 = vst [vmem:[#allocation86_spill] sm:$0xff] %v7873_v51  ;;  %v1455_v51 = vadd.f32 %v1350_v47, %v1076_v41  ;;  %v2208_v41 = vadd.f32 %v2065_v57, %v1925_v48  ;;  %v1742_v57 = vadd.f32 %v7859_v25, %v1459_v56 }
 0x28e   : > { %v2348_v52 = vpop.f32.mrf.mxu0 }
 0x28f   : > { %v1738_v2 = vadd.f32 %v1633_v7, %v1455_v51  ;;  %v2491_v51 = vadd.f32 %v2348_v52, %v2208_v41  ;;  %v1931_v47 = vadd.f32 %v7867_v55, %v1742_v57  ;;  %v8856_v7 = vld [vmem:[#allocation85_spill] sm:$0xff] }
 0x291   : > { %v7875_v33 = vpop.f32.mrf.mxu2 }
 0x292   : > { %v2368_v39 = vpop.f32.mrf.mxu1 }
 0x294   : > { %v2408_v18 = vpop.f32.mrf.mxu3  ;;  %v8857_v55 = vld [vmem:[#allocation86_spill] sm:$0xff] }
 0x296   : > { %v7877_v9 = vpop.f32.mrf.mxu0 }
 0x297   : > { %8852 = vst [vmem:[#allocation87_spill] sm:$0xff] %v7877_v9 }
 0x299   : > { %v2388_v11 = vpop.f32.mrf.mxu2 }
 0x29a   : > { %v7879_v44 = vpop.f32.mrf.mxu1 }
 0x29b   : > { %8853 = vst [vmem:[#allocation88_spill] sm:$0xff] %v7879_v44 }
 0x29c   : > { %v7881_v6 = vpop.f32.mrf.mxu3 }
 0x29d   : > { %8854 = vst [vmem:[#allocation89_spill] sm:$0xff] %v7881_v6  ;;  %v1737_v6 = vadd.f32 %v1613_v8, %v1454_v15  ;;  %v1176_v15 = vadd.f32 %v7831_v30, %v7769_v34 }
 0x29e   : > { %v2631_v40 = vpop.f32.mrf.mxu0  ;;  %v8858_v63 = vld [vmem:[#allocation87_spill] sm:$0xff] }
 0x29f   : > { %v1926_v43 = vadd.f32 %v1802_v49, %v1737_v6  ;;  %v1927_v6 = vadd.f32 %v1822_v26, %v1738_v2  ;;  %v1460_v1 = vadd.f32 %v7851_v59, %v1176_v15  ;;  %v2774_v30 = vadd.f32 %v2631_v40, %v2491_v51 }
 0x2a0   : > { %v2494_v59 = vadd.f32 %v2408_v18, %v2211_v16  ;;  %v2214_v18 = vadd.f32 %v7875_v33, %v1931_v47 }
 0x2a1   : > { %v7885_v42 = vpop.f32.mrf.mxu2  ;;  %v2209_v53 = vadd.f32 %v2085_v17, %v1926_v43  ;;  %v2210_v17 = vadd.f32 %v2105_v50, %v1927_v6  ;;  %v1743_v14 = vadd.f32 %v7857_v46, %v1460_v1 }
 0x2a2   : > { %8855 = vst [vmem:[#allocation90_spill] sm:$0xff] %v7885_v42  ;;  %v2651_v24 = vpop.f32.mrf.mxu1 }
 0x2a3   : > { %v2492_v38 = vadd.f32 %v2368_v39, %v2209_v53  ;;  %v2493_v52 = vadd.f32 %v2388_v11, %v2210_v17  ;;  %v1740_v39 = vadd.f32 %v7853_v28, %v1457_v22  ;;  %v1932_v27 = vadd.f32 %v7865_v19, %v1743_v14  ;;  %v8859_v19 = vld [vmem:[#allocation88_spill] sm:$0xff] }
 0x2a4   : > { %v2691_v44 = vpop.f32.mrf.mxu3  ;;  %v2213_v28 = vadd.f32 %v7871_v37, %v1930_v29  ;;  %v8861_v32 = vld [vmem:[#allocation89_spill] sm:$0xff]  ;;  %v6084_v14 = vmov 1024.0  }
 0x2a5   : > { %v2775_v34 = vadd.f32 %v2651_v24, %v2492_v38  ;;  %v3069_v24 = vpop.permute.xlu2 %3068  ;;  %v2777_v50 = vadd.f32 %v2691_v44, %v2494_v59  ;;  %v1929_v46 = vadd.f32 %v7861_v60, %v1740_v39  ;;  %v2215_v44 = vadd.f32 %v8857_v55, %v1932_v27 }
 0x2a6   : > { %v7893_v42 = vpop.f32.mrf.mxu0  ;;  %v2496_v43 = vadd.f32 %v8859_v19, %v2213_v28  ;;  %5854 = vrcp.f32 %v6084_v14 }
 0x2a7   : > { %v2212_v21 = vadd.f32 %v8856_v7, %v1929_v46  ;;  %v2498_v37 = vadd.f32 %v8861_v32, %v2215_v44 }
 0x2a9   : > { %v2671_v9 = vpop.f32.mrf.mxu2  ;;  %v2495_v61 = vadd.f32 %v8858_v63, %v2212_v21  ;;  %v8860_v12 = vld [vmem:[#allocation90_spill] sm:$0xff] }
 0x2aa   : > { %v7895_v62 = vpop.f32.mrf.mxu1  ;;  %v2776_v5 = vadd.f32 %v2671_v9, %v2493_v52  ;;  %v2497_v60 = vadd.f32 %v8860_v12, %v2214_v18 }
 0x2ab   : > { %v2778_v48 = vadd.f32 %v7893_v42, %v2495_v61  ;;  %v2779_v15 = vadd.f32 %v7895_v62, %v2496_v43 }
 0x2ac   : > { %v2771_v49 = vpop.f32.mrf.mxu3  ;;  %v5855_v52 = vpop.eup %5854 }
 0x2ad   : > { %v2781_v41 = vadd.f32 %v2771_v49, %v2498_v37  ;;  %v3097_v39 = vmul.f32 1024.0, %v5855_v52  ;;  %vm3101_vm11 = vweird.f32 %v5855_v52 }
 0x2af   : > { %v3098_v59 = vsub.f32 1.0, %v3097_v39 }
 0x2b1   : > { %v2751_v13 = vpop.f32.mrf.mxu2 }
 0x2b2   : > { %v2780_v35 = vadd.f32 %v2751_v13, %v2497_v60 }
 0x2ba   : > { %v2954_v20 = vpop.f32.mrf.mxu2 }
 0x2bb   : > { %v3059_v8 = vadd.f32 %v2954_v20, %v2776_v5  ;;  %v3099_v20 = vmul.f32 %v5855_v52, %v3098_v59 }
 0x2bc   : > { %v2914_v10 = vpop.f32.mrf.mxu0  ;;  %v2934_v0 = vpop.f32.mrf.mxu1 }
 0x2bd   : > { %v3057_v26 = vadd.f32 %v2914_v10, %v2774_v30  ;;  %v3058_v54 = vadd.f32 %v2934_v0, %v2775_v34  ;;  %v3073_v25 = vadd.f32 %v3069_v24, %v3059_v8  ;;  %v3100_v29 = vadd.f32 %v5855_v52, %v3099_v20 }
 0x2bf   : > { %v3071_v45 = vadd.f32 %v3069_v24, %v3057_v26  ;;  %v3072_v36 = vadd.f32 %v3069_v24, %v3058_v54  ;;  %v3082_v4 = vsel %vm806_vm2, %v3073_v25, 0.0  ;;  %v7933_v5 = vsel %vm3101_vm11, %v5855_v52, %v3100_v29 }
 0x2c1   : > { %v3079_v9 = vsel %vm806_vm2, %v3071_v45, 0.0  ;;  %v3080_v23 = vsel %vm806_vm2, %v3072_v36, 0.0 }
 0x2c2   : > { %v3081_v58 = vadd.f32 %v3080_v23, %v3079_v9 }
 0x2c4   : > { %v3083_v10 = vadd.f32 %v3082_v4, %v3081_v58 }
 0x2d0   : > { %v2974_v40 = vpop.f32.mrf.mxu3 }
 0x2d1   : > { %v3060_v11 = vadd.f32 %v2974_v40, %v2777_v50  ;;  %v3034_v33 = vpop.f32.mrf.mxu2 }
 0x2d2   : > { %v3063_v51 = vadd.f32 %v3034_v33, %v2780_v35 }
 0x2d3   : > { %v3074_v2 = vadd.f32 %v3069_v24, %v3060_v11 }
 0x2d4   : > { %v3077_v42 = vadd.f32 %v3069_v24, %v3063_v51 }
 0x2d5   : > { %v3084_v3 = vsel %vm806_vm2, %v3074_v2, 0.0 }
 0x2d6   : > { %v3085_v30 = vadd.f32 %v3084_v3, %v3083_v10  ;;  %v3090_v57 = vsel %vm806_vm2, %v3077_v42, 0.0 }
 0x2d8   : > { %v3054_v53 = vpop.f32.mrf.mxu3 }
 0x2d9   : > { %v3064_v0 = vadd.f32 %v3054_v53, %v2781_v41 }
 0x2da   : > { %v2994_v6 = vpop.f32.mrf.mxu0  ;;  %v3014_v56 = vpop.f32.mrf.mxu1 }
 0x2db   : > { %v3061_v38 = vadd.f32 %v2994_v6, %v2778_v48  ;;  %v3062_v1 = vadd.f32 %v3014_v56, %v2779_v15  ;;  %v3078_v31 = vadd.f32 %v3069_v24, %v3064_v0 }
 0x2dd   : > { %v3075_v22 = vadd.f32 %v3069_v24, %v3061_v38  ;;  %v3076_v34 = vadd.f32 %v3069_v24, %v3062_v1  ;;  %v3092_v26 = vsel %vm806_vm2, %v3078_v31, 0.0 }
 0x2df   : > { %v3086_v62 = vsel %vm806_vm2, %v3075_v22, 0.0  ;;  %v3088_v49 = vsel %vm806_vm2, %v3076_v34, 0.0 }
 0x2e0   : > { %v3087_v13 = vadd.f32 %v3086_v62, %v3085_v30 }
 0x2e2   : > { %v3089_v17 = vadd.f32 %v3088_v49, %v3087_v13 }
 0x2e4   : > { %v3091_v16 = vadd.f32 %v3090_v57, %v3089_v17 }
 0x2e6   : > { %v3093_v54 = vadd.f32 %v3092_v26, %v3091_v16 }
 0x2e8   : > { %3094 = vadd.xlane.f32.xlu0 %v3093_v54 }
 0x35b   : > { %v3095_v24 = vpop.xlane.xlu0 %3094 }
 0x35c   : > { %v3103_v40 = vmul.f32 %v7933_v5, %v3095_v24  ;;  %v8863_v24 = vld [vmem:[#allocation26_spill] sm:$0xff] }
 0x35e   : > { %v3104_v47 = vsub.f32 %v3071_v45, %v3103_v40  ;;  %v3105_v50 = vsub.f32 %v3072_v36, %v3103_v40  ;;  %v3106_v27 = vsub.f32 %v3073_v25, %v3103_v40  ;;  %v7936_v8 = vsub.f32 %v3074_v2, %v3103_v40 }
 0x35f   : > { %v3108_v46 = vsub.f32 %v3075_v22, %v3103_v40  ;;  %v3109_v7 = vsub.f32 %v3076_v34, %v3103_v40  ;;  %v3110_v44 = vsub.f32 %v3077_v42, %v3103_v40  ;;  %v3111_v25 = vsub.f32 %v3078_v31, %v3103_v40 }
 0x360   : > { %v3112_v11 = vmul.f32 %v3104_v47, %v3104_v47  ;;  %v3113_v28 = vmul.f32 %v3105_v50, %v3105_v50  ;;  %v3114_v18 = vmul.f32 %v3106_v27, %v3106_v27  ;;  %v3115_v21 = vmul.f32 %v7936_v8, %v7936_v8 }
 0x361   : > { %v3116_v63 = vmul.f32 %v3108_v46, %v3108_v46  ;;  %v3117_v61 = vmul.f32 %v3109_v7, %v3109_v7  ;;  %v3118_v12 = vmul.f32 %v3110_v44, %v3110_v44  ;;  %v3119_v32 = vmul.f32 %v3111_v25, %v3111_v25 }
 0x362   : > { %v3120_v9 = vsel %vm806_vm2, %v3112_v11, 0.0  ;;  %v3121_v23 = vsel %vm806_vm2, %v3113_v28, 0.0  ;;  %v3123_v45 = vsel %vm806_vm2, %v3114_v18, 0.0  ;;  %v3125_v19 = vsel %vm806_vm2, %v3115_v21, 0.0  ;;  %v8865_v21 = vld [vmem:[#allocation27_spill] sm:$0xff] }
 0x363   : > { %v3122_v55 = vadd.f32 %v3121_v23, %v3120_v9  ;;  %v3127_v60 = vsel %vm806_vm2, %v3116_v63, 0.0  ;;  %v3129_v37 = vsel %vm806_vm2, %v3117_v61, 0.0  ;;  %v3131_v33 = vsel %vm806_vm2, %v3118_v12, 0.0  ;;  %v8868_v12 = vld [vmem:[#allocation48_spill] sm:$0xff] }
 0x364   : > { %v3133_v15 = vsel %vm806_vm2, %v3119_v32, 0.0  ;;  %v8869_v32 = vld [vmem:[#allocation53_spill] sm:$0xff] }
 0x365   : > { %v3124_v36 = vadd.f32 %v3123_v45, %v3122_v55 }
 0x367   : > { %v3126_v43 = vadd.f32 %v3125_v19, %v3124_v36  ;;  %v8867_v19 = vld [vmem:[#allocation42_spill] sm:$0xff] }
 0x369   : > { %v3128_v2 = vadd.f32 %v3127_v60, %v3126_v43 }
 0x36b   : > { %v3130_v58 = vadd.f32 %v3129_v37, %v3128_v2 }
 0x36d   : > { %v3132_v48 = vadd.f32 %v3131_v33, %v3130_v58 }
 0x36f   : > { %v3134_v35 = vadd.f32 %v3133_v15, %v3132_v48 }
 0x371   : > { %3135 = vadd.xlane.f32.xlu1 %v3134_v35 }
 0x3e4   : > { %v3136_v53 = vpop.xlane.xlu1 %3135 }
 0x3e5   : > { %v3137_v41 = vmul.f32 %v3136_v53, %v7933_v5  ;;  %v8870_v53 = vld [vmem:[#allocation43_spill] sm:$0xff] }
 0x3e7   : > { %v3138_v4 = vadd.f32 1e-05, %v3137_v41 }
 0x3e9   : > { %5856 = vrsqrt.f32 %v3138_v4  ;;  %vm3145_vm13 = vweird.f32 %v3138_v4 }
 0x3ef   : > { %v5857_v6 = vpop.eup %5856 }
 0x3f0   : > { %v3140_v56 = vmul.f32 %v5857_v6, %v3138_v4  ;;  %vm3146_vm12 = vweird.f32 %v5857_v6  ;;  %v8871_v4 = vld [vmem:[#allocation41_spill] sm:$0xff] }
 0x3f1   : > { %vm3147_vm14 = vmor %vm3145_vm13, %vm3146_vm12 }
 0x3f2   : > { %v3141_v3 = vmul.f32 %v5857_v6, %v3140_v56 }
 0x3f4   : > { %v3142_v51 = vmul.f32 0.5, %v3141_v3 }
 0x3f6   : > { %v3143_v38 = vsub.f32 1.5, %v3142_v51 }
 0x3f8   : > { %v3144_v1 = vmul.f32 %v5857_v6, %v3143_v38 }
 0x3fa   : > { %v3148_v10 = vsel %vm3147_vm14, %v5857_v6, %v3144_v1 }
 0x3fb   : > { %v3150_v0 = vmul.f32 %v3148_v10, %v3105_v50  ;;  %v3153_v22 = vmul.f32 %v3148_v10, %v3108_v46  ;;  %v3155_v34 = vmul.f32 %v3148_v10, %v3110_v44  ;;  %v3151_v13 = vmul.f32 %v3148_v10, %v3106_v27 }
 0x3fc   : > { %v3149_v31 = vmul.f32 %v3148_v10, %v3104_v47  ;;  %v3156_v49 = vmul.f32 %v3148_v10, %v3111_v25  ;;  %v3154_v26 = vmul.f32 %v3148_v10, %v3109_v7  ;;  %v3152_v14 = vmul.f32 %v3148_v10, %v7936_v8  ;;  %v5604_v47 = vld [vmem:[%s8629_s5 + $0x4] sm:$0xf]  ;;  %v8864_v8 = vld [vmem:[#allocation25_spill] sm:$0xff]  ;;  %v8866_v25 = vld [vmem:[#allocation30_spill] sm:$0xff] }
 0x3fd   : > { %v7949_v30 = vmax.f32 %v3150_v0, 0.0  ;;  %v7951_v42 = vmax.f32 %v3153_v22, 0.0  ;;  %v7953_v62 = vmax.f32 %v3155_v34, 0.0  ;;  %v7961_v17 = vmax.f32 %v3151_v13, 0.0  ;;  %v8872_v10 = vld [vmem:[#allocation50_spill] sm:$0xff]  ;;  %v8873_v22 = vld [vmem:[#allocation55_spill] sm:$0xff] }
 0x3fe   : > { %v7963_v57 = vmax.f32 %v3149_v31, 0.0  ;;  %v7965_v16 = vmax.f32 %v3156_v49, 0.0  ;;  %v7973_v54 = vmax.f32 %v3154_v26, 0.0  ;;  %v7982_v52 = vmax.f32 %v3152_v14, 0.0  ;;  %v3197_v31 = vld [vmem:[%s8629_s5] sm:$0xf] }
 0x3ff   : > { %3200 = vrot.lane.b32.xlu2 %v7949_v30, %s6075_s15  ;;  %3210 = vrot.lane.b32.xlu0 %v7953_v62, %s6075_s15  ;;  %v8874_v49 = vld [vmem:[#allocation58_spill] sm:$0xff] }
 0x400   : > { %3206 = vrot.lane.b32.xlu1 %v7951_v42, %s6075_s15 }
 0x407   : > { %3202 = vrot.lane.b32.xlu2 %v7961_v17, %s6075_s15  ;;  %3165 = vrot.lane.b32.xlu0 %v7963_v57, %s6076_s16 }
 0x408   : > { %3179 = vrot.lane.b32.xlu1 %v7965_v16, %s6076_s16 }
 0x40f   : > { %3198 = vrot.lane.b32.xlu2 %v7963_v57, %s6075_s15  ;;  %3175 = vrot.lane.b32.xlu0 %v7973_v54, %s6076_s16 }
 0x410   : > { %3173 = vrot.lane.b32.xlu1 %v7951_v42, %s6076_s16 }
 0x417   : > { %3204 = vrot.lane.b32.xlu2 %v7982_v52, %s6075_s15  ;;  %3609 = vrot.lane.b32.xlu0 %v7949_v30, %s6077_s20 }
 0x418   : > { %3607 = vrot.lane.b32.xlu1 %v7963_v57, %s6077_s20 }
 0x41f   : > { %3212 = vrot.lane.b32.xlu2 %v7965_v16, %s6075_s15  ;;  %3613 = vrot.lane.b32.xlu0 %v7982_v52, %s6077_s20 }
 0x420   : > { %3617 = vrot.lane.b32.xlu1 %v7973_v54, %s6077_s20 }
 0x427   : > { %3208 = vrot.lane.b32.xlu2 %v7973_v54, %s6075_s15  ;;  %3619 = vrot.lane.b32.xlu0 %v7953_v62, %s6077_s20 }
 0x428   : > { %3838 = vrot.lane.b32.xlu1 %v7949_v30, %s6078_s11 }
 0x42f   : > { %3167 = vrot.lane.b32.xlu2 %v7949_v30, %s6076_s16  ;;  %3840 = vrot.lane.b32.xlu0 %v7961_v17, %s6078_s11 }
 0x430   : > { %3842 = vrot.lane.b32.xlu1 %v7982_v52, %s6078_s11 }
 0x437   : > { %3169 = vrot.lane.b32.xlu2 %v7961_v17, %s6076_s16  ;;  %3850 = vrot.lane.b32.xlu0 %v7965_v16, %s6078_s11 }
 0x438   : > { %3848 = vrot.lane.b32.xlu1 %v7953_v62, %s6078_s11 }
 0x43f   : > { %3171 = vrot.lane.b32.xlu2 %v7982_v52, %s6076_s16  ;;  %3844 = vrot.lane.b32.xlu0 %v7951_v42, %s6078_s11 }
 0x440   : > { %4268 = vrot.lane.b32.xlu1 %v7982_v52, %s6079_s23 }
 0x447   : > { %3177 = vrot.lane.b32.xlu2 %v7953_v62, %s6076_s16  ;;  %4262 = vrot.lane.b32.xlu0 %v7963_v57, %s6079_s23 }
 0x448   : > { %4270 = vrot.lane.b32.xlu1 %v7951_v42, %s6079_s23 }
 0x44f   : > { %3611 = vrot.lane.b32.xlu2 %v7961_v17, %s6077_s20  ;;  %4274 = vrot.lane.b32.xlu0 %v7953_v62, %s6079_s23 }
 0x450   : > { %4272 = vrot.lane.b32.xlu1 %v7973_v54, %s6079_s23 }
 0x457   : > { %3621 = vrot.lane.b32.xlu2 %v7965_v16, %s6077_s20  ;;  %4495 = vrot.lane.b32.xlu0 %v7961_v17, %s6080_s21 }
 0x458   : > { %4491 = vrot.lane.b32.xlu1 %v7963_v57, %s6080_s21 }
 0x459   : > { %v3201_v39 = vpop.permute.xlu2 %3200 }
 0x45f   : > { %3615 = vrot.lane.b32.xlu2 %v7951_v42, %s6077_s20  ;;  %4493 = vrot.lane.b32.xlu0 %v7949_v30, %s6080_s21 }
 0x460   : > { %4503 = vrot.lane.b32.xlu1 %v7953_v62, %s6080_s21 }
 0x461   : > { %v3203_v59 = vpop.permute.xlu2 %3202 }
 0x462   : > { %v3219_v29 = vsel %vm746_vm1, %v3201_v39, %v3203_v59 }
 0x463   : > { %v3224_v40 = vmul.f32 %v3219_v29, %v8863_v24  ;;  %v8875_v24 = vld [vmem:[#allocation49_spill] sm:$0xff] }
 0x465   : > { %5609 = vmatpush.msk.msra.mxu2 %vm806_vm2, %v3224_v40 }
 0x466   : > { %5610 = vmatmul.msk.f32.vlgmr.msra.gmra.mxu2 %vm3232_vm15, %v5604_v47 }
 0x467   : > { %3836 = vrot.lane.b32.xlu2 %v7963_v57, %s6078_s11  ;;  %4505 = vrot.lane.b32.xlu0 %v7965_v16, %s6080_s21 }
 0x468   : > { %4724 = vrot.lane.b32.xlu1 %v7961_v17, %s6081_s2 }
 0x469   : > { %v3199_v50 = vpop.permute.xlu2 %3198 }
 0x46a   : > { %v3220_v27 = vsel %vm746_vm1, %v3199_v50, %v3201_v39 }
 0x46b   : > { %v3223_v46 = vmul.f32 %v3220_v27, %v8864_v8 }
 0x46d   : > { %5607 = vmatpush.msk.msra.mxu1 %vm806_vm2, %v3223_v46 }
 0x46e   : > { %5608 = vmatmul.msk.f32.vlgmr.msra.gmra.mxu1 %vm3232_vm15, %v5604_v47 }
 0x46f   : > { %3846 = vrot.lane.b32.xlu2 %v7973_v54, %s6078_s11  ;;  %4726 = vrot.lane.b32.xlu0 %v7982_v52, %s6081_s2  ;;  %s5763_s11 = sshll.u32 %s6154_s12, 5  ;;  %s398_s12 = scalar_lea.vmem [#allocation10], %s6251_s7 }
 0x470   : > { %4722 = vrot.lane.b32.xlu1 %v7949_v30, %s6081_s2 }
 0x471   : > { %v3205_v11 = vpop.permute.xlu2 %3204  ;;  %v3211_v28 = vpop.permute.xlu0 %3210 }
 0x472   : > { %v3207_v18 = vpop.permute.xlu1 %3206  ;;  %v3218_v7 = vsel %vm746_vm1, %v3203_v59, %v3205_v11 }
 0x473   : > { %v3225_v9 = vmul.f32 %v3218_v7, %v8865_v21  ;;  %v3217_v23 = vsel %vm746_vm1, %v3205_v11, %v3207_v18  ;;  %v8876_v11 = vld [vmem:[#allocation51_spill] sm:$0xff]  ;;  %v8173_v21 = vld [vmem:[%s8629_s5 + $0x8] sm:$0xf] }
 0x474   : > { %v3226_v60 = vmul.f32 %v3217_v23, %v8868_v12 }
 0x475   : > { %5611 = vmatpush.msk.msra.mxu3 %vm806_vm2, %v3225_v9 }
 0x476   : > { %5612 = vmatmul.msk.f32.vlgmr.msra.gmra.mxu3 %vm3232_vm15, %v5604_v47 }
 0x477   : > { %4266 = vrot.lane.b32.xlu2 %v7961_v17, %s6079_s23  ;;  %4728 = vrot.lane.b32.xlu0 %v7951_v42, %s6081_s2 }
 0x478   : > { %4734 = vrot.lane.b32.xlu1 %v7965_v16, %s6081_s2 }
 0x479   : > { %v3213_v55 = vpop.permute.xlu2 %3212  ;;  %v3166_v63 = vpop.permute.xlu0 %3165 }
 0x47a   : > { %v8082_v44 = vpop.permute.xlu1 %3179  ;;  %v3214_v45 = vsel %vm746_vm1, %v3211_v28, %v3213_v55  ;;  %v3221_v36 = vsel %vm746_vm1, %v3213_v55, %v3199_v50 }
 0x47b   : > { %v3222_v61 = vmul.f32 %v3221_v36, %v8866_v25  ;;  %v3229_v43 = vmul.f32 %v3214_v45, %v8867_v19  ;;  %v3188_v2 = vsel %vm660_vm4, %v8082_v44, %v3166_v63  ;;  %v8878_v36 = vld [vmem:[#allocation54_spill] sm:$0xff] }
 0x47c   : > { %v3189_v37 = vmul.f32 %v3188_v2, %v8869_v32 }
 0x47d   : > { %5605 = vmatpush.msk.msra.mxu0 %vm806_vm2, %v3222_v61  ;;  %5619 = vmatpush.msk.msrb.mxu3 %vm806_vm2, %v3229_v43  ;;  %v8879_v61 = vld [vmem:[#allocation56_spill] sm:$0xff] }
 0x47e   : > { %5620 = vmatmul.msk.f32.vlgmr.msrb.gmra.mxu3 %vm3232_vm15, %v5604_v47  ;;  %5606 = vmatmul.msk.f32.vlgmr.msra.gmra.mxu0 %vm3232_vm15, %v5604_v47 }
 0x47f   : > { %5613 = vmatpush.msk.msrb.mxu0 %vm806_vm2, %v3226_v60  ;;  %4264 = vrot.lane.b32.xlu2 %v7949_v30, %s6079_s23 }
 0x480   : > { %4955 = vrot.lane.b32.xlu1 %v7982_v52, %s6082_s13  ;;  %4730 = vrot.lane.b32.xlu0 %v7973_v54, %s6081_s2 }
 0x481   : > { %5621 = vmatpush.msk.msra.mxu0 %vm806_vm2, %v3189_v37  ;;  %v3209_v58 = vpop.permute.xlu2 %3208  ;;  %v3176_v48 = vpop.permute.xlu0 %3175 }
 0x482   : > { %v3174_v33 = vpop.permute.xlu1 %3173  ;;  %v3215_v15 = vsel %vm746_vm1, %v3209_v58, %v3211_v28  ;;  %v3216_v35 = vsel %vm746_vm1, %v3207_v18, %v3209_v58  ;;  %v8877_v18 = vld [vmem:[#allocation61_spill] sm:$0xff] }
 0x483   : > { %v3227_v41 = vmul.f32 %v3216_v35, %v8870_v53  ;;  %v3228_v6 = vmul.f32 %v3215_v15, %v8871_v4  ;;  %v3183_v56 = vsel %vm660_vm4, %v3174_v33, %v3176_v48  ;;  %v8880_v58 = vld [vmem:[#allocation57_spill] sm:$0xff]  ;;  %v8882_v35 = vld [vmem:[#allocation59_spill] sm:$0xff] }
 0x484   : > { %v3194_v34 = vmul.f32 %v3183_v56, %v8873_v22 }
 0x485   : > { %5615 = vmatpush.msk.msrb.mxu1 %vm806_vm2, %v3227_v41  ;;  %5617 = vmatpush.msk.msrb.mxu2 %vm806_vm2, %v3228_v6  ;;  %v8883_v41 = vld [vmem:[#allocation33_spill] sm:$0xff] }
 0x486   : > { %5616 = vmatmul.msk.f32.vlgmr.msrb.gmra.mxu1 %vm3232_vm15, %v5604_v47  ;;  %5618 = vmatmul.msk.f32.vlgmr.msrb.gmra.mxu2 %vm3232_vm15, %v5604_v47 }
 0x487   : > { %4276 = vrot.lane.b32.xlu2 %v7965_v16, %s6079_s23  ;;  %5614 = vmatmul.msk.f32.vlgmr.msrb.gmra.mxu0 %vm3232_vm15, %v5604_v47 }
 0x488   : > { %4957 = vrot.lane.b32.xlu1 %v7951_v42, %s6082_s13  ;;  %4949 = vrot.lane.b32.xlu0 %v7963_v57, %s6082_s13 }
 0x489   : > { %v3168_v3 = vpop.permute.xlu2 %3167  ;;  %v3610_v38 = vpop.permute.xlu0 %3609 }
 0x48a   : > { %v8126_v51 = vpop.permute.xlu1 %3607  ;;  %v3187_v1 = vsel %vm660_vm4, %v3166_v63, %v3168_v3 }
 0x48b   : > { %v3190_v0 = vmul.f32 %v3187_v1, %v8872_v10  ;;  %v3629_v13 = vsel %vm1210_vm5, %v8126_v51, %v3610_v38 }
 0x48c   : > { %v3632_v26 = vmul.f32 %v3629_v13, %v8874_v49  ;;  %v8886_v49 = vld [vmem:[#allocation44_spill] sm:$0xff] }
 0x48d   : > { %5623 = vmatpush.msk.msra.mxu1 %vm806_vm2, %v3190_v0  ;;  %v8884_v0 = vld [vmem:[#allocation63_spill] sm:$0xff] }
 0x48e   : > { %5624 = vmatmul.msk.f32.vlgmr.msra.gmra.mxu1 %vm3232_vm15, %v3197_v31 }
 0x48f   : > { %5631 = vmatpush.msk.msrb.mxu1 %vm806_vm2, %v3194_v34  ;;  %4497 = vrot.lane.b32.xlu2 %v7982_v52, %s6080_s21  ;;  %v8885_v34 = vld [vmem:[#allocation31_spill] sm:$0xff] }
 0x490   : > { %4959 = vrot.lane.b32.xlu1 %v7973_v54, %s6082_s13  ;;  %4961 = vrot.lane.b32.xlu0 %v7953_v62, %s6082_s13 }
 0x491   : > { %5640 = vmatpush.msk.msra.mxu1 %vm806_vm2, %v3632_v26  ;;  %v3170_v14 = vpop.permute.xlu2 %3169  ;;  %5622 = vmatmul.msk.f32.vlgmr.msra.gmra.mxu0 %vm3232_vm15, %v3197_v31  ;;  %v8152_v59 = vpop.permute.xlu0 %3613 }
 0x492   : > { %v8150_v39 = vpop.permute.xlu1 %3617  ;;  %v3186_v29 = vsel %vm660_vm4, %v3168_v3, %v3170_v14 }
 0x493   : > { %v3191_v40 = vmul.f32 %v3186_v29, %v8875_v24 }
 0x495   : > { %5625 = vmatpush.msk.msra.mxu2 %vm806_vm2, %v3191_v40 }
 0x496   : > { %5626 = vmatmul.msk.f32.vlgmr.msra.gmra.mxu2 %vm3232_vm15, %v3197_v31  ;;  %5632 = vmatmul.msk.f32.vlgmr.msrb.gmra.mxu1 %vm3232_vm15, %v3197_v31 }
 0x497   : > { %4499 = vrot.lane.b32.xlu2 %v7951_v42, %s6080_s21 }
 0x499   : > { %v3172_v47 = vpop.permute.xlu2 %3171  ;;  %v3620_v27 = vpop.permute.xlu0 %3619 }
 0x49a   : > { %v8162_v50 = vpop.permute.xlu1 %3838  ;;  %v3184_v8 = vsel %vm660_vm4, %v3172_v47, %v3174_v33  ;;  %v3185_v46 = vsel %vm660_vm4, %v3170_v14, %v3172_v47 }
 0x49b   : > { %v3192_v28 = vmul.f32 %v3185_v46, %v8876_v11  ;;  %v3193_v7 = vmul.f32 %v3184_v8, %v8877_v18  ;;  %v8888_v8 = vld [vmem:[#allocation36_spill] sm:$0xff] }
 0x49c   : > { %v8889_v11 = vld [vmem:[#allocation60_spill] sm:$0xff] }
 0x49d   : > { %5627 = vmatpush.msk.msra.mxu3 %vm806_vm2, %v3192_v28  ;;  %5629 = vmatpush.msk.msrb.mxu0 %vm806_vm2, %v3193_v7  ;;  %v5654_v18 = vld [vmem:[%s8629_s5 + $0xc] sm:$0xf] }
 0x49e   : > { %5628 = vmatmul.msk.f32.vlgmr.msra.gmra.mxu3 %vm3232_vm15, %v3197_v31  ;;  %5630 = vmatmul.msk.f32.vlgmr.msrb.gmra.mxu0 %vm3232_vm15, %v3197_v31 }
 0x49f   : > { %4501 = vrot.lane.b32.xlu2 %v7973_v54, %s6080_s21  ;;  %5641 = vmatmul.msk.f32.vlgmr.msra.gmra.mxu1 %vm3232_vm15, %v8173_v21  ;;  %s5307_s21 = scalar_lea.hbm %s8632_s8, %s5763_s11 }
 0x4a1   : > { %v3178_v9 = vpop.permute.xlu2 %3177  ;;  %v3841_v55 = vpop.permute.xlu0 %3840 }
 0x4a2   : > { %v8183_v23 = vpop.permute.xlu1 %3842  ;;  %v3181_v63 = vsel %vm660_vm4, %v3178_v9, %v8082_v44  ;;  %v3182_v45 = vsel %vm660_vm4, %v3176_v48, %v3178_v9  ;;  %v3624_v44 = vsel %vm1210_vm5, %v8150_v39, %v3620_v27  ;;  %v3857_v37 = vsel %vm1493_vm6, %v8162_v50, %v3841_v55  ;;  %v8881_v48 = vld [vmem:[#allocation62_spill] sm:$0xff] }
 0x4a3   : > { %v3195_v25 = vmul.f32 %v3182_v45, %v8878_v36  ;;  %v3196_v19 = vmul.f32 %v3181_v63, %v8879_v61  ;;  %v3637_v53 = vmul.f32 %v3624_v44, %v8882_v35  ;;  %v3862_v4 = vmul.f32 %v3857_v37, %v8883_v41  ;;  %v8890_v63 = vld [vmem:[#allocation29_spill] sm:$0xff]  ;;  %v8891_v45 = vld [vmem:[#allocation64_spill] sm:$0xff] }
 0x4a4   : > { %v3856_v10 = vsel %vm1493_vm6, %v3841_v55, %v8183_v23 }
 0x4a5   : > { %5633 = vmatpush.msk.msrb.mxu2 %vm806_vm2, %v3195_v25  ;;  %5635 = vmatpush.msk.msrb.mxu3 %vm806_vm2, %v3196_v19  ;;  %v3863_v26 = vmul.f32 %v3856_v10, %v8886_v49  ;;  %v8892_v25 = vld [vmem:[#allocation22_spill] sm:$0xff] }
 0x4a6   : > { %5634 = vmatmul.msk.f32.vlgmr.msrb.gmra.mxu2 %vm3232_vm15, %v3197_v31  ;;  %5636 = vmatmul.msk.f32.vlgmr.msrb.gmra.mxu3 %vm3232_vm15, %v3197_v31 }
 0x4a7   : > { %4720 = vrot.lane.b32.xlu2 %v7963_v57, %s6081_s2 }
 0x4a9   : > { %v3612_v43 = vpop.permute.xlu2 %3611  ;;  %v3851_v60 = vpop.permute.xlu0 %3850 }
 0x4aa   : > { %v8201_v12 = vpop.permute.xlu1 %3848  ;;  %v3627_v2 = vsel %vm1210_vm5, %v3612_v43, %v8152_v59  ;;  %v3628_v32 = vsel %vm1210_vm5, %v3610_v38, %v3612_v43 }
 0x4ab   : > { %v3633_v33 = vmul.f32 %v3628_v32, %v8880_v58  ;;  %v3634_v15 = vmul.f32 %v3627_v2, %v8881_v48  ;;  %v3852_v31 = vsel %vm1493_vm6, %v8201_v12, %v3851_v60  ;;  %v8894_v32 = vld [vmem:[#allocation52_spill] sm:$0xff] }
 0x4ad   : > { %5642 = vmatpush.msk.msra.mxu2 %vm806_vm2, %v3633_v33  ;;  %5644 = vmatpush.msk.msra.mxu3 %vm806_vm2, %v3634_v15  ;;  %v8896_v15 = vld [vmem:[#allocation34_spill] sm:$0xff] }
 0x4ae   : > { %5643 = vmatmul.msk.f32.vlgmr.msra.gmra.mxu2 %vm3232_vm15, %v8173_v21  ;;  %5645 = vmatmul.msk.f32.vlgmr.msra.gmra.mxu3 %vm3232_vm15, %v8173_v21 }
 0x4af   : > { %5650 = vmatpush.msk.msrb.mxu2 %vm806_vm2, %v3637_v53  ;;  %4732 = vrot.lane.b32.xlu2 %v7953_v62, %s6081_s2  ;;  %s5309_s2 = sshll.u32 %s398_s12, 4  ;;  %s5310_s2 = int_to_ptr.vmem [resolvable:$true] %s5309_s2 }
 0x4b1   : > { %5659 = vmatpush.msk.msra.mxu2 %vm806_vm2, %v3862_v4  ;;  %v3622_v6 = vpop.permute.xlu2 %3621  ;;  %v3845_v3 = vpop.permute.xlu0 %3844 }
 0x4b2   : > { %v8225_v56 = vpop.permute.xlu1 %4268  ;;  %v3623_v38 = vsel %vm1210_vm5, %v3620_v27, %v3622_v6  ;;  %v3630_v1 = vsel %vm1210_vm5, %v3622_v6, %v8126_v51  ;;  %v8887_v51 = vld [vmem:[#allocation28_spill] sm:$0xff]  ;;  %v8897_v6 = vld [vmem:[#allocation47_spill] sm:$0xff] }
 0x4b3   : > { %v3631_v22 = vmul.f32 %v3630_v1, %v8884_v0  ;;  %v3638_v13 = vmul.f32 %v3623_v38, %v8885_v34  ;;  %v3867_v14 = vmul.f32 %v3852_v31, %v8887_v51  ;;  %v8899_v1 = vld [vmem:[#allocation20_spill] sm:$0xff]  ;;  %v8900_v34 = vld [vmem:[#allocation45_spill] sm:$0xff] }
 0x4b5   : > { %5638 = vmatpush.msk.msra.mxu0 %vm806_vm2, %v3631_v22  ;;  %5652 = vmatpush.msk.msrb.mxu3 %vm806_vm2, %v3638_v13  ;;  %v5688_v22 = vld [vmem:[%s8629_s5 + $0x14] sm:$0xf] }
 0x4b6   : > { %5639 = vmatmul.msk.f32.vlgmr.msra.gmra.mxu0 %vm3232_vm15, %v8173_v21  ;;  %5651 = vmatmul.msk.f32.vlgmr.msrb.gmra.mxu2 %vm3232_vm15, %v8173_v21 }
 0x4b7   : > { %5653 = vmatmul.msk.f32.vlgmr.msrb.gmra.mxu3 %vm3232_vm15, %v8173_v21  ;;  %4953 = vrot.lane.b32.xlu2 %v7961_v17, %s6082_s13 }
 0x4b8   : > { %5661 = vmatpush.msk.msra.mxu3 %vm806_vm2, %v3863_v26 }
 0x4b9   : > { %v3616_v29 = vpop.permute.xlu2 %3615  ;;  %v8256_v40 = vpop.permute.xlu0 %4262 }
 0x4ba   : > { %5669 = vmatpush.msk.msrb.mxu3 %vm806_vm2, %v3867_v14  ;;  %v8254_v24 = vpop.permute.xlu1 %4270  ;;  %v3625_v47 = vsel %vm1210_vm5, %v3616_v29, %v8150_v39  ;;  %v3626_v27 = vsel %vm1210_vm5, %v8152_v59, %v3616_v29  ;;  %v3855_v59 = vsel %vm1493_vm6, %v8183_v23, %v3845_v3 }
 0x4bb   : > { %v3635_v46 = vmul.f32 %v3626_v27, %v8888_v8  ;;  %v3636_v28 = vmul.f32 %v3625_v47, %v8889_v11  ;;  %v3864_v61 = vmul.f32 %v3855_v59, %v8892_v25  ;;  %v8902_v27 = vld [vmem:[#allocation35_spill] sm:$0xff] }
 0x4bd   : > { %5646 = vmatpush.msk.msrb.mxu0 %vm806_vm2, %v3635_v46  ;;  %5648 = vmatpush.msk.msrb.mxu1 %vm806_vm2, %v3636_v28  ;;  %v8903_v46 = vld [vmem:[#allocation32_spill] sm:$0xff]  ;;  %v8904_v28 = vld [vmem:[#allocation21_spill] sm:$0xff] }
 0x4be   : > { %5647 = vmatmul.msk.f32.vlgmr.msrb.gmra.mxu0 %vm3232_vm15, %v8173_v21  ;;  %5649 = vmatmul.msk.f32.vlgmr.msrb.gmra.mxu1 %vm3232_vm15, %v8173_v21 }
 0x4bf   : > { %5660 = vmatmul.msk.f32.vlgmr.msra.gmra.mxu2 %vm3232_vm15, %v5654_v18  ;;  %5662 = vmatmul.msk.f32.vlgmr.msra.gmra.mxu3 %vm3232_vm15, %v5654_v18 }
 0x4c0   : > { %5678 = vmatpush.msk.msra.mxu3 %vm806_vm2, %v7982_v52  ;;  %4951 = vrot.lane.b32.xlu2 %v7949_v30, %s6082_s13 }
 0x4c1   : > { %v3837_v39 = vpop.permute.xlu2 %3836  ;;  %v8284_v9 = vpop.permute.xlu0 %4274 }
 0x4c2   : > { %v4273_v7 = vpop.permute.xlu1 %4272  ;;  %v3858_v21 = vsel %vm1493_vm6, %v3837_v39, %v8162_v50  ;;  %v3859_v55 = vsel %vm1493_vm6, %v3851_v60, %v3837_v39  ;;  %v8893_v60 = vld [vmem:[#allocation46_spill] sm:$0xff] }
 0x4c3   : > { %v3860_v52 = vmul.f32 %v3859_v55, %v8890_v63  ;;  %v3861_v36 = vmul.f32 %v3858_v21, %v8891_v45  ;;  %v4279_v4 = vsel %vm1965_vm7, %v4273_v7, %v8284_v9  ;;  %v8906_v63 = vld [vmem:[#allocation67_spill] sm:$0xff] }
 0x4c4   : > { %v4291_v13 = vmul.f32 %v4279_v4, %v8900_v34  ;;  %v8913_v4 = vld [vmem:[#allocation70_spill] sm:$0xff]  ;;  %v8915_v34 = vld [vmem:[#allocation73_spill] sm:$0xff] }
 0x4c5   : > { %5655 = vmatpush.msk.msra.mxu0 %vm806_vm2, %v3860_v52  ;;  %5657 = vmatpush.msk.msra.mxu1 %vm806_vm2, %v3861_v36 }
 0x4c6   : > { %5656 = vmatmul.msk.f32.vlgmr.msra.gmra.mxu0 %vm3232_vm15, %v5654_v18  ;;  %5658 = vmatmul.msk.f32.vlgmr.msra.gmra.mxu1 %vm3232_vm15, %v5654_v18 }
 0x4c7   : > { %5663 = vmatpush.msk.msrb.mxu0 %vm806_vm2, %v3864_v61  ;;  %5670 = vmatmul.msk.f32.vlgmr.msrb.gmra.mxu3 %vm3232_vm15, %v5654_v18 }
 0x4c8   : > { %5686 = vmatpush.msk.msrb.mxu3 %vm806_vm2, %v7965_v16  ;;  %4963 = vrot.lane.b32.xlu2 %v7965_v16, %s6082_s13  ;;  %v5671_v16 = vld [vmem:[%s8629_s5 + $0x10] sm:$0xf]  ;;  %s5311_s13 = sshll.u32 %s5307_s21, 4  ;;  %s5312_s13 = int_to_ptr.hbm [resolvable:$true] %s5311_s13 }
 0x4c9   : > { %5672 = vmatpush.msk.msra.mxu0 %vm806_vm2, %v7963_v57  ;;  %v3847_v50 = vpop.permute.xlu2 %3846  ;;  %v8308_v19 = vpop.permute.xlu0 %4495  ;;  %v4281_v57 = vsel %vm1965_vm7, %v8225_v56, %v8254_v24  ;;  %s6001_s9 = sshra.s32 %s5312_s13, 4  ;;  %s6002_s9 = int_to_ptr.hbm [resolvable:$true] %s6001_s9 }
 0x4ca   : > { %v8306_v23 = vpop.permute.xlu1 %4491  ;;  %v3853_v43 = vsel %vm1493_vm6, %v3847_v50, %v8201_v12  ;;  %v3854_v44 = vsel %vm1493_vm6, %v3845_v3, %v3847_v50  ;;  %v8895_v12 = vld [vmem:[#allocation39_spill] sm:$0xff]  ;;  %v8898_v3 = vld [vmem:[#allocation37_spill] sm:$0xff]  ;;  %s6003_s7 = scalar_lea.hbm %s6002_s9, 32  ;;  %p6008_p7 = scmp.lt.s32.totalorder %s6002_s9, %s8632_s8 }
 0x4cb   : > { %v3865_v2 = vmul.f32 %v3854_v44, %v8893_v60  ;;  %v3866_v37 = vmul.f32 %v3853_v43, %v8894_v32  ;;  %v4289_v58 = vmul.f32 %v4281_v57, %v8895_v12  ;;  %v5705_v44 = vld [vmem:[%s8629_s5 + $0x18] sm:$0xf]  ;;  %p6004_p1 = scmp.ne.s32.totalorder %s6002_s9, %s6003_s7  ;;  %p6009_p9 = scmp.lt.s32.totalorder %s6007_s29, %s6003_s7 }
 0x4cd   : > { %5665 = vmatpush.msk.msrb.mxu1 %vm806_vm2, %v3865_v2  ;;  %5667 = vmatpush.msk.msrb.mxu2 %vm806_vm2, %v3866_v37  ;;  %v8908_v2 = vld [vmem:[#allocation68_spill] sm:$0xff]  ;;  %v8909_v37 = vld [vmem:[#allocation71_spill] sm:$0xff]  ;;  %p6005_p3 = pnand %p6004_p1, %p6199_p4  ;;  %p6010_p8 = por %p6009_p9, %p6008_p7 }
 0x4ce   : > { %5664 = vmatmul.msk.f32.vlgmr.msrb.gmra.mxu0 %vm3232_vm15, %v5654_v18  ;;  %5666 = vmatmul.msk.f32.vlgmr.msrb.gmra.mxu1 %vm3232_vm15, %v5654_v18 }
 0x4cf   : > { %5668 = vmatmul.msk.f32.vlgmr.msrb.gmra.mxu2 %vm3232_vm15, %v5654_v18  ;;  %5674 = vmatpush.msk.msra.mxu1 %vm806_vm2, %v7949_v30  ;;  %p6006_p12 = pneg %p6005_p3 }
 0x4d0   : > { %5676 = vmatpush.msk.msra.mxu2 %vm806_vm2, %v7961_v17  ;;  %5679 = vmatmul.msk.f32.vlgmr.msra.gmra.mxu3 %vm3232_vm15, %v5671_v16 }
 0x4d1   : > { %5680 = vmatpush.msk.msrb.mxu0 %vm806_vm2, %v7951_v42  ;;  %5695 = vmatpush.msk.msra.mxu3 %vm806_vm2, %v4289_v58  ;;  %v4267_v33 = vpop.permute.xlu2 %4266  ;;  %v4494_v17 = vpop.permute.xlu0 %4493  ;;  %p6011_p10 = pnand %p6010_p8, %p6006_p12 }
 0x4d2   : > { %5682 = vmatpush.msk.msrb.mxu1 %vm806_vm2, %v7973_v54  ;;  %5684 = vmatpush.msk.msrb.mxu2 %vm806_vm2, %v7953_v62  ;;  %v8342_v48 = vpop.permute.xlu1 %4503  ;;  %v4282_v30 = vsel %vm1965_vm7, %v4267_v33, %v8225_v56  ;;  %v4280_v62 = vsel %vm1965_vm7, %v8254_v24, %v4273_v7  ;;  %v4513_v49 = vsel %vm2248_vm8, %v8306_v23, %v4494_v17  ;;  %v8901_v24 = vld [vmem:[#allocation40_spill] sm:$0xff] }
 0x4d3   : > { %v4288_v35 = vmul.f32 %v4282_v30, %v8896_v15  ;;  %v4290_v10 = vmul.f32 %v4280_v62, %v8899_v1  ;;  %v4512_v29 = vsel %vm2248_vm8, %v4494_v17, %v8308_v19  ;;  %v4515_v11 = vmul.f32 %v4513_v49, %v8903_v46  ;;  %v8912_v62 = vld [vmem:[#allocation65_spill] sm:$0xff] }
 0x4d4   : > { %v4516_v18 = vmul.f32 %v4512_v29, %v8904_v28  ;;  %v8918_v28 = vld [vmem:[#allocation75_spill] sm:$0xff] }
 0x4d6   : > { %5673 = vmatmul.msk.f32.vlgmr.msra.gmra.mxu0 %vm3232_vm15, %v5671_v16  ;;  %5675 = vmatmul.msk.f32.vlgmr.msra.gmra.mxu1 %vm3232_vm15, %v5671_v16 }
 0x4d7   : > { %5677 = vmatmul.msk.f32.vlgmr.msra.gmra.mxu2 %vm3232_vm15, %v5671_v16 }
 0x4d8   : > { %5687 = vmatmul.msk.f32.vlgmr.msrb.gmra.mxu3 %vm3232_vm15, %v5671_v16  ;;  %5693 = vmatpush.msk.msra.mxu2 %vm806_vm2, %v4288_v35  ;;  %v8911_v35 = vld [vmem:[#allocation66_spill] sm:$0xff] }
 0x4d9   : > { %v4265_v42 = vpop.permute.xlu2 %4264  ;;  %v4506_v0 = vpop.permute.xlu0 %4505 }
 0x4da   : > { %v8356_v54 = vpop.permute.xlu1 %4724  ;;  %v4283_v53 = vsel %vm1965_vm7, %v4265_v42, %v4267_v33  ;;  %v4284_v41 = vsel %vm1965_vm7, %v8256_v40, %v4265_v42  ;;  %v4507_v7 = vsel %vm2248_vm8, %v8342_v48, %v4506_v0  ;;  %v4514_v61 = vsel %vm2248_vm8, %v4506_v0, %v8306_v23  ;;  %v8914_v0 = vld [vmem:[#allocation69_spill] sm:$0xff] }
 0x4db   : > { %v4286_v56 = vmul.f32 %v4284_v41, %v8897_v6  ;;  %v4287_v38 = vmul.f32 %v4283_v53, %v8898_v3  ;;  %v4521_v52 = vmul.f32 %v4507_v7, %v8906_v63  ;;  %v4522_v32 = vmul.f32 %v4514_v61, %v8908_v2 }
 0x4dd   : > { %5689 = vmatpush.msk.msra.mxu0 %vm806_vm2, %v4286_v56  ;;  %5691 = vmatpush.msk.msra.mxu1 %vm806_vm2, %v4287_v38 }
 0x4de   : > { %5681 = vmatmul.msk.f32.vlgmr.msrb.gmra.mxu0 %vm3232_vm15, %v5671_v16  ;;  %5683 = vmatmul.msk.f32.vlgmr.msrb.gmra.mxu1 %vm3232_vm15, %v5671_v16 }
 0x4df   : > { %5685 = vmatmul.msk.f32.vlgmr.msrb.gmra.mxu2 %vm3232_vm15, %v5671_v16  ;;  %5697 = vmatpush.msk.msrb.mxu0 %vm806_vm2, %v4290_v10  ;;  %v8910_v16 = vld [vmem:[#allocation72_spill] sm:$0xff] }
 0x4e0   : > { %5696 = vmatmul.msk.f32.vlgmr.msra.gmra.mxu3 %vm3232_vm15, %v5688_v22  ;;  %5699 = vmatpush.msk.msrb.mxu1 %vm806_vm2, %v4291_v13 }
 0x4e1   : > { %v4277_v31 = vpop.permute.xlu2 %4276 }
 0x4e2   : > { %v8384_v26 = vpop.permute.xlu1 %4722  ;;  %v4278_v51 = vsel %vm1965_vm7, %v8284_v9, %v4277_v31  ;;  %v4285_v14 = vsel %vm1965_vm7, %v4277_v31, %v8256_v40  ;;  %v4727_v40 = vpop.permute.xlu0 %4726  ;;  %v8905_v9 = vld [vmem:[#allocation38_spill] sm:$0xff] }
 0x4e3   : > { %v4292_v47 = vmul.f32 %v4278_v51, %v8901_v24  ;;  %v4293_v8 = vmul.f32 %v4285_v14, %v8902_v27  ;;  %v4740_v50 = vsel %vm2531_vm9, %v8356_v54, %v4727_v40  ;;  %v4741_v15 = vsel %vm2531_vm9, %v8384_v26, %v8356_v54  ;;  %v5722_v31 = vld [vmem:[%s8629_s5 + $0x1c] sm:$0xf]  ;;  %v8917_v24 = vld [vmem:[#allocation80_spill] sm:$0xff]  ;;  %v5178_v27 = vld [vmem:[%s8630_s6] sm:$0xf] }
 0x4e4   : > { %v4746_v57 = vmul.f32 %v4740_v50, %v8909_v37  ;;  %v4745_v6 = vmul.f32 %v4741_v15, %v8913_v4  ;;  %v8916_v14 = vld [vmem:[#allocation74_spill] sm:$0xff]  ;;  %5181 = vperm.xlu0 %5853, %v5178_v27   ;;  %v5739_v50 = vld [vmem:[%s8629_s5 + $0x20] sm:$0xf] }
 0x4e5   : > { %5701 = vmatpush.msk.msrb.mxu2 %vm806_vm2, %v4292_v47  ;;  %5703 = vmatpush.msk.msrb.mxu3 %vm806_vm2, %v4293_v8  ;;  %v8922_v15 = vld [vmem:[#allocation79_spill] sm:$0xff] }
 0x4e6   : > { %5690 = vmatmul.msk.f32.vlgmr.msra.gmra.mxu0 %vm3232_vm15, %v5688_v22  ;;  %5692 = vmatmul.msk.f32.vlgmr.msra.gmra.mxu1 %vm3232_vm15, %v5688_v22 }
 0x4e7   : > { %5694 = vmatmul.msk.f32.vlgmr.msra.gmra.mxu2 %vm3232_vm15, %v5688_v22  ;;  %5706 = vmatpush.msk.msra.mxu0 %vm806_vm2, %v4515_v11 }
 0x4e8   : > { %5704 = vmatmul.msk.f32.vlgmr.msrb.gmra.mxu3 %vm3232_vm15, %v5688_v22  ;;  %5708 = vmatpush.msk.msra.mxu1 %vm806_vm2, %v4516_v18 }
 0x4e9   : > { %v4498_v39 = vpop.permute.xlu2 %4497  ;;  %v3317_v51 = vpop.f32.mrf.mxu2 }
 0x4ea   : > { %v4511_v59 = vsel %vm2248_vm8, %v8308_v19, %v4498_v39  ;;  %v8414_v55 = vpop.permute.xlu1 %4734  ;;  %v4729_v45 = vpop.permute.xlu0 %4728  ;;  %v8907_v19 = vld [vmem:[#allocation23_spill] sm:$0xff] }
 0x4eb   : > { %v4517_v21 = vmul.f32 %v4511_v59, %v8905_v9  ;;  %v4739_v60 = vsel %vm2531_vm9, %v4727_v40, %v4729_v45  ;;  %v3297_v33 = vpop.f32.mrf.mxu1  ;;  %v8919_v40 = vld [vmem:[#allocation76_spill] sm:$0xff] }
 0x4ec   : > { %v4747_v12 = vmul.f32 %v4739_v60, %v8910_v16 }
 0x4ed   : > { %5710 = vmatpush.msk.msra.mxu2 %vm806_vm2, %v4517_v21 }
 0x4ee   : > { %5698 = vmatmul.msk.f32.vlgmr.msrb.gmra.mxu0 %vm3232_vm15, %v5688_v22  ;;  %5700 = vmatmul.msk.f32.vlgmr.msrb.gmra.mxu1 %vm3232_vm15, %v5688_v22 }
 0x4ef   : > { %5702 = vmatmul.msk.f32.vlgmr.msrb.gmra.mxu2 %vm3232_vm15, %v5688_v22 }
 0x4f0   : > { %5718 = vmatpush.msk.msrb.mxu2 %vm806_vm2, %v4521_v52 }
 0x4f1   : > { %v4500_v36 = vpop.permute.xlu2 %4499 }
 0x4f2   : > { %v4510_v25 = vsel %vm2248_vm8, %v4498_v39, %v4500_v36  ;;  %v8439_v23 = vpop.permute.xlu1 %4955 }
 0x4f3   : > { %v4518_v43 = vmul.f32 %v4510_v25, %v8907_v19  ;;  %v8920_v25 = vld [vmem:[#allocation77_spill] sm:$0xff] }
 0x4f5   : > { %5712 = vmatpush.msk.msra.mxu3 %vm806_vm2, %v4518_v43 }
 0x4f6   : > { %5707 = vmatmul.msk.f32.vlgmr.msra.gmra.mxu0 %vm3232_vm15, %v5705_v44  ;;  %5709 = vmatmul.msk.f32.vlgmr.msra.gmra.mxu1 %vm3232_vm15, %v5705_v44 }
 0x4f7   : > { %5711 = vmatmul.msk.f32.vlgmr.msra.gmra.mxu2 %vm3232_vm15, %v5705_v44  ;;  %5713 = vmatmul.msk.f32.vlgmr.msra.gmra.mxu3 %vm3232_vm15, %v5705_v44 }
 0x4f8   : > { %5720 = vmatpush.msk.msrb.mxu3 %vm806_vm2, %v4522_v32  ;;  %5727 = vmatpush.msk.msra.mxu2 %vm806_vm2, %v4746_v57 }
 0x4f9   : > { %v4502_v58 = vpop.permute.xlu2 %4501  ;;  %v3337_v7 = vpop.f32.mrf.mxu3 }
 0x4fa   : > { %5729 = vmatpush.msk.msra.mxu3 %vm806_vm2, %v4747_v12  ;;  %v4508_v30 = vsel %vm2248_vm8, %v4502_v58, %v8342_v48  ;;  %v4509_v17 = vsel %vm2248_vm8, %v4500_v36, %v4502_v58  ;;  %v4731_v48 = vpop.permute.xlu0 %4730  ;;  %v4958_v54 = vpop.permute.xlu1 %4957 }
 0x4fb   : > { %v4519_v42 = vmul.f32 %v4509_v17, %v8911_v35  ;;  %v4520_v53 = vmul.f32 %v4508_v30, %v8912_v62  ;;  %v3277_v41 = vpop.f32.mrf.mxu0  ;;  %v4738_v1 = vsel %vm2531_vm9, %v4729_v45, %v4731_v48  ;;  %v4968_v10 = vsel %vm2814_vm10, %v8439_v23, %v4958_v54  ;;  %v8921_v30 = vld [vmem:[#allocation78_spill] sm:$0xff] }
 0x4fc   : > { %v4748_v29 = vmul.f32 %v4738_v1, %v8916_v14  ;;  %v4976_v47 = vmul.f32 %v4968_v10, %v8917_v24  ;;  %v8925_v10 = vld [vmem:[#allocation81_spill] sm:$0xff] }
 0x4fd   : > { %5714 = vmatpush.msk.msrb.mxu0 %vm806_vm2, %v4519_v42  ;;  %5716 = vmatpush.msk.msrb.mxu1 %vm806_vm2, %v4520_v53 }
 0x4fe   : > { %5715 = vmatmul.msk.f32.vlgmr.msrb.gmra.mxu0 %vm3232_vm15, %v5705_v44  ;;  %5717 = vmatmul.msk.f32.vlgmr.msrb.gmra.mxu1 %vm3232_vm15, %v5705_v44 }
 0x4ff   : > { %5719 = vmatmul.msk.f32.vlgmr.msrb.gmra.mxu2 %vm3232_vm15, %v5705_v44  ;;  %5721 = vmatmul.msk.f32.vlgmr.msrb.gmra.mxu3 %vm3232_vm15, %v5705_v44 }
 0x500   : > { %5725 = vmatpush.msk.msra.mxu1 %vm806_vm2, %v4745_v6  ;;  %v8924_v6 = vld [vmem:[#allocation84_spill] sm:$0xff] }
 0x501   : > { %v4721_v56 = vpop.permute.xlu2 %4720  ;;  %v3417_v44 = vpop.f32.mrf.mxu3 }
 0x502   : > { %v4742_v3 = vsel %vm2531_vm9, %v4721_v56, %v8384_v26  ;;  %v4743_v38 = vsel %vm2531_vm9, %v8414_v55, %v4721_v56  ;;  %v4950_v21 = vpop.permute.xlu0 %4949  ;;  %v4960_v60 = vpop.permute.xlu1 %4959 }
 0x503   : > { %v4744_v22 = vmul.f32 %v4742_v3, %v8914_v0  ;;  %v4751_v13 = vmul.f32 %v4743_v38, %v8915_v34  ;;  %v3377_v49 = vpop.f32.mrf.mxu1 }
 0x504   : > { %v3357_v26 = vpop.f32.mrf.mxu0 }
 0x505   : > { %5723 = vmatpush.msk.msra.mxu0 %vm806_vm2, %v4744_v22  ;;  %5737 = vmatpush.msk.msrb.mxu3 %vm806_vm2, %v4751_v13  ;;  %v8926_v22 = vld [vmem:[#allocation82_spill] sm:$0xff] }
 0x506   : > { %5724 = vmatmul.msk.f32.vlgmr.msra.gmra.mxu0 %vm3232_vm15, %v5722_v31  ;;  %5726 = vmatmul.msk.f32.vlgmr.msra.gmra.mxu1 %vm3232_vm15, %v5722_v31 }
 0x507   : > { %5728 = vmatmul.msk.f32.vlgmr.msra.gmra.mxu2 %vm3232_vm15, %v5722_v31  ;;  %5730 = vmatmul.msk.f32.vlgmr.msra.gmra.mxu3 %vm3232_vm15, %v5722_v31 }
 0x508   : > { %5731 = vmatpush.msk.msrb.mxu0 %vm806_vm2, %v4748_v29  ;;  %5746 = vmatpush.msk.msra.mxu3 %vm806_vm2, %v4976_v47 }
 0x509   : > { %v4733_v8 = vpop.permute.xlu2 %4732  ;;  %v3397_v63 = vpop.f32.mrf.mxu2 }
 0x50a   : > { %v4736_v46 = vsel %vm2531_vm9, %v4733_v8, %v8414_v55  ;;  %v4737_v11 = vsel %vm2531_vm9, %v4731_v48, %v4733_v8  ;;  %v4962_v2 = vpop.permute.xlu0 %4961 }
 0x50b   : > { %v4749_v18 = vmul.f32 %v4737_v11, %v8918_v28  ;;  %v4750_v39 = vmul.f32 %v4736_v46, %v8919_v40  ;;  %v3484_v59 = vpop.f32.mrf.mxu1  ;;  %v4966_v16 = vsel %vm2814_vm10, %v4960_v60, %v4962_v2 }
 0x50c   : > { %v3485_v9 = vadd.f32 %v3484_v59, %v3297_v33  ;;  %v4978_v48 = vmul.f32 %v4966_v16, %v8924_v6 }
 0x50d   : > { %5733 = vmatpush.msk.msrb.mxu1 %vm806_vm2, %v4749_v18  ;;  %5735 = vmatpush.msk.msrb.mxu2 %vm806_vm2, %v4750_v39 }
 0x50e   : > { %5732 = vmatmul.msk.f32.vlgmr.msrb.gmra.mxu0 %vm3232_vm15, %v5722_v31  ;;  %5734 = vmatmul.msk.f32.vlgmr.msrb.gmra.mxu1 %vm3232_vm15, %v5722_v31  ;;  %v3464_v55 = vpop.f32.mrf.mxu0 }
 0x50f   : > { %5736 = vmatmul.msk.f32.vlgmr.msrb.gmra.mxu2 %vm3232_vm15, %v5722_v31  ;;  %5738 = vmatmul.msk.f32.vlgmr.msrb.gmra.mxu3 %vm3232_vm15, %v5722_v31  ;;  %v3465_v52 = vadd.f32 %v3464_v55, %v3277_v41  ;;  %v8923_v41 = vld [vmem:[#allocation83_spill] sm:$0xff] }
 0x511   : > { %v4954_v45 = vpop.permute.xlu2 %4953 }
 0x512   : > { %v4969_v36 = vsel %vm2814_vm10, %v4954_v45, %v8439_v23  ;;  %v4967_v23 = vsel %vm2814_vm10, %v4958_v54, %v4960_v60 }
 0x513   : > { %v4975_v61 = vmul.f32 %v4969_v36, %v8920_v25  ;;  %v3564_v19 = vpop.f32.mrf.mxu1  ;;  %v4977_v4 = vmul.f32 %v4967_v23, %v8923_v41 }
 0x514   : > { %v3565_v43 = vadd.f32 %v3564_v19, %v3377_v49 }
 0x515   : > { %5744 = vmatpush.msk.msra.mxu2 %vm806_vm2, %v4975_v61 }
 0x517   : > { %5745 = vmatmul.msk.f32.vlgmr.msra.gmra.mxu2 %vm3232_vm15, %v5739_v50  ;;  %5747 = vmatmul.msk.f32.vlgmr.msra.gmra.mxu3 %vm3232_vm15, %v5739_v50 }
 0x519   : > { %v3504_v32 = vpop.f32.mrf.mxu2 }
 0x51a   : > { %v4952_v37 = vpop.permute.xlu2 %4951  ;;  %v3505_v57 = vadd.f32 %v3504_v32, %v3317_v51 }
 0x51b   : > { %v4970_v12 = vsel %vm2814_vm10, %v4952_v37, %v4954_v45  ;;  %v4971_v58 = vsel %vm2814_vm10, %v4950_v21, %v4952_v37  ;;  %v3544_v33 = vpop.f32.mrf.mxu0 }
 0x51c   : > { %v4973_v17 = vmul.f32 %v4971_v58, %v8921_v30  ;;  %v4974_v35 = vmul.f32 %v4970_v12, %v8922_v15  ;;  %v3705_v42 = vpop.f32.mrf.mxu1  ;;  %v3545_v62 = vadd.f32 %v3544_v33, %v3357_v26 }
 0x51d   : > { %v3829_v53 = vadd.f32 %v3705_v42, %v3485_v9 }
 0x51e   : > { %5740 = vmatpush.msk.msra.mxu0 %vm806_vm2, %v4973_v17  ;;  %5742 = vmatpush.msk.msra.mxu1 %vm806_vm2, %v4974_v35 }
 0x51f   : > { %5741 = vmatmul.msk.f32.vlgmr.msra.gmra.mxu0 %vm3232_vm15, %v5739_v50  ;;  %5743 = vmatmul.msk.f32.vlgmr.msra.gmra.mxu1 %vm3232_vm15, %v5739_v50 }
 0x520   : > { %5748 = vmatpush.msk.msrb.mxu0 %vm806_vm2, %v4977_v4  ;;  %5750 = vmatpush.msk.msrb.mxu1 %vm806_vm2, %v4978_v48 }
 0x521   : > { %v3524_v54 = vpop.f32.mrf.mxu3 }
 0x522   : > { %v3525_v56 = vadd.f32 %v3524_v54, %v3337_v7  ;;  %v4964_v3 = vpop.permute.xlu2 %4963 }
 0x523   : > { %v4965_v38 = vsel %vm2814_vm10, %v4962_v2, %v4964_v3  ;;  %v4972_v1 = vsel %vm2814_vm10, %v4964_v3, %v4950_v21 }
 0x524   : > { %v4979_v0 = vmul.f32 %v4965_v38, %v8925_v10  ;;  %v4980_v34 = vmul.f32 %v4972_v1, %v8926_v22 }
 0x526   : > { %5752 = vmatpush.msk.msrb.mxu2 %vm806_vm2, %v4979_v0  ;;  %5754 = vmatpush.msk.msrb.mxu3 %vm806_vm2, %v4980_v34 }
 0x527   : > { %5749 = vmatmul.msk.f32.vlgmr.msrb.gmra.mxu0 %vm3232_vm15, %v5739_v50  ;;  %5751 = vmatmul.msk.f32.vlgmr.msrb.gmra.mxu1 %vm3232_vm15, %v5739_v50 }
 0x528   : > { %5753 = vmatmul.msk.f32.vlgmr.msrb.gmra.mxu2 %vm3232_vm15, %v5739_v50  ;;  %5755 = vmatmul.msk.f32.vlgmr.msrb.gmra.mxu3 %vm3232_vm15, %v5739_v50 }
 0x529   : > { %v3584_v13 = vpop.f32.mrf.mxu2  ;;  %v3604_v31 = vpop.f32.mrf.mxu3 }
 0x52a   : > { %v3585_v20 = vadd.f32 %v3584_v13, %v3397_v63  ;;  %v3605_v49 = vadd.f32 %v3604_v31, %v3417_v44 }
 0x531   : > { %v3725_v26 = vpop.f32.mrf.mxu2  ;;  %v3745_v51 = vpop.f32.mrf.mxu3 }
 0x532   : > { %v3830_v14 = vadd.f32 %v3725_v26, %v3505_v57  ;;  %v3831_v29 = vadd.f32 %v3745_v51, %v3525_v56 }
 0x533   : > { %v3685_v24 = vpop.f32.mrf.mxu0 }
 0x534   : > { %v3828_v47 = vadd.f32 %v3685_v24, %v3465_v52 }
 0x539   : > { %v3805_v27 = vpop.f32.mrf.mxu2 }
 0x53a   : > { %v3834_v8 = vadd.f32 %v3805_v27, %v3585_v20  ;;  %v3825_v46 = vpop.f32.mrf.mxu3 }
 0x53b   : > { %v3835_v11 = vadd.f32 %v3825_v46, %v3605_v49  ;;  %v3765_v28 = vpop.f32.mrf.mxu0  ;;  %v3785_v18 = vpop.f32.mrf.mxu1 }
 0x53c   : > { %v3832_v40 = vadd.f32 %v3765_v28, %v3545_v62  ;;  %v3833_v39 = vadd.f32 %v3785_v18, %v3565_v43 }
 0x542   : > { %v3954_v59 = vpop.f32.mrf.mxu2  ;;  %v3974_v7 = vpop.f32.mrf.mxu3 }
 0x543   : > { %v4059_v9 = vadd.f32 %v3954_v59, %v3830_v14  ;;  %v4060_v21 = vadd.f32 %v3974_v7, %v3831_v29  ;;  %v3914_v55 = vpop.f32.mrf.mxu0  ;;  %v3934_v63 = vpop.f32.mrf.mxu1 }
 0x544   : > { %v4057_v45 = vadd.f32 %v3914_v55, %v3828_v47  ;;  %v4058_v36 = vadd.f32 %v3934_v63, %v3829_v53 }
 0x54a   : > { %v4054_v25 = vpop.f32.mrf.mxu3 }
 0x54b   : > { %v8550_v61 = vadd.f32 %v4054_v25, %v3835_v11  ;;  %v3994_v52 = vpop.f32.mrf.mxu0  ;;  %v4014_v50 = vpop.f32.mrf.mxu1 }
 0x54c   : > { %v4061_v19 = vadd.f32 %v3994_v52, %v3832_v40  ;;  %v4062_v44 = vadd.f32 %v4014_v50, %v3833_v39 }
 0x552   : > { %v4034_v60 = vpop.f32.mrf.mxu2 }
 0x553   : > { %v8552_v2 = vadd.f32 %v4034_v60, %v3834_v8  ;;  %v4111_v32 = vpop.f32.mrf.mxu0  ;;  %v4171_v43 = vpop.f32.mrf.mxu3 }
 0x554   : > { %v4131_v37 = vpop.f32.mrf.mxu1  ;;  %v4254_v26 = vadd.f32 %v4111_v32, %v4057_v45  ;;  %v4257_v47 = vadd.f32 %v4171_v43, %v4060_v21 }
 0x555   : > { %v4255_v51 = vadd.f32 %v4131_v37, %v4058_v36 }
 0x556   : > { %v5182_v45 = vpop.permute.xlu0 %5181 }
 0x55a   : > { %v4151_v57 = vpop.f32.mrf.mxu2 }
 0x55b   : > { %v4191_v23 = vpop.f32.mrf.mxu0  ;;  %v8554_v12 = vpop.f32.mrf.mxu3  ;;  %v4256_v31 = vadd.f32 %v4151_v57, %v4059_v9 }
 0x55c   : > { %v4211_v16 = vpop.f32.mrf.mxu1  ;;  %v4258_v63 = vadd.f32 %v4191_v23, %v4061_v19  ;;  %v4261_v19 = vadd.f32 %v8554_v12, %v8550_v61 }
 0x55d   : > { %v4259_v50 = vadd.f32 %v4211_v16, %v4062_v44 }
 0x562   : > { %v8556_v58 = vpop.f32.mrf.mxu2 }
 0x563   : > { %v4340_v33 = vpop.f32.mrf.mxu0  ;;  %v4400_v17 = vpop.f32.mrf.mxu3  ;;  %v4260_v44 = vadd.f32 %v8556_v58, %v8552_v2 }
 0x564   : > { %v4360_v30 = vpop.f32.mrf.mxu1  ;;  %v4483_v29 = vadd.f32 %v4340_v33, %v4254_v26  ;;  %v4486_v11 = vadd.f32 %v4400_v17, %v4257_v47 }
 0x565   : > { %v4484_v24 = vadd.f32 %v4360_v30, %v4255_v51 }
 0x56a   : > { %v4380_v15 = vpop.f32.mrf.mxu2 }
 0x56b   : > { %v4420_v35 = vpop.f32.mrf.mxu0  ;;  %v8558_v62 = vpop.f32.mrf.mxu3  ;;  %v4485_v14 = vadd.f32 %v4380_v15, %v4256_v31 }
 0x56c   : > { %v4440_v42 = vpop.f32.mrf.mxu1  ;;  %v4487_v21 = vadd.f32 %v4420_v35, %v4258_v63 }
 0x56d   : > { %v4488_v37 = vadd.f32 %v4440_v42, %v4259_v50 }
 0x572   : > { %v8560_v53 = vpop.f32.mrf.mxu2 }
 0x573   : > { %v4569_v41 = vpop.f32.mrf.mxu0 }
 0x574   : > { %v4589_v4 = vpop.f32.mrf.mxu1  ;;  %v4712_v8 = vadd.f32 %v4569_v41, %v4483_v29 }
 0x575   : > { %v4713_v46 = vadd.f32 %v4589_v4, %v4484_v24 }
 0x57a   : > { %v4609_v6 = vpop.f32.mrf.mxu2  ;;  %v4629_v48 = vpop.f32.mrf.mxu3 }
 0x57b   : > { %v4649_v54 = vpop.f32.mrf.mxu0  ;;  %v4714_v27 = vadd.f32 %v4609_v6, %v4485_v14  ;;  %v4715_v59 = vadd.f32 %v4629_v48, %v4486_v11 }
 0x57c   : > { %v4669_v56 = vpop.f32.mrf.mxu1  ;;  %v4716_v30 = vadd.f32 %v4649_v54, %v4487_v21 }
 0x57d   : > { %v4717_v41 = vadd.f32 %v4669_v56, %v4488_v37  ;;  %v4489_v56 = vadd.f32 %v8560_v53, %v4260_v44 }
 0x582   : > { %v4689_v3 = vpop.f32.mrf.mxu2  ;;  %v4709_v38 = vpop.f32.mrf.mxu3 }
 0x583   : > { %v4798_v1 = vpop.f32.mrf.mxu0  ;;  %v4718_v31 = vadd.f32 %v4689_v3, %v4489_v56 }
 0x584   : > { %v4818_v10 = vpop.f32.mrf.mxu1  ;;  %v4941_v40 = vadd.f32 %v4798_v1, %v4712_v8 }
 0x585   : > { %v4942_v39 = vadd.f32 %v4818_v10, %v4713_v46  ;;  %v4490_v10 = vadd.f32 %v8558_v62, %v4261_v19 }
 0x587   : > { %v4719_v61 = vadd.f32 %v4709_v38, %v4490_v10 }
 0x58a   : > { %v4838_v0 = vpop.f32.mrf.mxu2  ;;  %v4858_v22 = vpop.f32.mrf.mxu3 }
 0x58b   : > { %v4878_v20 = vpop.f32.mrf.mxu0  ;;  %v4943_v28 = vadd.f32 %v4838_v0, %v4714_v27  ;;  %v4944_v60 = vadd.f32 %v4858_v22, %v4715_v59 }
 0x58c   : > { %v4898_v49 = vpop.f32.mrf.mxu1  ;;  %v4945_v23 = vadd.f32 %v4878_v20, %v4716_v30 }
 0x58d   : > { %v4946_v16 = vadd.f32 %v4898_v49, %v4717_v41 }
 0x592   : > { %v4918_v34 = vpop.f32.mrf.mxu2  ;;  %v4938_v13 = vpop.f32.mrf.mxu3 }
 0x593   : > { %v4947_v58 = vadd.f32 %v4918_v34, %v4718_v31  ;;  %v4948_v49 = vadd.f32 %v4938_v13, %v4719_v61 }
 0x59a   : > { %v5067_v18 = vpop.f32.mrf.mxu2  ;;  %v5087_v25 = vpop.f32.mrf.mxu3 }
 0x59b   : > { %v5172_v7 = vadd.f32 %v5067_v18, %v4943_v28  ;;  %v5173_v57 = vadd.f32 %v5087_v25, %v4944_v60 }
 0x59c   : > { %v5027_v55 = vpop.f32.mrf.mxu0  ;;  %v5047_v9 = vpop.f32.mrf.mxu1 }
 0x59d   : > { %v5170_v36 = vadd.f32 %v5027_v55, %v4941_v40  ;;  %v5171_v52 = vadd.f32 %v5047_v9, %v4942_v39  ;;  %v5186_v33 = vadd.f32 %v5182_v45, %v5172_v7  ;;  %v5187_v6 = vadd.f32 %v5182_v45, %v5173_v57 }
 0x59f   : > { %v5184_v32 = vadd.f32 %v5182_v45, %v5170_v36  ;;  %v5185_v43 = vadd.f32 %v5182_v45, %v5171_v52  ;;  %v5195_v35 = vsel %vm806_vm2, %v5186_v33, 0.0  ;;  %v5197_v12 = vsel %vm806_vm2, %v5187_v6, 0.0 }
 0x5a1   : > { %v5192_v17 = vsel %vm806_vm2, %v5184_v32, 0.0  ;;  %v5193_v15 = vsel %vm806_vm2, %v5185_v43, 0.0 }
 0x5a2   : > { %v5194_v4 = vadd.f32 %v5193_v15, %v5192_v17 }
 0x5a4   : > { %v5107_v42 = vpop.f32.mrf.mxu0  ;;  %v5127_v48 = vpop.f32.mrf.mxu1  ;;  %v5196_v54 = vadd.f32 %v5195_v35, %v5194_v4 }
 0x5a5   : > { %v5174_v1 = vadd.f32 %v5107_v42, %v4945_v23  ;;  %v5175_v0 = vadd.f32 %v5127_v48, %v4946_v16 }
 0x5a6   : > { %v5198_v20 = vadd.f32 %v5197_v12, %v5196_v54 }
 0x5a7   : > { %v5188_v22 = vadd.f32 %v5182_v45, %v5174_v1  ;;  %v5189_v26 = vadd.f32 %v5182_v45, %v5175_v0 }
 0x5a9   : > { %v5199_v2 = vsel %vm806_vm2, %v5188_v22, 0.0  ;;  %v5201_v62 = vsel %vm806_vm2, %v5189_v26, 0.0 }
 0x5aa   : > { %v5200_v51 = vadd.f32 %v5199_v2, %v5198_v20 }
 0x5ab   : > { %v5147_v14 = vpop.f32.mrf.mxu2  ;;  %v5167_v29 = vpop.f32.mrf.mxu3 }
 0x5ac   : > { %v5176_v24 = vadd.f32 %v5147_v14, %v4947_v58  ;;  %v5177_v47 = vadd.f32 %v5167_v29, %v4948_v49  ;;  %v5202_v8 = vadd.f32 %v5201_v62, %v5200_v51 }
 0x5ae   : > { %v5190_v53 = vadd.f32 %v5182_v45, %v5176_v24  ;;  %v5191_v27 = vadd.f32 %v5182_v45, %v5177_v47 }
 0x5b0   : > { %v5203_v3 = vsel %vm806_vm2, %v5190_v53, 0.0  ;;  %v5205_v46 = vsel %vm806_vm2, %v5191_v27, 0.0 }
 0x5b1   : > { %v5204_v38 = vadd.f32 %v5203_v3, %v5202_v8 }
 0x5b3   : > { %v5206_v11 = vadd.f32 %v5205_v46, %v5204_v38 }
 0x5b5   : > { %5207 = vadd.xlane.f32.xlu2 %v5206_v11 }
 0x628   : > { %v5208_v34 = vpop.xlane.xlu2 %5207 }
 0x629   : > { %v5209_v13 = vmul.f32 %v5208_v34, %v7933_v5 }
 0x62b   : > { %v5210_v28 = vsub.f32 %v5184_v32, %v5209_v13  ;;  %v5211_v18 = vsub.f32 %v5185_v43, %v5209_v13  ;;  %v5212_v40 = vsub.f32 %v5186_v33, %v5209_v13  ;;  %v5213_v39 = vsub.f32 %v5187_v6, %v5209_v13 }
 0x62c   : > { %v5214_v59 = vsub.f32 %v5188_v22, %v5209_v13  ;;  %v5215_v63 = vsub.f32 %v5189_v26, %v5209_v13  ;;  %v5216_v50 = vsub.f32 %v5190_v53, %v5209_v13  ;;  %v5217_v32 = vsub.f32 %v5191_v27, %v5209_v13 }
 0x62d   : > { %v5218_v7 = vmul.f32 %v5210_v28, %v5210_v28  ;;  %v5219_v55 = vmul.f32 %v5211_v18, %v5211_v18  ;;  %v5220_v9 = vmul.f32 %v5212_v40, %v5212_v40  ;;  %v5221_v25 = vmul.f32 %v5213_v39, %v5213_v39 }
 0x62e   : > { %v5222_v60 = vmul.f32 %v5214_v59, %v5214_v59  ;;  %v5223_v43 = vmul.f32 %v5215_v63, %v5215_v63  ;;  %v5224_v30 = vmul.f32 %v5216_v50, %v5216_v50  ;;  %v5225_v41 = vmul.f32 %v5217_v32, %v5217_v32 }
 0x62f   : > { %v5226_v45 = vsel %vm806_vm2, %v5218_v7, 0.0  ;;  %v5227_v36 = vsel %vm806_vm2, %v5219_v55, 0.0  ;;  %v5229_v21 = vsel %vm806_vm2, %v5220_v9, 0.0  ;;  %v5231_v57 = vsel %vm806_vm2, %v5221_v25, 0.0 }
 0x630   : > { %v5228_v52 = vadd.f32 %v5227_v36, %v5226_v45  ;;  %v5233_v17 = vsel %vm806_vm2, %v5222_v60, 0.0  ;;  %v5235_v4 = vsel %vm806_vm2, %v5223_v43, 0.0  ;;  %v5237_v23 = vsel %vm806_vm2, %v5224_v30, 0.0 }
 0x631   : > { %v5239_v16 = vsel %vm806_vm2, %v5225_v41, 0.0 }
 0x632   : > { %v5230_v37 = vadd.f32 %v5229_v21, %v5228_v52 }
 0x634   : > { %v5232_v33 = vadd.f32 %v5231_v57, %v5230_v37 }
 0x636   : > { %v5234_v15 = vadd.f32 %v5233_v17, %v5232_v33 }
 0x638   : > { %v5236_v19 = vadd.f32 %v5235_v4, %v5234_v15 }
 0x63a   : > { %v5238_v44 = vadd.f32 %v5237_v23, %v5236_v19 }
 0x63c   : > { %v5240_v35 = vadd.f32 %v5239_v16, %v5238_v44 }
 0x63e   : > { %5241 = vadd.xlane.f32.xlu1 %v5240_v35 }
 0x6b1   : > { %v5242_v42 = vpop.xlane.xlu1 %5241 }
 0x6b2   : > { %v5243_v6 = vmul.f32 %v5242_v42, %v7933_v5 }
 0x6b4   : > { %v5244_v48 = vadd.f32 1e-05, %v5243_v6 }
 0x6b6   : > { %5858 = vrsqrt.f32 %v5244_v48  ;;  %vm5251_vm1 = vweird.f32 %v5244_v48 }
 0x6bc   : > { %v5859_v54 = vpop.eup %5858 }
 0x6bd   : > { %v5246_v1 = vmul.f32 %v5859_v54, %v5244_v48  ;;  %vm5252_vm0 = vweird.f32 %v5859_v54 }
 0x6be   : > { %vm5253_vm3 = vmor %vm5251_vm1, %vm5252_vm0 }
 0x6bf   : > { %v5247_v10 = vmul.f32 %v5859_v54, %v5246_v1 }
 0x6c1   : > { %v5248_v56 = vmul.f32 0.5, %v5247_v10 }
 0x6c3   : > { %v5249_v0 = vsub.f32 1.5, %v5248_v56 }
 0x6c5   : > { %v5250_v22 = vmul.f32 %v5859_v54, %v5249_v0 }
 0x6c7   : > { %v5254_v31 = vsel %vm5253_vm3, %v5859_v54, %v5250_v22 }
 0x6c8   : > { %v5255_v61 = vmul.f32 %v5254_v31, %v5210_v28  ;;  %v5256_v12 = vmul.f32 %v5254_v31, %v5211_v18  ;;  %v5257_v20 = vmul.f32 %v5254_v31, %v5212_v40  ;;  %v5258_v2 = vmul.f32 %v5254_v31, %v5213_v39 }
 0x6c9   : > { %v5259_v58 = vmul.f32 %v5254_v31, %v5214_v59  ;;  %v5260_v49 = vmul.f32 %v5254_v31, %v5215_v63  ;;  %v5261_v5 = vmul.f32 %v5254_v31, %v5216_v50  ;;  %v5262_v26 = vmul.f32 %v5254_v31, %v5217_v32 }
 0x6ca   : > { %v5264_v51 = vmax.f32 %v5256_v12, 0.0  ;;  %v5266_v14 = vmax.f32 %v5258_v2, 0.0  ;;  %v5263_v47 = vmax.f32 %v5255_v61, 0.0  ;;  %v5265_v62 = vmax.f32 %v5257_v20, 0.0 }
 0x6cb   : > { %v5268_v29 = vmax.f32 %v5260_v49, 0.0  ;;  %v5270_v24 = vmax.f32 %v5262_v26, 0.0  ;;  %v5267_v8 = vmax.f32 %v5259_v58, 0.0  ;;  %v5269_v3 = vmax.f32 %v5261_v5, 0.0 }
 0x6cc   : > { %v5279_v53 = vrot.slane %v5264_v51, 4  ;;  %v5280_v27 = vrot.slane %v5266_v14, 4 }
 0x6cd   : > { %v5281_v38 = vrot.slane %v5268_v29, 4  ;;  %v5282_v46 = vrot.slane %v5270_v24, 4 }
 0x6ce   : > { %v5283_v11 = vsel %vm806_vm2, %v5263_v47, %v5279_v53  ;;  %v5284_v34 = vsel %vm806_vm2, %v5265_v62, %v5280_v27 }
 0x6cf   : > { %v5285_v13 = vsel %vm806_vm2, %v5267_v8, %v5281_v38  ;;  %v5286_v28 = vsel %vm806_vm2, %v5269_v3, %v5282_v46  ;;  %5291 = vst [vmem:[%s398_s12] sm:$0xff] %v5283_v11 }
 0x6d0   : > { %5292 = vst [vmem:[%s398_s12 + $0x8] sm:$0xff] %v5284_v34 }
 0x6d1   : > { %5293 = vst [vmem:[%s398_s12 + $0x10] sm:$0xff] %v5285_v13 }
 0x6d2   : > { %5294 = vst [vmem:[%s398_s12 + $0x18] sm:$0xff] %v5286_v28 }
 0x6d3   : > { %6014 = shalt.err (!%p6011_p10)
}
 0x6d4   : > { %5776 = dma.vmem_to_hbm [thread:$0]  (%p6199_p4), %s5310_s2, 512, %s5312_s13, %s5296_s19  }
 0x6d5 PF: > { %s5323_s24 = sand.u32 1, %s6053_s27   ;;  %p8928_p11 = scmp.ge.s32.totalorder %s6065_s30, 2 }
 0x6d6   : > { %s5324_s15 = scalar_lea.sflag [#allocation4], %s5323_s24 }
 0x6d7   : > { %p5793_p5 = pnand %p8928_p11, %p6203_p6 }
 0x6d9   : > { %p5794_p13 = pneg %p5793_p5 }
 0x6db   : > { %6048 = dma.done.wait (%p5794_p13), %s5324_s15, 512  }
 0x6dc   : > { %6050 = vsyncadd (%p5794_p13), %s5324_s15, 4294966784  ;;  %s8929_s30 = sld [smem:[#allocation17_spill]]  ;;  %s8932_s27 = smov %s6057_s28 }
 0x6dd   : > { %s8930_s16 = sld [smem:[#allocation16_spill]] }
 0x6de   : > { %s8931_s29 = sld [smem:[#allocation18_spill]] }
 0x6e2   : > { %p25_p0 = scmp.ge.s32.totalorder %s8929_s30, 4  }
 0x6e3   : > { %s8933_s28 = smov %s8930_s16 }
 0x6e4   :  { %27 = sbr.rel (!%p25_p0) target bundleno = 11 (0xb), region = 147 }
 0x6e9   :  { %5330 = vsyncpa [#allocation3], 1 }
 0x6ea   :  { %5332 = vsyncpa [#allocation3 + $0x1], 1 }
 0x6eb   :  { %5333 = vsyncpa [#allocation6], 1 }
 0x6ec   :  { %5335 = vsyncpa [#allocation6 + $0x1], 1 }
 0x6ed   :  { %5336 = vsyncpa [#allocation9], 1 }
 0x6ee   :  { %5337 = vsyncpa [#allocation4], 1 }
 0x6ef   :  { %5339 = vsyncpa [#allocation4 + $0x1], 1 }

</bundles_post_ra>
